<compile_context>
chip_gen: v7x
topology: tpu7x:2x2x1
jax: 0.10.0
libtpu: 0.0.40
codegen_flags: <defaults>
</compile_context>

<pallas_src>
import jax
import jax.numpy as jnp
from jax.experimental import pallas as pl
from jax.experimental.pallas import tpu as pltpu

EMBED_DIM = 512   # embed_dim=512 in HyVisionTransformer, input_dim=512 in SE_block
N_TOKENS = 49     # in_chans=49 / q_chanel=49 -> 49 tokens per stream


def fused_kernel(xir_ref, xface_ref,
                 wp_ref, bp_ref,
                 w1_ref, b1_ref, w2_ref, b2_ref,
                 o_ref):
    D = EMBED_DIM

    # ---- token pooling (surrogate for HyVisionTransformer) ----------------
    # TODO(synk): surrogate for the unavailable HyVisionTransformer body.
    # The 1/N_TOKENS mean scale is folded into wp at init, so pooling is a
    # plain f32 sum over the (unaligned, masked) 49-token axis.
    p_ir = jnp.sum(xir_ref[...], axis=1).astype(jnp.bfloat16)      # (B, D)
    p_face = jnp.sum(xface_ref[...], axis=1).astype(jnp.bfloat16)  # (B, D)

    # Stacked projection [p_ir, p_face] @ [wpi; wpf] + bp, done as two MXU
    # dots on static slices of the stacked weight ref (avoids a lane concat).
    y = (jnp.dot(p_ir, wp_ref[pl.ds(0, D), :],
                 preferred_element_type=jnp.float32)
         + jnp.dot(p_face, wp_ref[pl.ds(D, D), :],
                   preferred_element_type=jnp.float32)
         + bp_ref[...])                                             # (B, D) f32

    # ---- SE_block (exact semantics) ----------------------------------------
    # x1 = relu(y @ W1 + b1); g = sigmoid(x1 @ W2 + b2); out = y * g
    h = jnp.dot(y.astype(jnp.bfloat16), w1_ref[...],
                preferred_element_type=jnp.float32) + b1_ref[...]
    h = jnp.maximum(h, 0.0)
    g = jnp.dot(h.astype(jnp.bfloat16), w2_ref[...],
                preferred_element_type=jnp.float32) + b2_ref[...]
    g = jax.nn.sigmoid(g)                                           # exact gate
    o_ref[...] = (y * g).astype(o_ref.dtype)


def pyramid_trans_expr_forward(x_ir, x_face, params):
    B, N, D = x_ir.shape
    assert D == EMBED_DIM and x_face.shape == (B, N, D)

    # Single-step kernel: no grid, no pipelining.  Each operand is placed
    # whole in VMEM (single buffer) and DMA'd exactly once.
    vmem = lambda: pl.BlockSpec(memory_space=pltpu.MemorySpace.VMEM)

    return pl.pallas_call(
        fused_kernel,
        out_shape=jax.ShapeDtypeStruct((B, D), jnp.float32),
        in_specs=[vmem() for _ in range(8)],
        out_specs=vmem(),
    )(x_ir, x_face,
      params["wp"], params["bp"],
      params["w1"], params["b1"], params["w2"], params["b2"])


def init_params(key):
    """Deterministic synthetic params, PyTorch-style uniform(+-1/sqrt(fan_in))."""
    D = EMBED_DIM
    ks = jax.random.split(key, 7)

    def u(k, shape, fan_in):
        bound = 1.0 / jnp.sqrt(fan_in)
        return jax.random.uniform(k, shape, jnp.float32, -bound, bound)

    # surrogate fusion projections (see TODO(synk)); stacked [wpi; wpf] with
    # the 1/N_TOKENS mean scale folded in, then cast to bf16 (done once at
    # init, not per call).
    wpi = u(ks[0], (D, D), D)
    wpf = u(ks[1], (D, D), D)
    wp = (jnp.concatenate([wpi, wpf], axis=0) / N_TOKENS).astype(jnp.bfloat16)

    return {
        "wp": wp,                                       # (2D, D) bf16
        "bp": u(ks[2], (1, D), D),                      # f32
        # SE_block.linear1 / linear2 weights stored transposed as (in, out)
        "w1": u(ks[3], (D, D), D).astype(jnp.bfloat16),
        "b1": u(ks[4], (1, D), D),
        "w2": u(ks[5], (D, D), D).astype(jnp.bfloat16),
        "b2": u(ks[6], (1, D), D),
    }


if __name__ == "__main__":
    key = jax.random.PRNGKey(0)
    k_ir, k_face, k_p = jax.random.split(key, 3)

    B = 8   # epilogue scales ~free in B up to one MXU tile (128/256 rows)
    x_ir = jax.random.normal(k_ir, (B, N_TOKENS, EMBED_DIM), jnp.float32)
    x_face = jax.random.normal(k_face, (B, N_TOKENS, EMBED_DIM), jnp.float32)
    params = init_params(k_p)

    out = pyramid_trans_expr_forward(x_ir, x_face, params)
    out = jax.block_until_ready(out)
    assert out.shape == (B, EMBED_DIM) and out.dtype == jnp.float32
    assert bool(jnp.all(jnp.isfinite(out)))
    print("KERNEL_OK")
</pallas_src>

<mosaic_0001>
module attributes {stable_mosaic.version = 11 : i64} {
  func.func @fused_kernel(%arg0: memref<8x49x512xf32, #tpu.memory_space<vmem>>, %arg1: memref<8x49x512xf32, #tpu.memory_space<vmem>>, %arg2: memref<1024x512xbf16, #tpu.memory_space<vmem>>, %arg3: memref<1x512xf32, #tpu.memory_space<vmem>>, %arg4: memref<512x512xbf16, #tpu.memory_space<vmem>>, %arg5: memref<1x512xf32, #tpu.memory_space<vmem>>, %arg6: memref<512x512xbf16, #tpu.memory_space<vmem>>, %arg7: memref<1x512xf32, #tpu.memory_space<vmem>>, %arg8: memref<8x512xf32, #tpu.memory_space<vmem>>) attributes {dimension_semantics = [], scalar_prefetch = 0 : i64, scratch_operands = 0 : i64, tpu.core_type = #tpu.core_type<tc>} {
    %c0 = arith.constant 0 : index
    %c0_0 = arith.constant 0 : index
    %c0_1 = arith.constant 0 : index
    %0 = vector.load %arg0[%c0, %c0_0, %c0_1] : memref<8x49x512xf32, #tpu.memory_space<vmem>>, vector<8x49x512xf32>
    %cst = arith.constant dense<0.000000e+00> : vector<8x512xf32>
    %1 = vector.multi_reduction <add>, %0, %cst [1] : vector<8x49x512xf32> to vector<8x512xf32>
    %2 = arith.truncf %1 : vector<8x512xf32> to vector<8x512xbf16>
    %c0_2 = arith.constant 0 : index
    %c0_3 = arith.constant 0 : index
    %c0_4 = arith.constant 0 : index
    %3 = vector.load %arg1[%c0_2, %c0_3, %c0_4] : memref<8x49x512xf32, #tpu.memory_space<vmem>>, vector<8x49x512xf32>
    %cst_5 = arith.constant dense<0.000000e+00> : vector<8x512xf32>
    %4 = vector.multi_reduction <add>, %3, %cst_5 [1] : vector<8x49x512xf32> to vector<8x512xf32>
    %5 = arith.truncf %4 : vector<8x512xf32> to vector<8x512xbf16>
    %c0_6 = arith.constant 0 : index
    %c0_7 = arith.constant 0 : index
    %6 = vector.load %arg2[%c0_6, %c0_7] : memref<1024x512xbf16, #tpu.memory_space<vmem>>, vector<512x512xbf16>
    %cst_8 = arith.constant dense<0.000000e+00> : vector<8x512xf32>
    %7 = tpu.matmul %2, %6, %cst_8 {dimension_numbers = #tpu.dot_dimension_numbers<[1], [0], [0], [1], [0, 0, 1, 1], [], []>} : vector<8x512xbf16>, vector<512x512xbf16>, vector<8x512xf32> -> vector<8x512xf32>
    %c512 = arith.constant 512 : index
    %c0_9 = arith.constant 0 : index
    %8 = vector.load %arg2[%c512, %c0_9] : memref<1024x512xbf16, #tpu.memory_space<vmem>>, vector<512x512xbf16>
    %cst_10 = arith.constant dense<0.000000e+00> : vector<8x512xf32>
    %9 = tpu.matmul %5, %8, %cst_10 {dimension_numbers = #tpu.dot_dimension_numbers<[1], [0], [0], [1], [0, 0, 1, 1], [], []>} : vector<8x512xbf16>, vector<512x512xbf16>, vector<8x512xf32> -> vector<8x512xf32>
    %10 = arith.addf %7, %9 : vector<8x512xf32>
    %c0_11 = arith.constant 0 : index
    %c0_12 = arith.constant 0 : index
    %11 = vector.load %arg3[%c0_11, %c0_12] : memref<1x512xf32, #tpu.memory_space<vmem>>, vector<1x512xf32>
    %12 = vector.broadcast %11 : vector<1x512xf32> to vector<8x512xf32>
    %13 = arith.addf %10, %12 : vector<8x512xf32>
    %14 = arith.truncf %13 : vector<8x512xf32> to vector<8x512xbf16>
    %c0_13 = arith.constant 0 : index
    %c0_14 = arith.constant 0 : index
    %15 = vector.load %arg4[%c0_13, %c0_14] : memref<512x512xbf16, #tpu.memory_space<vmem>>, vector<512x512xbf16>
    %cst_15 = arith.constant dense<0.000000e+00> : vector<8x512xf32>
    %16 = tpu.matmul %14, %15, %cst_15 {dimension_numbers = #tpu.dot_dimension_numbers<[1], [0], [0], [1], [0, 0, 1, 1], [], []>} : vector<8x512xbf16>, vector<512x512xbf16>, vector<8x512xf32> -> vector<8x512xf32>
    %c0_16 = arith.constant 0 : index
    %c0_17 = arith.constant 0 : index
    %17 = vector.load %arg5[%c0_16, %c0_17] : memref<1x512xf32, #tpu.memory_space<vmem>>, vector<1x512xf32>
    %18 = vector.broadcast %17 : vector<1x512xf32> to vector<8x512xf32>
    %19 = arith.addf %16, %18 : vector<8x512xf32>
    %cst_18 = arith.constant 0.000000e+00 : f32
    %20 = vector.broadcast %cst_18 : f32 to vector<8x512xf32>
    %21 = arith.maximumf %19, %20 : vector<8x512xf32>
    %22 = arith.truncf %21 : vector<8x512xf32> to vector<8x512xbf16>
    %c0_19 = arith.constant 0 : index
    %c0_20 = arith.constant 0 : index
    %23 = vector.load %arg6[%c0_19, %c0_20] : memref<512x512xbf16, #tpu.memory_space<vmem>>, vector<512x512xbf16>
    %cst_21 = arith.constant dense<0.000000e+00> : vector<8x512xf32>
    %24 = tpu.matmul %22, %23, %cst_21 {dimension_numbers = #tpu.dot_dimension_numbers<[1], [0], [0], [1], [0, 0, 1, 1], [], []>} : vector<8x512xbf16>, vector<512x512xbf16>, vector<8x512xf32> -> vector<8x512xf32>
    %c0_22 = arith.constant 0 : index
    %c0_23 = arith.constant 0 : index
    %25 = vector.load %arg7[%c0_22, %c0_23] : memref<1x512xf32, #tpu.memory_space<vmem>>, vector<1x512xf32>
    %26 = vector.broadcast %25 : vector<1x512xf32> to vector<8x512xf32>
    %27 = arith.addf %24, %26 : vector<8x512xf32>
    %28 = arith.negf %27 : vector<8x512xf32>
    %29 = math.exp %28 : vector<8x512xf32>
    %cst_24 = arith.constant 1.000000e+00 : f32
    %30 = vector.broadcast %cst_24 : f32 to vector<8x512xf32>
    %31 = arith.addf %30, %29 : vector<8x512xf32>
    %32 = arith.divf %30, %31 : vector<8x512xf32>
    %33 = arith.mulf %13, %32 : vector<8x512xf32>
    %c0_25 = arith.constant 0 : index
    %c0_26 = arith.constant 0 : index
    %34 = vector.load %arg8[%c0_25, %c0_26] : memref<8x512xf32, #tpu.memory_space<vmem>>, vector<8x512xf32>
    tpu.vector_store %arg8[%c0_25, %c0_26], %33 {strides = array<i32>} : memref<8x512xf32, #tpu.memory_space<vmem>>, vector<8x512xf32>,
    return
  }
}

</mosaic_0001>

<bundles_post_ra>
// kernel: tpu_custom_call.1
= control target key start
LH: loop header
LB: loop body
LE: loop exit
PB: predicated region body
PF: predicated region fallthrough
CT: control target
= control target key end

     0   :  { %vm259_vm0 = vcmask 1040384   ;;  %vm1695_vm1 = vcmask 1041409   ;;  %vm1697_vm2 = vcmask 1042434   ;;  %vm1699_vm3 = vcmask 1043459   ;;  %s10016_s0 = inlined_call_operand.vmem [shape: f32[8,49,512], index: 0, kind: input, shape index: {}]   ;;  %s10017_s1 = inlined_call_operand.vmem [shape: f32[8,49,512], index: 1, kind: input, shape index: {}]   ;;  %s10018_s2 = inlined_call_operand.vmem [shape: bf16[1024,512], index: 2, kind: input, shape index: {}]   ;;  %s10019_s3 = inlined_call_operand.vmem [shape: f32[1,512], index: 3, kind: input, shape index: {}]   ;;  %s10020_s4 = inlined_call_operand.vmem [shape: bf16[512,512], index: 4, kind: input, shape index: {}]   ;;  %s10021_s5 = inlined_call_operand.vmem [shape: f32[1,512], index: 5, kind: input, shape index: {}]   ;;  %s10022_s6 = inlined_call_operand.vmem [shape: bf16[512,512], index: 6, kind: input, shape index: {}]   ;;  %s10023_s7 = inlined_call_operand.vmem [shape: f32[1,512], index: 7, kind: input, shape index: {}]   ;;  %s10024_s8 = inlined_call_operand.hbm [shape: f32[8,512], index: 8, kind: output, shape index: {}]  }
   0x1   :  { %v5979_v0 = vld [vmem:[%s10018_s2 + $0x404] ss:$16 sps:$4 sm:$0xff]   ;;  %v5983_v2 = vld [vmem:[%s10018_s2 + $0x400] ss:$16 sps:$4 sm:$0xff]   ;;  %v704_v47 = vld [vmem:[%s10017_s1 + $0x8] sm:$0xff]  ;;  %vm1701_vm4 = vcmask 1044484  }
   0x2   :  { %v5981_v1 = vld [vmem:[%s10018_s2 + $0x604] ss:$16 sps:$4 sm:$0xff]   ;;  %2378 = vmatprep.subr.bf16.mxu0 %v5979_v0  ;;  %v5984_v3 = vld [vmem:[%s10018_s2 + $0x600] ss:$16 sps:$4 sm:$0xff]   ;;  %v708_v49 = vld [vmem:[%s10017_s1 + $0x28] sm:$0xff]  ;;  %vm1703_vm5 = vcmask 1045509  }
   0x3   :  { %2419 = vmatprep.subr.bf16.mxu1 %v5981_v1  ;;  %v5985_v4 = vld [vmem:[%s10018_s2 + $0x424] ss:$16 sps:$4 sm:$0xff]   ;;  %2379 = vmatpush1.bf16.msra.mxu0 %v5983_v2  ;;  %v5989_v6 = vld [vmem:[%s10018_s2 + $0x420] ss:$16 sps:$4 sm:$0xff]   ;;  %v712_v50 = vld [vmem:[%s10017_s1 + $0x48] sm:$0xff]  ;;  %v940_v54 = vadd.f32 %v708_v49, %v704_v47  ;;  %vm1705_vm6 = vcmask 1046534  }
   0x4   :  { %2420 = vmatpush1.bf16.msra.mxu1 %v5984_v3  ;;  %v5987_v5 = vld [vmem:[%s10018_s2 + $0x624] ss:$16 sps:$4 sm:$0xff]   ;;  %2380 = vmatprep.subr.bf16.mxu0 %v5985_v4  ;;  %v5990_v7 = vld [vmem:[%s10018_s2 + $0x620] ss:$16 sps:$4 sm:$0xff]   ;;  %v716_v53 = vld [vmem:[%s10017_s1 + $0x68] sm:$0xff]  ;;  %vm1707_vm7 = vcmask 1047559  }
   0x5   :  { %2421 = vmatprep.subr.bf16.mxu1 %v5987_v5  ;;  %v5991_v8 = vld [vmem:[%s10018_s2 + $0x444] ss:$16 sps:$4 sm:$0xff]   ;;  %v5995_v10 = vld [vmem:[%s10018_s2 + $0x440] ss:$16 sps:$4 sm:$0xff]   ;;  %v732_v55 = vld [vmem:[%s10017_s1 + $0xe8] sm:$0xff]  ;;  %v941_v61 = vadd.f32 %v940_v54, %v712_v50 }
   0x6   :  { %v5993_v9 = vld [vmem:[%s10018_s2 + $0x644] ss:$16 sps:$4 sm:$0xff]   ;;  %v5996_v11 = vld [vmem:[%s10018_s2 + $0x640] ss:$16 sps:$4 sm:$0xff]   ;;  %v736_v56 = vld [vmem:[%s10017_s1 + $0x108] sm:$0xff] }
   0x7   :  { %2381 = vmatpush1.bf16.msra.mxu0 %v5989_v6  ;;  %v5997_v12 = vld [vmem:[%s10018_s2 + $0x464] ss:$16 sps:$4 sm:$0xff]   ;;  %v6001_v14 = vld [vmem:[%s10018_s2 + $0x460] ss:$16 sps:$4 sm:$0xff]   ;;  %v740_v57 = vld [vmem:[%s10017_s1 + $0x128] sm:$0xff]  ;;  %v992_v62 = vadd.f32 %v736_v56, %v732_v55 }
   0x8   :  { %2422 = vmatpush1.bf16.msra.mxu1 %v5990_v7  ;;  %2382 = vmatprep.subr.bf16.mxu0 %v5991_v8  ;;  %v5999_v13 = vld [vmem:[%s10018_s2 + $0x664] ss:$16 sps:$4 sm:$0xff]   ;;  %v6002_v15 = vld [vmem:[%s10018_s2 + $0x660] ss:$16 sps:$4 sm:$0xff]   ;;  %v720_v60 = vld [vmem:[%s10017_s1 + $0x88] sm:$0xff]  ;;  %v942_v8 = vadd.f32 %v941_v61, %v716_v53 }
   0x9   :  { %2423 = vmatprep.subr.bf16.mxu1 %v5993_v9  ;;  %v6003_v16 = vld [vmem:[%s10018_s2 + $0x484] ss:$16 sps:$4 sm:$0xff]   ;;  %v6007_v18 = vld [vmem:[%s10018_s2 + $0x480] ss:$16 sps:$4 sm:$0xff]   ;;  %v724_v1 = vld [vmem:[%s10017_s1 + $0xa8] sm:$0xff]  ;;  %v993_v9 = vadd.f32 %v992_v62, %v740_v57 }
   0xa   :  { %v6005_v17 = vld [vmem:[%s10018_s2 + $0x684] ss:$16 sps:$4 sm:$0xff]   ;;  %v6008_v19 = vld [vmem:[%s10018_s2 + $0x680] ss:$16 sps:$4 sm:$0xff]   ;;  %v744_v2 = vld [vmem:[%s10017_s1 + $0x148] sm:$0xff] }
   0xb   :  { %2383 = vmatpush1.bf16.msra.mxu0 %v5995_v10  ;;  %v6009_v20 = vld [vmem:[%s10018_s2 + $0x4a4] ss:$16 sps:$4 sm:$0xff]   ;;  %v6013_v22 = vld [vmem:[%s10018_s2 + $0x4a0] ss:$16 sps:$4 sm:$0xff]   ;;  %v760_v3 = vld [vmem:[%s10017_s1 + $0x1c8] sm:$0xff] }
   0xc   :  { %2424 = vmatpush1.bf16.msra.mxu1 %v5996_v11  ;;  %2384 = vmatprep.subr.bf16.mxu0 %v5997_v12  ;;  %v6011_v21 = vld [vmem:[%s10018_s2 + $0x6a4] ss:$16 sps:$4 sm:$0xff]   ;;  %v6014_v23 = vld [vmem:[%s10018_s2 + $0x6a0] ss:$16 sps:$4 sm:$0xff]   ;;  %v764_v4 = vld [vmem:[%s10017_s1 + $0x1e8] sm:$0xff] }
   0xd   :  { %2425 = vmatprep.subr.bf16.mxu1 %v5999_v13  ;;  %v6015_v24 = vld [vmem:[%s10018_s2 + $0x4c4] ss:$16 sps:$4 sm:$0xff]   ;;  %v6019_v26 = vld [vmem:[%s10018_s2 + $0x4c0] ss:$16 sps:$4 sm:$0xff]   ;;  %v728_v5 = vld [vmem:[%s10017_s1 + $0xc8] sm:$0x1]  ;;  %v1044_v10 = vadd.f32 %v764_v4, %v760_v3 }
   0xe   :  { %v6017_v25 = vld [vmem:[%s10018_s2 + $0x6c4] ss:$16 sps:$4 sm:$0xff]   ;;  %v6020_v27 = vld [vmem:[%s10018_s2 + $0x6c0] ss:$16 sps:$4 sm:$0xff]   ;;  %v748_v6 = vld [vmem:[%s10017_s1 + $0x168] sm:$0xff] }
   0xf   :  { %2385 = vmatpush1.bf16.msra.mxu0 %v6001_v14  ;;  %v6021_v28 = vld [vmem:[%s10018_s2 + $0x4e4] ss:$16 sps:$4 sm:$0xff]   ;;  %v6025_v30 = vld [vmem:[%s10018_s2 + $0x4e0] ss:$16 sps:$4 sm:$0xff]   ;;  %v768_v7 = vld [vmem:[%s10017_s1 + $0x208] sm:$0xff] }
  0x10   :  { %2426 = vmatpush1.bf16.msra.mxu1 %v6002_v15  ;;  %2386 = vmatprep.subr.bf16.mxu0 %v6003_v16  ;;  %v6023_v29 = vld [vmem:[%s10018_s2 + $0x6e4] ss:$16 sps:$4 sm:$0xff]   ;;  %v6026_v31 = vld [vmem:[%s10018_s2 + $0x6e0] ss:$16 sps:$4 sm:$0xff]   ;;  %v752_v11 = vld [vmem:[%s10017_s1 + $0x188] sm:$0xff] }
  0x11   :  { %2427 = vmatprep.subr.bf16.mxu1 %v6005_v17  ;;  %v6027_v32 = vld [vmem:[%s10018_s2 + $0x504] ss:$16 sps:$4 sm:$0xff]   ;;  %v6031_v34 = vld [vmem:[%s10018_s2 + $0x500] ss:$16 sps:$4 sm:$0xff]   ;;  %v756_v12 = vld [vmem:[%s10017_s1 + $0x1a8] sm:$0x1] }
  0x12   :  { %v6029_v33 = vld [vmem:[%s10018_s2 + $0x704] ss:$16 sps:$4 sm:$0xff]   ;;  %v6032_v35 = vld [vmem:[%s10018_s2 + $0x700] ss:$16 sps:$4 sm:$0xff]   ;;  %v772_v13 = vld [vmem:[%s10017_s1 + $0x228] sm:$0xff] }
  0x13   :  { %2387 = vmatpush1.bf16.msra.mxu0 %v6007_v18  ;;  %v6033_v36 = vld [vmem:[%s10018_s2 + $0x524] ss:$16 sps:$4 sm:$0xff]   ;;  %v6037_v38 = vld [vmem:[%s10018_s2 + $0x520] ss:$16 sps:$4 sm:$0xff]   ;;  %v788_v14 = vld [vmem:[%s10017_s1 + $0x2a8] sm:$0xff] }
  0x14   :  { %2428 = vmatpush1.bf16.msra.mxu1 %v6008_v19  ;;  %2388 = vmatprep.subr.bf16.mxu0 %v6009_v20  ;;  %v6035_v37 = vld [vmem:[%s10018_s2 + $0x724] ss:$16 sps:$4 sm:$0xff]   ;;  %v6038_v39 = vld [vmem:[%s10018_s2 + $0x720] ss:$16 sps:$4 sm:$0xff]   ;;  %v776_v17 = vld [vmem:[%s10017_s1 + $0x248] sm:$0xff]  ;;  %v943_v20 = vadd.f32 %v942_v8, %v720_v60 }
  0x15   :  { %2429 = vmatprep.subr.bf16.mxu1 %v6011_v21  ;;  %v6039_v40 = vld [vmem:[%s10018_s2 + $0x544] ss:$16 sps:$4 sm:$0xff]   ;;  %v6043_v42 = vld [vmem:[%s10018_s2 + $0x540] ss:$16 sps:$4 sm:$0xff]   ;;  %v792_v18 = vld [vmem:[%s10017_s1 + $0x2c8] sm:$0xff]  ;;  %v994_v21 = vadd.f32 %v993_v9, %v744_v2 }
  0x16   :  { %v6041_v41 = vld [vmem:[%s10018_s2 + $0x744] ss:$16 sps:$4 sm:$0xff]   ;;  %v6044_v43 = vld [vmem:[%s10018_s2 + $0x740] ss:$16 sps:$4 sm:$0xff]   ;;  %v796_v19 = vld [vmem:[%s10017_s1 + $0x2e8] sm:$0xff] }
  0x17   :  { %2389 = vmatpush1.bf16.msra.mxu0 %v6013_v22  ;;  %v6045_v44 = vld [vmem:[%s10018_s2 + $0x564] ss:$16 sps:$4 sm:$0xff]   ;;  %v6049_v46 = vld [vmem:[%s10018_s2 + $0x560] ss:$16 sps:$4 sm:$0xff]   ;;  %v1045_v22 = vadd.f32 %v1044_v10, %v768_v7  ;;  %v852_v53 = vld [vmem:[%s10017_s1 + $0x4a8] sm:$0xff] }
  0x18   :  { %2430 = vmatpush1.bf16.msra.mxu1 %v6014_v23  ;;  %2390 = vmatprep.subr.bf16.mxu0 %v6015_v24  ;;  %v6047_v45 = vld [vmem:[%s10018_s2 + $0x764] ss:$16 sps:$4 sm:$0xff]   ;;  %v6050_v48 = vld [vmem:[%s10018_s2 + $0x760] ss:$16 sps:$4 sm:$0xff]   ;;  %v872_v60 = vld [vmem:[%s10017_s1 + $0x548] sm:$0xff] }
  0x19   :  { %2431 = vmatprep.subr.bf16.mxu1 %v6017_v25  ;;  %v6051_v51 = vld [vmem:[%s10018_s2 + $0x584] ss:$16 sps:$4 sm:$0xff]   ;;  %v6055_v58 = vld [vmem:[%s10018_s2 + $0x580] ss:$16 sps:$4 sm:$0xff]   ;;  %v780_v25 = vld [vmem:[%s10017_s1 + $0x268] sm:$0xff] }
  0x1a   :  { %v6053_v52 = vld [vmem:[%s10018_s2 + $0x784] ss:$16 sps:$4 sm:$0xff]   ;;  %v6056_v59 = vld [vmem:[%s10018_s2 + $0x780] ss:$16 sps:$4 sm:$0xff]   ;;  %v876_v2 = vld [vmem:[%s10017_s1 + $0x568] sm:$0xff] }
  0x1b   :  { %2391 = vmatpush1.bf16.msra.mxu0 %v6019_v26  ;;  %v6057_v63 = vld [vmem:[%s10018_s2 + $0x5a4] ss:$16 sps:$4 sm:$0xff]   ;;  %v6061_v15 = vld [vmem:[%s10018_s2 + $0x5a0] ss:$16 sps:$4 sm:$0xff]   ;;  %v784_v26 = vld [vmem:[%s10017_s1 + $0x288] sm:$0x1] }
  0x1c   :  { %2432 = vmatpush1.bf16.msra.mxu1 %v6020_v27  ;;  %2392 = vmatprep.subr.bf16.mxu0 %v6021_v28  ;;  %v6059_v0 = vld [vmem:[%s10018_s2 + $0x7a4] ss:$16 sps:$4 sm:$0xff]   ;;  %v6062_v16 = vld [vmem:[%s10018_s2 + $0x7a0] ss:$16 sps:$4 sm:$0xff]   ;;  %v800_v27 = vld [vmem:[%s10017_s1 + $0x308] sm:$0xff]  ;;  %v945_v28 = vsel %vm259_vm0, %v728_v5, 0.0 }
  0x1d   :  { %2433 = vmatprep.subr.bf16.mxu1 %v6023_v29  ;;  %v6063_v23 = vld [vmem:[%s10018_s2 + $0x5c4] ss:$16 sps:$4 sm:$0xff]   ;;  %v1096_v29 = vadd.f32 %v792_v18, %v788_v14  ;;  %v1049_v54 = vsel %vm259_vm0, %v784_v26, 0.0  ;;  %v880_v3 = vld [vmem:[%s10017_s1 + $0x588] sm:$0xff]  ;;  %v1252_v14 = vadd.f32 %v876_v2, %v872_v60 }
  0x1e   :  { %v6065_v24 = vld [vmem:[%s10018_s2 + $0x7c4] ss:$16 sps:$4 sm:$0xff]   ;;  %v836_v8 = vld [vmem:[%s10017_s1 + $0x428] sm:$0xff] }
  0x1f   :  { %2393 = vmatpush1.bf16.msra.mxu0 %v6025_v30  ;;  %v816_v30 = vld [vmem:[%s10017_s1 + $0x388] sm:$0xff]  ;;  %v6069_v50 = vld [vmem:[%s10018_s2 + $0x5e4] ss:$16 sps:$4 sm:$0xff]  }
  0x20   :  { %2434 = vmatpush1.bf16.msra.mxu1 %v6026_v31  ;;  %2394 = vmatprep.subr.bf16.mxu0 %v6027_v32  ;;  %v820_v31 = vld [vmem:[%s10017_s1 + $0x3a8] sm:$0xff] }
  0x21   :  { %2435 = vmatprep.subr.bf16.mxu1 %v6029_v33  ;;  %v824_v32 = vld [vmem:[%s10017_s1 + $0x3c8] sm:$0xff]  ;;  %v944_v33 = vadd.f32 %v943_v20, %v724_v1  ;;  %v6071_v1 = vld [vmem:[%s10018_s2 + $0x7e4] ss:$16 sps:$4 sm:$0xff]  }
  0x22   :  { %v860_v9 = vld [vmem:[%s10017_s1 + $0x4e8] sm:$0xff] }
  0x23   :  { %2395 = vmatpush1.bf16.msra.mxu0 %v6031_v34  ;;  %v995_v34 = vadd.f32 %v994_v21, %v748_v6  ;;  %v946_v47 = vadd.f32 %v945_v28, %v944_v33  ;;  %v896_v10 = vld [vmem:[%s10017_s1 + $0x608] sm:$0x1]  ;;  %v1253_v28 = vadd.f32 %v1252_v14, %v880_v3 }
  0x24   :  { %2436 = vmatpush1.bf16.msra.mxu1 %v6032_v35  ;;  %2396 = vmatprep.subr.bf16.mxu0 %v6033_v36  ;;  %v1046_v35 = vadd.f32 %v1045_v22, %v772_v13  ;;  %v804_v36 = vld [vmem:[%s10017_s1 + $0x328] sm:$0xff]  ;;  %v1257_v33 = vsel %vm259_vm0, %v896_v10, 0.0 }
  0x25   :  { %2437 = vmatprep.subr.bf16.mxu1 %v6035_v37  ;;  %v812_v37 = vld [vmem:[%s10017_s1 + $0x368] sm:$0x1]  ;;  %v947_v61 = vrot.slane %v946_v47, 4 }
  0x26   :  { %v1047_v49 = vadd.f32 %v1046_v35, %v776_v17  ;;  %v884_v17 = vld [vmem:[%s10017_s1 + $0x5a8] sm:$0xff] }
  0x27   :  { %2397 = vmatpush1.bf16.msra.mxu0 %v6037_v38  ;;  %v828_v38 = vld [vmem:[%s10017_s1 + $0x3e8] sm:$0xff] }
  0x28   :  { %2438 = vmatpush1.bf16.msra.mxu1 %v6038_v39  ;;  %2398 = vmatprep.subr.bf16.mxu0 %v6039_v40  ;;  %v997_v39 = vsel %vm259_vm0, %v756_v12, 0.0  ;;  %v1097_v40 = vadd.f32 %v1096_v29, %v796_v19  ;;  %v864_v22 = vld [vmem:[%s10017_s1 + $0x508] sm:$0xff] }
  0x29   :  { %2439 = vmatprep.subr.bf16.mxu1 %v6041_v41  ;;  %v1148_v41 = vadd.f32 %v820_v31, %v816_v30  ;;  %v888_v29 = vld [vmem:[%s10017_s1 + $0x5c8] sm:$0xff] }
  0x2a   :  { %v1098_v55 = vadd.f32 %v1097_v40, %v800_v27 }
  0x2b   :  { %2399 = vmatpush1.bf16.msra.mxu0 %v6043_v42  ;;  %v6067_v42 = vld [vmem:[%s10018_s2 + $0x5c0] ss:$16 sps:$4 sm:$0xff]   ;;  %v1149_v56 = vadd.f32 %v1148_v41, %v824_v32 }
  0x2c   :  { %2440 = vmatpush1.bf16.msra.mxu1 %v6044_v43  ;;  %2400 = vmatprep.subr.bf16.mxu0 %v6045_v44  ;;  %v6068_v43 = vld [vmem:[%s10018_s2 + $0x7c0] ss:$16 sps:$4 sm:$0xff]   ;;  %v840_v44 = vld [vmem:[%s10017_s1 + $0x448] sm:$0x1]  ;;  %v1099_v4 = vadd.f32 %v1098_v55, %v804_v36 }
  0x2d   :  { %2441 = vmatprep.subr.bf16.mxu1 %v6047_v45  ;;  %v844_v45 = vld [vmem:[%s10017_s1 + $0x468] sm:$0xff]  ;;  %v1150_v5 = vadd.f32 %v1149_v56, %v828_v38  ;;  %v1153_v6 = vsel %vm259_vm0, %v840_v44, 0.0  ;;  %v1254_v38 = vadd.f32 %v1253_v28, %v884_v17  ;;  %v710_v17 = vld [vmem:[%s10017_s1 + $0x38] sm:$0xff] }
  0x2e   :  { %v912_v44 = vld [vmem:[%s10017_s1 + $0x688] sm:$0xff] }
  0x2f   :  { %2401 = vmatpush1.bf16.msra.mxu0 %v6049_v46  ;;  %v848_v46 = vld [vmem:[%s10017_s1 + $0x488] sm:$0xff] }
  0x30   :  { %2442 = vmatpush1.bf16.msra.mxu1 %v6050_v48  ;;  %2402 = vmatprep.subr.bf16.mxu0 %v6051_v51  ;;  %v996_v48 = vadd.f32 %v995_v34, %v752_v11  ;;  %v808_v51 = vld [vmem:[%s10017_s1 + $0x348] sm:$0xff]  ;;  %v1200_v57 = vadd.f32 %v848_v46, %v844_v45  ;;  %v948_v11 = vadd.f32 %v947_v61, %v946_v47 }
  0x31   :  { %2443 = vmatprep.subr.bf16.mxu1 %v6053_v52  ;;  %v832_v52 = vld [vmem:[%s10017_s1 + $0x408] sm:$0xff]  ;;  %v1100_v18 = vadd.f32 %v1099_v4, %v808_v51 }
  0x32   :  { %v998_v62 = vadd.f32 %v997_v39, %v996_v48  ;;  %v1201_v7 = vadd.f32 %v1200_v57, %v852_v53  ;;  %v1151_v19 = vadd.f32 %v1150_v5, %v832_v52  ;;  %v908_v34 = vld [vmem:[%s10017_s1 + $0x668] sm:$0xff]  ;;  %v1255_v48 = vadd.f32 %v1254_v38, %v888_v29  ;;  %v738_v38 = vld [vmem:[%s10017_s1 + $0x118] sm:$0xff] }
  0x33   :  { %2403 = vmatpush1.bf16.msra.mxu0 %v6055_v58  ;;  %v856_v58 = vld [vmem:[%s10017_s1 + $0x4c8] sm:$0xff] }
  0x34   :  { %2444 = vmatpush1.bf16.msra.mxu1 %v6056_v59  ;;  %2404 = vmatprep.subr.bf16.mxu0 %v6057_v63  ;;  %v868_v59 = vld [vmem:[%s10017_s1 + $0x528] sm:$0x1]  ;;  %v1048_v63 = vadd.f32 %v1047_v49, %v780_v25  ;;  %v999_v12 = vrot.slane %v998_v62, 4  ;;  %v1202_v20 = vadd.f32 %v1201_v7, %v856_v58  ;;  %v949_v25 = vrot.slane %v948_v11, 2 }
  0x35   :  { %2445 = vmatprep.subr.bf16.mxu1 %v6059_v0  ;;  %v1101_v0 = vsel %vm259_vm0, %v812_v37, 0.0  ;;  %v1205_v21 = vsel %vm259_vm0, %v868_v59, 0.0  ;;  %v1152_v31 = vadd.f32 %v1151_v19, %v836_v8  ;;  %v892_v39 = vld [vmem:[%s10017_s1 + $0x5e8] sm:$0xff] }
  0x36   :  { %v1050_v13 = vadd.f32 %v1049_v54, %v1048_v63  ;;  %v1000_v26 = vadd.f32 %v999_v12, %v998_v62  ;;  %v1102_v30 = vadd.f32 %v1101_v0, %v1100_v18  ;;  %v1203_v32 = vadd.f32 %v1202_v20, %v860_v9  ;;  %v924_v49 = vld [vmem:[%s10017_s1 + $0x6e8] sm:$0x1] }
  0x37   :  { %2405 = vmatpush1.bf16.msra.mxu0 %v6061_v15  ;;  %v6073_v15 = vld [vmem:[%s10018_s2 + $0x5e0] ss:$16 sps:$4 sm:$0xff]   ;;  %v950_v35 = vadd.f32 %v949_v25, %v948_v11  ;;  %v1154_v41 = vadd.f32 %v1153_v6, %v1152_v31  ;;  %v916_v54 = vld [vmem:[%s10017_s1 + $0x6a8] sm:$0xff]  ;;  %v1256_v58 = vadd.f32 %v1255_v48, %v892_v39  ;;  %v1309_v3 = vsel %vm259_vm0, %v924_v49, 0.0  ;;  %v718_v31 = vld [vmem:[%s10017_s1 + $0x78] sm:$0xff] }
  0x38   :  { %2446 = vmatpush1.bf16.msra.mxu1 %v6062_v16  ;;  %2406 = vmatprep.subr.bf16.mxu0 %v6063_v23  ;;  %v6074_v16 = vld [vmem:[%s10018_s2 + $0x7e0] ss:$16 sps:$4 sm:$0xff]   ;;  %v900_v23 = vld [vmem:[%s10017_s1 + $0x628] sm:$0xff]  ;;  %v1051_v27 = vrot.slane %v1050_v13, 4  ;;  %v1001_v36 = vrot.slane %v1000_v26, 2  ;;  %v1103_v40 = vrot.slane %v1102_v30, 4 }
  0x39   :  { %2447 = vmatprep.subr.bf16.mxu1 %v6065_v24  ;;  %v904_v24 = vld [vmem:[%s10017_s1 + $0x648] sm:$0xff]  ;;  %v951_v45 = vrot.slane %v950_v35, 1  ;;  %v1155_v51 = vrot.slane %v1154_v41, 4  ;;  %v1258_v2 = vadd.f32 %v1257_v33, %v1256_v58  ;;  %v758_v39 = vld [vmem:[%s10017_s1 + $0x1b8] sm:$0x1] }
  0x3a   :  { %v1052_v37 = vadd.f32 %v1051_v27, %v1050_v13  ;;  %v1002_v46 = vadd.f32 %v1001_v36, %v1000_v26  ;;  %v920_v63 = vld [vmem:[%s10017_s1 + $0x6c8] sm:$0xff]  ;;  %v714_v26 = vld [vmem:[%s10017_s1 + $0x58] sm:$0xff] }
  0x3b   :  { %2407 = vmatpush1.bf16.msra.mxu0 %v6067_v42  ;;  %v1204_v42 = vadd.f32 %v1203_v32, %v864_v22  ;;  %v952_v55 = vadd.f32 %v951_v45, %v950_v35  ;;  %v1156_v60 = vadd.f32 %v1155_v51, %v1154_v41  ;;  %v1259_v9 = vrot.slane %v1258_v2, 4  ;;  %v730_v27 = vld [vmem:[%s10017_s1 + $0xd8] sm:$0x1] }
  0x3c   :  { %2448 = vmatpush1.bf16.msra.mxu1 %v6068_v43  ;;  %2408 = vmatprep.subr.bf16.mxu0 %v6069_v50  ;;  %v1304_v43 = vadd.f32 %v904_v24, %v900_v23  ;;  %v1053_v47 = vrot.slane %v1052_v37, 2  ;;  %v1104_v50 = vadd.f32 %v1103_v40, %v1102_v30  ;;  %v1003_v56 = vrot.slane %v1002_v46, 1  ;;  %v742_v49 = vld [vmem:[%s10017_s1 + $0x138] sm:$0xff] }
  0x3d   :  { %2449 = vmatprep.subr.bf16.mxu1 %v6071_v1  ;;  %v1206_v52 = vadd.f32 %v1205_v21, %v1204_v42  ;;  %v1157_v5 = vrot.slane %v1156_v60, 2  ;;  %v1344_v10 = vpack.c.bf16 %v952_v55, %v952_v55  ;;  %v1260_v18 = vadd.f32 %v1259_v9, %v1258_v2  ;;  %v722_v42 = vld [vmem:[%s10017_s1 + $0x98] sm:$0xff] }
  0x3e   :  { %v1305_v53 = vadd.f32 %v1304_v43, %v908_v34  ;;  %v1054_v57 = vadd.f32 %v1053_v47, %v1052_v37  ;;  %v1105_v59 = vrot.slane %v1104_v50, 2  ;;  %v1004_v0 = vadd.f32 %v1003_v56, %v1002_v46  ;;  %v734_v37 = vld [vmem:[%s10017_s1 + $0xf8] sm:$0xff] }
  0x3f   :  { %2409 = vmatpush1.bf16.msra.mxu0 %v6073_v15  ;;  %v1207_v61 = vrot.slane %v1206_v52, 4  ;;  %v1158_v13 = vadd.f32 %v1157_v5, %v1156_v60  ;;  %v1664_v20 = vunpack.c.l.b16 %v1344_v10  ;;  %v1261_v28 = vrot.slane %v1260_v18, 2  ;;  %v766_v51 = vld [vmem:[%s10017_s1 + $0x1f8] sm:$0xff] }
  0x40   :  { %2450 = vmatpush1.bf16.msra.mxu1 %v6074_v16  ;;  %v1306_v62 = vadd.f32 %v1305_v53, %v912_v44  ;;  %v1055_v1 = vrot.slane %v1054_v57, 1  ;;  %v1106_v4 = vadd.f32 %v1105_v59, %v1104_v50  ;;  %v1348_v11 = vpack.c.bf16 %v1004_v0, %v1004_v0  ;;  %v706_v16 = vld [vmem:[%s10017_s1 + $0x18] sm:$0xff] }
  0x41   :  { %v1208_v6 = vadd.f32 %v1207_v61, %v1206_v52  ;;  %v1159_v23 = vrot.slane %v1158_v13, 1  ;;  %v966_v32 = vadd.f32 %v710_v17, %v706_v16  ;;  %v1262_v40 = vadd.f32 %v1261_v28, %v1260_v18  ;;  %v762_v50 = vld [vmem:[%s10017_s1 + $0x1d8] sm:$0xff] }
  0x42   :  { %v1307_v7 = vadd.f32 %v1306_v62, %v916_v54  ;;  %v1056_v8 = vadd.f32 %v1055_v1, %v1054_v57  ;;  %v1107_v12 = vrot.slane %v1106_v4, 1  ;;  %v1668_v21 = vunpack.c.l.b16 %v1348_v11  ;;  %v786_v53 = vld [vmem:[%s10017_s1 + $0x298] sm:$0x1] }
  0x43   :  { %v1209_v14 = vrot.slane %v1208_v6, 2  ;;  %v1160_v33 = vadd.f32 %v1159_v23, %v1158_v13  ;;  %v967_v43 = vadd.f32 %v966_v32, %v714_v26  ;;  %v971_v44 = vsel %vm259_vm0, %v730_v27, 0.0  ;;  %v726_v61 = vld [vmem:[%s10017_s1 + $0xb8] sm:$0xff] }
  0x44   :  { %v1308_v15 = vadd.f32 %v1307_v7, %v920_v63  ;;  %v1352_v19 = vpack.c.bf16 %v1056_v8, %v1056_v8  ;;  %v1108_v22 = vadd.f32 %v1107_v12, %v1106_v4  ;;  %v1709_v30 = vsel %vm1695_vm1, %v1668_v21, %v1664_v20  ;;  %v746_v62 = vld [vmem:[%s10017_s1 + $0x158] sm:$0xff] }
  0x45   :  { %v1210_v24 = vadd.f32 %v1209_v14, %v1208_v6  ;;  %v1360_v47 = vpack.c.bf16 %v1160_v33, %v1160_v33  ;;  %v1263_v52 = vrot.slane %v1262_v40, 1  ;;  %v968_v54 = vadd.f32 %v967_v43, %v718_v31  ;;  %v770_v63 = vld [vmem:[%s10017_s1 + $0x218] sm:$0xff] }
  0x46   :  { %v1310_v25 = vadd.f32 %v1309_v3, %v1308_v15  ;;  %v1672_v29 = vunpack.c.l.b16 %v1352_v19  ;;  %v1356_v36 = vpack.c.bf16 %v1108_v22, %v1108_v22  ;;  %v1018_v55 = vadd.f32 %v738_v38, %v734_v37  ;;  %v790_v1 = vld [vmem:[%s10017_s1 + $0x2b8] sm:$0xff] }
  0x47   :  { %v1211_v34 = vrot.slane %v1210_v24, 1  ;;  %v7244_v56 = vsel %vm259_vm0, %v758_v39, 0.0  ;;  %v1680_v59 = vunpack.c.l.b16 %v1360_v47  ;;  %v1264_v0 = vadd.f32 %v1263_v52, %v1262_v40  ;;  %v794_v2 = vld [vmem:[%s10017_s1 + $0x2d8] sm:$0xff] }
  0x48   :  { %v1311_v35 = vrot.slane %v1310_v25, 4  ;;  %v1710_v41 = vsel %vm1697_vm2, %v1672_v29, %v1709_v30  ;;  %v1676_v48 = vunpack.c.l.b16 %v1356_v36  ;;  %v814_v3 = vld [vmem:[%s10017_s1 + $0x378] sm:$0x1]  ;;  %v969_v4 = vadd.f32 %v968_v54, %v722_v42 }
  0x49   :  { %v1212_v45 = vadd.f32 %v1211_v34, %v1210_v24  ;;  %v1019_v5 = vadd.f32 %v1018_v55, %v742_v49  ;;  %v1070_v6 = vadd.f32 %v766_v51, %v762_v50  ;;  %v750_v10 = vld [vmem:[%s10017_s1 + $0x178] sm:$0xff]  ;;  %v1075_v13 = vsel %vm259_vm0, %v786_v53, 0.0 }
  0x4a   :  { %v1312_v46 = vadd.f32 %v1311_v35, %v1310_v25  ;;  %v1711_v60 = vsel %vm1699_vm3, %v1676_v48, %v1710_v41  ;;  %v774_v11 = vld [vmem:[%s10017_s1 + $0x238] sm:$0xff]  ;;  %v1368_v14 = vpack.c.bf16 %v1264_v0, %v1264_v0  ;;  %v970_v18 = vadd.f32 %v969_v4, %v726_v61 }
  0x4b   :  { %v1364_v58 = vpack.c.bf16 %v1212_v45, %v1212_v45  ;;  %v1712_v9 = vsel %vm1701_vm4, %v1680_v59, %v1711_v60  ;;  %v798_v12 = vld [vmem:[%s10017_s1 + $0x2f8] sm:$0xff]  ;;  %v1020_v19 = vadd.f32 %v1019_v5, %v746_v62  ;;  %v1071_v20 = vadd.f32 %v1070_v6, %v770_v63 }
  0x4c   :  { %v1313_v57 = vrot.slane %v1312_v46, 2  ;;  %v818_v15 = vld [vmem:[%s10017_s1 + $0x398] sm:$0xff]  ;;  %v1122_v26 = vadd.f32 %v794_v2, %v790_v1  ;;  %v1127_v27 = vsel %vm259_vm0, %v814_v3, 0.0  ;;  %v1688_v28 = vunpack.c.l.b16 %v1368_v14 }
  0x4d   :  { %v1684_v8 = vunpack.c.l.b16 %v1364_v58  ;;  %v822_v16 = vld [vmem:[%s10017_s1 + $0x3b8] sm:$0xff]  ;;  %v972_v32 = vadd.f32 %v971_v44, %v970_v18  ;;  %v1021_v33 = vadd.f32 %v1020_v19, %v750_v10  ;;  %v1072_v34 = vadd.f32 %v1071_v20, %v774_v11 }
  0x4e   :  { %v1314_v7 = vadd.f32 %v1313_v57, %v1312_v46  ;;  %v842_v17 = vld [vmem:[%s10017_s1 + $0x458] sm:$0x1]  ;;  %v1123_v38 = vadd.f32 %v1122_v26, %v798_v12  ;;  %v1174_v39 = vadd.f32 %v822_v16, %v818_v15 }
  0x4f   :  { %v1713_v22 = vsel %vm1703_vm5, %v1684_v8, %v1712_v9  ;;  %v754_v23 = vld [vmem:[%s10017_s1 + $0x198] sm:$0xff]  ;;  %v1179_v40 = vsel %vm259_vm0, %v842_v17, 0.0  ;;  %v973_v45 = vrot.slane %v972_v32, 4 }
  0x50   :  { %v1315_v21 = vrot.slane %v1314_v7, 1  ;;  %v778_v24 = vld [vmem:[%s10017_s1 + $0x258] sm:$0xff]  ;;  %v1714_v41 = vsel %vm1705_vm6, %v1688_v28, %v1713_v22  ;;  %v1022_v46 = vadd.f32 %v1021_v33, %v754_v23 }
  0x51   :  { %v802_v25 = vld [vmem:[%s10017_s1 + $0x318] sm:$0xff]  ;;  %v1073_v47 = vadd.f32 %v1072_v34, %v778_v24  ;;  %v974_v58 = vadd.f32 %v973_v45, %v972_v32 }
  0x52   :  { %v826_v29 = vld [vmem:[%s10017_s1 + $0x3d8] sm:$0xff]  ;;  %v1316_v35 = vadd.f32 %v1315_v21, %v1314_v7  ;;  %v1124_v51 = vadd.f32 %v1123_v38, %v802_v25  ;;  %v1024_v59 = vadd.f32 %v7244_v56, %v1022_v46 }
  0x53   :  { %v846_v30 = vld [vmem:[%s10017_s1 + $0x478] sm:$0xff]  ;;  %v1175_v52 = vadd.f32 %v1174_v39, %v826_v29  ;;  %v975_v56 = vrot.slane %v974_v58, 2 }
  0x54   :  { %v850_v31 = vld [vmem:[%s10017_s1 + $0x498] sm:$0xff]  ;;  %v1372_v48 = vpack.c.bf16 %v1316_v35, %v1316_v35  ;;  %v1025_v5 = vrot.slane %v1024_v59, 4 }
  0x55   :  { %v782_v36 = vld [vmem:[%s10017_s1 + $0x278] sm:$0xff]  ;;  %v1226_v53 = vadd.f32 %v850_v31, %v846_v30  ;;  %v976_v16 = vadd.f32 %v975_v56, %v974_v58 }
  0x56   :  { %v870_v37 = vld [vmem:[%s10017_s1 + $0x538] sm:$0x1]  ;;  %v1074_v60 = vadd.f32 %v1073_v47, %v782_v36  ;;  %v1692_v62 = vunpack.c.l.b16 %v1372_v48  ;;  %v1026_v17 = vadd.f32 %v1025_v5, %v1024_v59 }
  0x57   :  { %v806_v42 = vld [vmem:[%s10017_s1 + $0x338] sm:$0xff]  ;;  %v1231_v61 = vsel %vm259_vm0, %v870_v37, 0.0  ;;  %v977_v26 = vrot.slane %v976_v16, 1 }
  0x58   :  { %v830_v43 = vld [vmem:[%s10017_s1 + $0x3f8] sm:$0xff]  ;;  %v1125_v63 = vadd.f32 %v1124_v51, %v806_v42  ;;  %v1076_v6 = vadd.f32 %v1075_v13, %v1074_v60  ;;  %v1715_v8 = vsel %vm1707_vm7, %v1692_v62, %v1714_v41  ;;  %v1027_v28 = vrot.slane %v1026_v17, 2 }
  0x59   :  { %v854_v44 = vld [vmem:[%s10017_s1 + $0x4b8] sm:$0xff]  ;;  %v1176_v0 = vadd.f32 %v1175_v52, %v830_v43  ;;  %v7352_v14 = vpack.c.b16 %v1715_v8, %v1715_v8  ;;  %v978_v37 = vadd.f32 %v977_v26, %v976_v16 }
  0x5a   :  { %v874_v49 = vld [vmem:[%s10017_s1 + $0x558] sm:$0xff]  ;;  %v1227_v1 = vadd.f32 %v1226_v53, %v854_v44  ;;  %v1077_v18 = vrot.slane %v1076_v6, 4  ;;  %v1028_v38 = vadd.f32 %v1027_v28, %v1026_v17 }
  0x5b   :  { %v878_v50 = vld [vmem:[%s10017_s1 + $0x578] sm:$0xff]  ;;  %2410 = vmatprep.mubr.bf16.mxu0 %v7352_v14  ;;  %v1346_v59 = vpack.c.bf16 %v978_v37, %v978_v37 }
  0x5c   :  { %v810_v54 = vld [vmem:[%s10017_s1 + $0x358] sm:$0xff]  ;;  %v1278_v7 = vadd.f32 %v878_v50, %v874_v49  ;;  %v1078_v29 = vadd.f32 %v1077_v18, %v1076_v6  ;;  %v1029_v47 = vrot.slane %v1028_v38, 1 }
  0x5d   :  { %v834_v55 = vld [vmem:[%s10017_s1 + $0x418] sm:$0xff]  ;;  %v1126_v10 = vadd.f32 %v1125_v63, %v810_v54  ;;  %v1666_v5 = vunpack.c.l.b16 %v1346_v59 }
  0x5e   :  { %v858_v57 = vld [vmem:[%s10017_s1 + $0x4d8] sm:$0xff]  ;;  %v1177_v11 = vadd.f32 %v1176_v0, %v834_v55  ;;  %v1079_v39 = vrot.slane %v1078_v29, 2  ;;  %v1030_v55 = vadd.f32 %v1029_v47, %v1028_v38 }
  0x5f   :  { %v838_v2 = vld [vmem:[%s10017_s1 + $0x438] sm:$0xff]  ;;  %v1228_v12 = vadd.f32 %v1227_v1, %v858_v57  ;;  %v1128_v21 = vadd.f32 %v1127_v27, %v1126_v10  ;;  %v703_v1 = vld [vmem:[%s10017_s1] sm:$0xff] }
  0x60   :  { %v862_v3 = vld [vmem:[%s10017_s1 + $0x4f8] sm:$0xff]  ;;  %v1178_v22 = vadd.f32 %v1177_v11, %v838_v2  ;;  %v707_v2 = vld [vmem:[%s10017_s1 + $0x20] sm:$0xff]  ;;  %v1350_v56 = vpack.c.bf16 %v1030_v55, %v1030_v55 }
  0x61   :  { %v882_v4 = vld [vmem:[%s10017_s1 + $0x598] sm:$0xff]  ;;  %v1229_v23 = vadd.f32 %v1228_v12, %v862_v3  ;;  %v1129_v32 = vrot.slane %v1128_v21, 4  ;;  %v711_v10 = vld [vmem:[%s10017_s1 + $0x40] sm:$0xff] }
  0x62   :  { %v898_v9 = vld [vmem:[%s10017_s1 + $0x618] sm:$0x1]  ;;  %v1279_v24 = vadd.f32 %v1278_v7, %v882_v4  ;;  %v1180_v33 = vadd.f32 %v1179_v40, %v1178_v22  ;;  %v1080_v40 = vadd.f32 %v1079_v39, %v1078_v29  ;;  %v743_v55 = vld [vmem:[%s10017_s1 + $0x140] sm:$0xff] }
  0x63   :  { %v866_v15 = vld [vmem:[%s10017_s1 + $0x518] sm:$0xff]  ;;  %v1283_v30 = vsel %vm259_vm0, %v898_v9, 0.0  ;;  %v1130_v43 = vadd.f32 %v1129_v32, %v1128_v21  ;;  %v727_v21 = vld [vmem:[%s10017_s1 + $0xc0] sm:$0x1] }
  0x64   :  { %v886_v13 = vld [vmem:[%s10017_s1 + $0x5b8] sm:$0xff]  ;;  %v1230_v34 = vadd.f32 %v1229_v23, %v866_v15  ;;  %v1181_v44 = vrot.slane %v1180_v33, 4  ;;  %v1081_v57 = vrot.slane %v1080_v40, 1  ;;  %v1670_v15 = vunpack.c.l.b16 %v1350_v56  ;;  %v735_v32 = vld [vmem:[%s10017_s1 + $0x100] sm:$0xff] }
  0x65   :  { %v902_v19 = vld [vmem:[%s10017_s1 + $0x638] sm:$0xff]  ;;  %v1280_v35 = vadd.f32 %v1279_v24, %v886_v13  ;;  %v1131_v51 = vrot.slane %v1130_v43, 2  ;;  %v927_v13 = vadd.f32 %v707_v2, %v703_v1  ;;  %v932_v38 = vsel %vm259_vm0, %v727_v21, 0.0  ;;  %v751_v56 = vld [vmem:[%s10017_s1 + $0x180] sm:$0xff] }
  0x66   :  { %v906_v20 = vld [vmem:[%s10017_s1 + $0x658] sm:$0xff]  ;;  %v1232_v45 = vadd.f32 %v1231_v61, %v1230_v34  ;;  %v1182_v52 = vadd.f32 %v1181_v44, %v1180_v33  ;;  %v1082_v3 = vadd.f32 %v1081_v57, %v1080_v40  ;;  %v1723_v24 = vsel %vm1695_vm1, %v1670_v15, %v1666_v5  ;;  %v755_v33 = vld [vmem:[%s10017_s1 + $0x1a0] sm:$0x1] }
  0x67   :  { %v890_v25 = vld [vmem:[%s10017_s1 + $0x5d8] sm:$0xff]  ;;  %v1330_v41 = vadd.f32 %v906_v20, %v902_v19  ;;  %v1132_v61 = vadd.f32 %v1131_v51, %v1130_v43  ;;  %v715_v20 = vld [vmem:[%s10017_s1 + $0x60] sm:$0xff]  ;;  %v928_v26 = vadd.f32 %v927_v13, %v711_v10 }
  0x68   :  { %v910_v31 = vld [vmem:[%s10017_s1 + $0x678] sm:$0xff]  ;;  %v1281_v46 = vadd.f32 %v1280_v35, %v890_v25  ;;  %v1233_v53 = vrot.slane %v1232_v45, 4  ;;  %v1183_v62 = vrot.slane %v1182_v52, 2  ;;  %v1354_v12 = vpack.c.bf16 %v1082_v3, %v1082_v3  ;;  %v719_v25 = vld [vmem:[%s10017_s1 + $0x80] sm:$0xff] }
  0x69   :  { %v926_v27 = vld [vmem:[%s10017_s1 + $0x6f8] sm:$0x1]  ;;  %v1331_v48 = vadd.f32 %v1330_v41, %v910_v31  ;;  %v1133_v6 = vrot.slane %v1132_v61, 1  ;;  %v929_v37 = vadd.f32 %v928_v26, %v715_v20  ;;  %v739_v44 = vld [vmem:[%s10017_s1 + $0x120] sm:$0xff] }
  0x6a   :  { %v894_v36 = vld [vmem:[%s10017_s1 + $0x5f8] sm:$0xff]  ;;  %v1335_v49 = vsel %vm259_vm0, %v926_v27, 0.0  ;;  %v1234_v63 = vadd.f32 %v1233_v53, %v1232_v45  ;;  %v1184_v7 = vadd.f32 %v1183_v62, %v1182_v52  ;;  %v1674_v23 = vunpack.c.l.b16 %v1354_v12  ;;  %v731_v27 = vld [vmem:[%s10017_s1 + $0xe0] sm:$0xff] }
  0x6b   :  { %v914_v42 = vld [vmem:[%s10017_s1 + $0x698] sm:$0xff]  ;;  %v1282_v54 = vadd.f32 %v1281_v46, %v894_v36  ;;  %v1134_v16 = vadd.f32 %v1133_v6, %v1132_v61  ;;  %v723_v36 = vld [vmem:[%s10017_s1 + $0xa0] sm:$0xff] }
  0x6c   :  { %v918_v50 = vld [vmem:[%s10017_s1 + $0x6b8] sm:$0xff]  ;;  %v1332_v58 = vadd.f32 %v1331_v48, %v914_v42  ;;  %v1235_v8 = vrot.slane %v1234_v63, 2  ;;  %v1185_v17 = vrot.slane %v1184_v7, 1  ;;  %v1724_v35 = vsel %vm1697_vm2, %v1674_v23, %v1723_v24  ;;  %v759_v45 = vld [vmem:[%s10017_s1 + $0x1c0] sm:$0xff] }
  0x6d   :  { %v922_v60 = vld [vmem:[%s10017_s1 + $0x6d8] sm:$0xff]  ;;  %v1284_v0 = vadd.f32 %v1283_v30, %v1282_v54  ;;  %v1358_v31 = vpack.c.bf16 %v1134_v16, %v1134_v16  ;;  %v763_v46 = vld [vmem:[%s10017_s1 + $0x1e0] sm:$0xff]  ;;  %v930_v48 = vadd.f32 %v929_v37, %v719_v25 }
  0x6e   :  { %v1333_v4 = vadd.f32 %v1332_v58, %v918_v50  ;;  %v1236_v18 = vadd.f32 %v1235_v8, %v1234_v63  ;;  %v1186_v28 = vadd.f32 %v1185_v17, %v1184_v7  ;;  %v783_v40 = vld [vmem:[%s10017_s1 + $0x280] sm:$0x1]  ;;  %v7436_v50 = vsel %vm259_vm0, %v755_v33, 0.0 }
  0x6f   :  { %v1285_v9 = vrot.slane %v1284_v0, 4  ;;  %v1678_v43 = vunpack.c.l.b16 %v1358_v31  ;;  %v747_v57 = vld [vmem:[%s10017_s1 + $0x160] sm:$0xff]  ;;  %v931_v63 = vadd.f32 %v930_v48, %v723_v36  ;;  %v1031_v1 = vadd.f32 %v763_v46, %v759_v45 }
  0x70   :  { %v1334_v11 = vadd.f32 %v1333_v4, %v922_v60  ;;  %v1237_v29 = vrot.slane %v1236_v18, 1  ;;  %v1362_v42 = vpack.c.bf16 %v1186_v28, %v1186_v28  ;;  %v767_v58 = vld [vmem:[%s10017_s1 + $0x200] sm:$0xff]  ;;  %v1036_v8 = vsel %vm259_vm0, %v783_v40, 0.0 }
  0x71   :  { %v1286_v19 = vadd.f32 %v1285_v9, %v1284_v0  ;;  %v1725_v54 = vsel %vm1699_vm3, %v1678_v43, %v1724_v35  ;;  %v787_v60 = vld [vmem:[%s10017_s1 + $0x2a0] sm:$0xff]  ;;  %v933_v15 = vadd.f32 %v932_v38, %v931_v63  ;;  %v1032_v16 = vadd.f32 %v1031_v1, %v767_v58  ;;  %v6080_v58 = vld [vmem:[%s10018_s2 + $0x60c] ss:$16 sps:$4 sm:$0xff]  }
  0x72   :  { %v1336_v22 = vadd.f32 %v1335_v49, %v1334_v11  ;;  %v1238_v39 = vadd.f32 %v1237_v29, %v1236_v18  ;;  %v979_v49 = vadd.f32 %v735_v32, %v731_v27  ;;  %v1682_v53 = vunpack.c.l.b16 %v1362_v42  ;;  %v791_v61 = vld [vmem:[%s10017_s1 + $0x2c0] sm:$0xff]  ;;  %2501 = vmatprep.subr.bf16.mxu1 %v6080_v58  ;;  %v705_v58 = vld [vmem:[%s10017_s1 + $0x10] sm:$0xff] }
  0x73   :  { %v1287_v30 = vrot.slane %v1286_v19, 2  ;;  %v811_v62 = vld [vmem:[%s10017_s1 + $0x360] sm:$0x1] }
  0x74   :  { %v1337_v34 = vrot.slane %v1336_v22, 4  ;;  %v1366_v52 = vpack.c.bf16 %v1238_v39, %v1238_v39  ;;  %v980_v0 = vadd.f32 %v979_v49, %v739_v44  ;;  %v1726_v4 = vsel %vm1701_vm4, %v1682_v53, %v1725_v54  ;;  %v771_v5 = vld [vmem:[%s10017_s1 + $0x220] sm:$0xff] }
  0x75   :  { %v1288_v41 = vadd.f32 %v1287_v30, %v1286_v19  ;;  %v775_v6 = vld [vmem:[%s10017_s1 + $0x240] sm:$0xff]  ;;  %v1088_v23 = vsel %vm259_vm0, %v811_v62, 0.0  ;;  %v934_v30 = vrot.slane %v933_v15, 4  ;;  %v1033_v27 = vadd.f32 %v1032_v16, %v771_v5 }
  0x76   :  { %v1338_v47 = vadd.f32 %v1337_v34, %v1336_v22  ;;  %v1686_v3 = vunpack.c.l.b16 %v1366_v52  ;;  %v795_v7 = vld [vmem:[%s10017_s1 + $0x2e0] sm:$0xff]  ;;  %v981_v13 = vadd.f32 %v980_v0, %v743_v55  ;;  %v1083_v22 = vadd.f32 %v791_v61, %v787_v60 }
  0x77   :  { %v1289_v51 = vrot.slane %v1288_v41, 1  ;;  %v815_v10 = vld [vmem:[%s10017_s1 + $0x380] sm:$0xff]  ;;  %v935_v44 = vadd.f32 %v934_v30, %v933_v15  ;;  %v1034_v46 = vadd.f32 %v1033_v27, %v775_v6 }
  0x78   :  { %v1339_v59 = vrot.slane %v1338_v47, 2  ;;  %v819_v11 = vld [vmem:[%s10017_s1 + $0x3a0] sm:$0xff]  ;;  %v1727_v18 = vsel %vm1703_vm5, %v1686_v3, %v1726_v4  ;;  %v982_v31 = vadd.f32 %v981_v13, %v747_v57  ;;  %v1084_v35 = vadd.f32 %v1083_v22, %v795_v7 }
  0x79   :  { %v1290_v2 = vadd.f32 %v1289_v51, %v1288_v41  ;;  %v839_v12 = vld [vmem:[%s10017_s1 + $0x440] sm:$0x1]  ;;  %v1135_v36 = vadd.f32 %v819_v11, %v815_v10  ;;  %v936_v54 = vrot.slane %v935_v44, 2 }
  0x7a   :  { %v1340_v9 = vadd.f32 %v1339_v59, %v1338_v47  ;;  %v779_v19 = vld [vmem:[%s10017_s1 + $0x260] sm:$0xff]  ;;  %v1140_v37 = vsel %vm259_vm0, %v839_v12, 0.0  ;;  %v983_v45 = vadd.f32 %v982_v31, %v751_v56  ;;  %v6077_v47 = vld [vmem:[%s10018_s2 + $0x40c] ss:$16 sps:$4 sm:$0xff]  }
  0x7b   :  { %v1370_v17 = vpack.c.bf16 %v1290_v2, %v1290_v2  ;;  %v799_v20 = vld [vmem:[%s10017_s1 + $0x300] sm:$0xff]  ;;  %v1035_v57 = vadd.f32 %v1034_v46, %v779_v19  ;;  %2460 = vmatprep.subr.bf16.mxu0 %v6077_v47  ;;  %v937_v3 = vadd.f32 %v936_v54, %v935_v44 }
  0x7c   :  { %v823_v21 = vld [vmem:[%s10017_s1 + $0x3c0] sm:$0xff]  ;;  %v1341_v24 = vrot.slane %v1340_v9, 1  ;;  %v1085_v49 = vadd.f32 %v1084_v35, %v799_v20  ;;  %v985_v55 = vadd.f32 %v7436_v50, %v983_v45 }
  0x7d   :  { %v803_v25 = vld [vmem:[%s10017_s1 + $0x320] sm:$0xff]  ;;  %v1690_v32 = vunpack.c.l.b16 %v1370_v17  ;;  %v1136_v51 = vadd.f32 %v1135_v36, %v823_v21  ;;  %v1037_v56 = vadd.f32 %v1036_v8, %v1035_v57  ;;  %v938_v15 = vrot.slane %v937_v3, 1 }
  0x7e   :  { %v827_v26 = vld [vmem:[%s10017_s1 + $0x3e0] sm:$0xff]  ;;  %v1342_v38 = vadd.f32 %v1341_v24, %v1340_v9  ;;  %v1086_v61 = vadd.f32 %v1085_v49, %v803_v25  ;;  %v986_v4 = vrot.slane %v985_v55, 4 }
  0x7f   :  { %v843_v28 = vld [vmem:[%s10017_s1 + $0x460] sm:$0xff]  ;;  %v1728_v40 = vsel %vm1705_vm6, %v1690_v32, %v1727_v18  ;;  %v1137_v62 = vadd.f32 %v1136_v51, %v827_v26  ;;  %v1038_v16 = vrot.slane %v1037_v56, 4  ;;  %v939_v25 = vadd.f32 %v938_v15, %v937_v3  ;;  %v717_v15 = vld [vmem:[%s10017_s1 + $0x70] sm:$0xff] }
  0x80   :  { %v847_v29 = vld [vmem:[%s10017_s1 + $0x480] sm:$0xff]  ;;  %v1374_v53 = vpack.c.bf16 %v1342_v38, %v1342_v38  ;;  %v987_v13 = vadd.f32 %v986_v4, %v985_v55  ;;  %v713_v4 = vld [vmem:[%s10017_s1 + $0x50] sm:$0xff] }
  0x81   :  { %v851_v33 = vld [vmem:[%s10017_s1 + $0x4a0] sm:$0xff]  ;;  %v1187_v52 = vadd.f32 %v847_v29, %v843_v28  ;;  %v1039_v28 = vadd.f32 %v1038_v16, %v1037_v56 }
  0x82   :  { %v867_v34 = vld [vmem:[%s10017_s1 + $0x520] sm:$0x1]  ;;  %v1694_v50 = vunpack.c.l.b16 %v1374_v53  ;;  %v988_v26 = vrot.slane %v987_v13, 2 }
  0x83   :  { %v807_v39 = vld [vmem:[%s10017_s1 + $0x340] sm:$0xff]  ;;  %v1188_v63 = vadd.f32 %v1187_v52, %v851_v33  ;;  %v1192_v0 = vsel %vm259_vm0, %v867_v34, 0.0  ;;  %v1040_v34 = vrot.slane %v1039_v28, 2  ;;  %v1343_v52 = vpack.c.bf16 %v939_v25, %v939_v25 }
  0x84   :  { %v831_v41 = vld [vmem:[%s10017_s1 + $0x400] sm:$0xff]  ;;  %v1087_v6 = vadd.f32 %v1086_v61, %v807_v39  ;;  %v1729_v11 = vsel %vm1707_vm7, %v1694_v50, %v1728_v40  ;;  %v989_v33 = vadd.f32 %v988_v26, %v987_v13  ;;  %v721_v13 = vld [vmem:[%s10017_s1 + $0x90] sm:$0xff] }
  0x85   :  { %v855_v42 = vld [vmem:[%s10017_s1 + $0x4c0] sm:$0xff]  ;;  %v1138_v7 = vadd.f32 %v1137_v62, %v831_v41  ;;  %v7553_v17 = vpack.c.b16 %v1729_v11, %v1729_v11  ;;  %v1041_v45 = vadd.f32 %v1040_v34, %v1039_v28  ;;  %v725_v28 = vld [vmem:[%s10017_s1 + $0xb0] sm:$0xff] }
  0x86   :  { %v871_v43 = vld [vmem:[%s10017_s1 + $0x540] sm:$0xff]  ;;  %v1189_v9 = vadd.f32 %v1188_v63, %v855_v42  ;;  %v1089_v19 = vadd.f32 %v1088_v23, %v1087_v6  ;;  %v990_v44 = vrot.slane %v989_v33, 1 }
  0x87   :  { %v875_v48 = vld [vmem:[%s10017_s1 + $0x560] sm:$0xff]  ;;  %2451 = vmatprep.mubr.bf16.mxu1 %v7553_v17  ;;  %v1042_v54 = vrot.slane %v1041_v45, 1 }
  0x88   :  { %v835_v59 = vld [vmem:[%s10017_s1 + $0x420] sm:$0xff]  ;;  %v1239_v10 = vadd.f32 %v875_v48, %v871_v43  ;;  %v1090_v30 = vrot.slane %v1089_v19, 4  ;;  %v991_v53 = vadd.f32 %v990_v44, %v989_v33  ;;  %v765_v44 = vld [vmem:[%s10017_s1 + $0x1f0] sm:$0xff] }
  0x89   :  { %v859_v60 = vld [vmem:[%s10017_s1 + $0x4e0] sm:$0xff]  ;;  %v1139_v20 = vadd.f32 %v1138_v7, %v835_v59  ;;  %v709_v59 = vld [vmem:[%s10017_s1 + $0x30] sm:$0xff]  ;;  %v1043_v50 = vadd.f32 %v1042_v54, %v1041_v45 }
  0x8a   :  { %v863_v1 = vld [vmem:[%s10017_s1 + $0x500] sm:$0xff]  ;;  %v1190_v21 = vadd.f32 %v1189_v9, %v859_v60  ;;  %v1091_v41 = vadd.f32 %v1090_v30, %v1089_v19  ;;  %v1347_v3 = vpack.c.bf16 %v991_v53, %v991_v53  ;;  %v953_v7 = vadd.f32 %v709_v59, %v705_v58  ;;  %v729_v19 = vld [vmem:[%s10017_s1 + $0xd0] sm:$0x1] }
  0x8b   :  { %v879_v2 = vld [vmem:[%s10017_s1 + $0x580] sm:$0xff]  ;;  %v1141_v31 = vadd.f32 %v1140_v37, %v1139_v20  ;;  %v1351_v11 = vpack.c.bf16 %v1043_v50, %v1043_v50  ;;  %v733_v20 = vld [vmem:[%s10017_s1 + $0xf0] sm:$0xff] }
  0x8c   :  { %v883_v5 = vld [vmem:[%s10017_s1 + $0x5a0] sm:$0xff]  ;;  %v1240_v29 = vadd.f32 %v1239_v10, %v879_v2  ;;  %v1191_v27 = vadd.f32 %v1190_v21, %v863_v1  ;;  %v1092_v48 = vrot.slane %v1091_v41, 2  ;;  %v954_v21 = vadd.f32 %v953_v7, %v713_v4  ;;  %v769_v45 = vld [vmem:[%s10017_s1 + $0x210] sm:$0xff] }
  0x8d   :  { %v895_v12 = vld [vmem:[%s10017_s1 + $0x600] sm:$0x1]  ;;  %v1142_v42 = vrot.slane %v1141_v31, 4  ;;  %v1671_v25 = vunpack.c.l.b16 %v1351_v11  ;;  %v789_v58 = vld [vmem:[%s10017_s1 + $0x2b0] sm:$0xff] }
  0x8e   :  { %v899_v8 = vld [vmem:[%s10017_s1 + $0x620] sm:$0xff]  ;;  %v1244_v32 = vsel %vm259_vm0, %v895_v12, 0.0  ;;  %v1241_v35 = vadd.f32 %v1240_v29, %v883_v5  ;;  %v1193_v43 = vadd.f32 %v1192_v0, %v1191_v27  ;;  %v1093_v61 = vadd.f32 %v1092_v48, %v1091_v41  ;;  %v737_v29 = vld [vmem:[%s10017_s1 + $0x110] sm:$0xff] }
  0x8f   :  { %v903_v18 = vld [vmem:[%s10017_s1 + $0x640] sm:$0xff]  ;;  %v1143_v49 = vadd.f32 %v1142_v42, %v1141_v31  ;;  %v1663_v0 = vunpack.c.l.b16 %v1343_v52  ;;  %v1667_v12 = vunpack.c.l.b16 %v1347_v3  ;;  %v757_v27 = vld [vmem:[%s10017_s1 + $0x1b0] sm:$0x1] }
  0x90   :  { %v887_v22 = vld [vmem:[%s10017_s1 + $0x5c0] sm:$0xff]  ;;  %v1291_v36 = vadd.f32 %v903_v18, %v899_v8  ;;  %v1194_v51 = vrot.slane %v1193_v43, 4  ;;  %v1094_v56 = vrot.slane %v1093_v61, 1  ;;  %v785_v48 = vld [vmem:[%s10017_s1 + $0x290] sm:$0x1] }
  0x91   :  { %v923_v24 = vld [vmem:[%s10017_s1 + $0x6e0] sm:$0x1]  ;;  %v1242_v46 = vadd.f32 %v1241_v35, %v887_v22  ;;  %v1144_v62 = vrot.slane %v1143_v49, 2  ;;  %v1696_v26 = vsel %vm1695_vm1, %v1667_v12, %v1663_v0  ;;  %v793_v59 = vld [vmem:[%s10017_s1 + $0x2d0] sm:$0xff] }
  0x92   :  { %v907_v23 = vld [vmem:[%s10017_s1 + $0x660] sm:$0xff]  ;;  %v1296_v37 = vsel %vm259_vm0, %v923_v24, 0.0  ;;  %v1195_v63 = vadd.f32 %v1194_v51, %v1193_v43  ;;  %v1095_v16 = vadd.f32 %v1094_v56, %v1093_v61  ;;  %v1698_v35 = vsel %vm1697_vm2, %v1671_v25, %v1696_v26  ;;  %v813_v0 = vld [vmem:[%s10017_s1 + $0x370] sm:$0x1] }
  0x93   :  { %v891_v38 = vld [vmem:[%s10017_s1 + $0x5e0] sm:$0xff]  ;;  %v1292_v47 = vadd.f32 %v1291_v36, %v907_v23  ;;  %v1145_v5 = vadd.f32 %v1144_v62, %v1143_v49  ;;  %v741_v36 = vld [vmem:[%s10017_s1 + $0x130] sm:$0xff]  ;;  %v1005_v49 = vadd.f32 %v737_v29, %v733_v20  ;;  %v7637_v51 = vsel %vm259_vm0, %v757_v27, 0.0 }
  0x94   :  { %v911_v39 = vld [vmem:[%s10017_s1 + $0x680] sm:$0xff]  ;;  %v1243_v55 = vadd.f32 %v1242_v46, %v891_v38  ;;  %v1196_v6 = vrot.slane %v1195_v63, 2  ;;  %v1355_v31 = vpack.c.bf16 %v1095_v16, %v1095_v16  ;;  %v761_v38 = vld [vmem:[%s10017_s1 + $0x1d0] sm:$0xff] }
  0x95   :  { %v915_v40 = vld [vmem:[%s10017_s1 + $0x6a0] sm:$0xff]  ;;  %v1293_v57 = vadd.f32 %v1292_v47, %v911_v39  ;;  %v1146_v8 = vrot.slane %v1145_v5, 1  ;;  %v958_v39 = vsel %vm259_vm0, %v729_v19, 0.0  ;;  %v1006_v50 = vadd.f32 %v1005_v49, %v741_v36  ;;  %v753_v4 = vld [vmem:[%s10017_s1 + $0x190] sm:$0xff] }
  0x96   :  { %v919_v60 = vld [vmem:[%s10017_s1 + $0x6c0] sm:$0xff]  ;;  %v1245_v1 = vadd.f32 %v1244_v32, %v1243_v55  ;;  %v1197_v18 = vadd.f32 %v1196_v6, %v1195_v63  ;;  %v955_v32 = vadd.f32 %v954_v21, %v717_v15  ;;  %v1675_v43 = vunpack.c.l.b16 %v1355_v31  ;;  %v749_v55 = vld [vmem:[%s10017_s1 + $0x170] sm:$0xff] }
  0x97   :  { %v1294_v2 = vadd.f32 %v1293_v57, %v915_v40  ;;  %v1147_v23 = vadd.f32 %v1146_v8, %v1145_v5  ;;  %v773_v57 = vld [vmem:[%s10017_s1 + $0x230] sm:$0xff] }
  0x98   :  { %v1246_v9 = vrot.slane %v1245_v1, 4  ;;  %v1198_v30 = vrot.slane %v1197_v18, 1  ;;  %v956_v46 = vadd.f32 %v955_v32, %v721_v13  ;;  %v1700_v54 = vsel %vm1699_vm3, %v1675_v43, %v1698_v35  ;;  %v797_v63 = vld [vmem:[%s10017_s1 + $0x2f0] sm:$0xff] }
  0x99   :  { %v1295_v10 = vadd.f32 %v1294_v2, %v919_v60  ;;  %v1359_v42 = vpack.c.bf16 %v1147_v23, %v1147_v23  ;;  %v777_v56 = vld [vmem:[%s10017_s1 + $0x250] sm:$0xff] }
  0x9a   :  { %v1247_v22 = vadd.f32 %v1246_v9, %v1245_v1  ;;  %v1199_v41 = vadd.f32 %v1198_v30, %v1197_v18  ;;  %v957_v60 = vadd.f32 %v956_v46, %v725_v28  ;;  %v1057_v1 = vadd.f32 %v765_v44, %v761_v38  ;;  %v817_v5 = vld [vmem:[%s10017_s1 + $0x390] sm:$0xff] }
  0x9b   :  { %v1297_v24 = vadd.f32 %v1296_v37, %v1295_v10  ;;  %v745_v37 = vld [vmem:[%s10017_s1 + $0x150] sm:$0xff]  ;;  %v1679_v53 = vunpack.c.l.b16 %v1359_v42  ;;  %v1062_v9 = vsel %vm259_vm0, %v785_v48, 0.0 }
  0x9c   :  { %v1248_v33 = vrot.slane %v1247_v22, 2  ;;  %v1363_v52 = vpack.c.bf16 %v1199_v41, %v1199_v41  ;;  %v821_v6 = vld [vmem:[%s10017_s1 + $0x3b0] sm:$0xff]  ;;  %v959_v7 = vadd.f32 %v958_v39, %v957_v60  ;;  %v1007_v15 = vadd.f32 %v1006_v50, %v745_v37 }
  0x9d   :  { %v1298_v34 = vrot.slane %v1297_v24, 4  ;;  %v1702_v3 = vsel %vm1701_vm4, %v1679_v53, %v1700_v54  ;;  %v841_v12 = vld [vmem:[%s10017_s1 + $0x450] sm:$0x1]  ;;  %v1058_v13 = vadd.f32 %v1057_v1, %v769_v45 }
  0x9e   :  { %v1249_v47 = vadd.f32 %v1248_v33, %v1247_v22  ;;  %v1683_v2 = vunpack.c.l.b16 %v1363_v52  ;;  %v781_v8 = vld [vmem:[%s10017_s1 + $0x270] sm:$0xff]  ;;  %v960_v21 = vrot.slane %v959_v7, 4  ;;  %v1109_v22 = vadd.f32 %v793_v59, %v789_v58 }
  0x9f   :  { %v1299_v40 = vadd.f32 %v1298_v34, %v1297_v24  ;;  %v801_v18 = vld [vmem:[%s10017_s1 + $0x310] sm:$0xff]  ;;  %v1114_v24 = vsel %vm259_vm0, %v813_v0, 0.0  ;;  %v1008_v23 = vadd.f32 %v1007_v15, %v749_v55  ;;  %v1059_v30 = vadd.f32 %v1058_v13, %v773_v57 }
  0xa0   :  { %v1250_v61 = vrot.slane %v1249_v47, 1  ;;  %v1704_v16 = vsel %vm1703_vm5, %v1683_v2, %v1702_v3  ;;  %v825_v19 = vld [vmem:[%s10017_s1 + $0x3d0] sm:$0xff]  ;;  %v961_v27 = vadd.f32 %v960_v21, %v959_v7  ;;  %v1110_v32 = vadd.f32 %v1109_v22, %v797_v63  ;;  %v6083_v22 = vld [vmem:[%s10018_s2 + $0x42c] ss:$16 sps:$4 sm:$0xff]  }
  0xa1   :  { %v1300_v62 = vrot.slane %v1299_v40, 2  ;;  %v845_v20 = vld [vmem:[%s10017_s1 + $0x470] sm:$0xff]  ;;  %v1161_v33 = vadd.f32 %v821_v6, %v817_v5  ;;  %v1166_v34 = vsel %vm259_vm0, %v841_v12, 0.0  ;;  %v1009_v42 = vadd.f32 %v1008_v23, %v753_v4 }
  0xa2   :  { %v1251_v10 = vadd.f32 %v1250_v61, %v1249_v47  ;;  %v805_v28 = vld [vmem:[%s10017_s1 + $0x330] sm:$0xff]  ;;  %v1060_v43 = vadd.f32 %v1059_v30, %v777_v56  ;;  %v962_v45 = vrot.slane %v961_v27, 2  ;;  %v1111_v46 = vadd.f32 %v1110_v32, %v801_v18 }
  0xa3   :  { %v1301_v11 = vadd.f32 %v1300_v62, %v1299_v40  ;;  %v849_v29 = vld [vmem:[%s10017_s1 + $0x490] sm:$0xff]  ;;  %v1162_v47 = vadd.f32 %v1161_v33, %v825_v19  ;;  %v1011_v54 = vadd.f32 %v7637_v51, %v1009_v42 }
  0xa4   :  { %v1367_v26 = vpack.c.bf16 %v1251_v10, %v1251_v10  ;;  %v829_v31 = vld [vmem:[%s10017_s1 + $0x3f0] sm:$0xff]  ;;  %v1213_v40 = vadd.f32 %v849_v29, %v845_v20  ;;  %v1061_v55 = vadd.f32 %v1060_v43, %v781_v8  ;;  %v963_v59 = vadd.f32 %v962_v45, %v961_v27  ;;  %v6089_v45 = vld [vmem:[%s10018_s2 + $0x44c] ss:$16 sps:$4 sm:$0xff]  }
  0xa5   :  { %v1302_v25 = vrot.slane %v1301_v11, 1  ;;  %v809_v38 = vld [vmem:[%s10017_s1 + $0x350] sm:$0xff]  ;;  %v1112_v60 = vadd.f32 %v1111_v46, %v805_v28  ;;  %v1163_v61 = vadd.f32 %v1162_v47, %v829_v31  ;;  %v1012_v1 = vrot.slane %v1011_v54, 4 }
  0xa6   :  { %v1687_v36 = vunpack.c.l.b16 %v1367_v26  ;;  %v833_v39 = vld [vmem:[%s10017_s1 + $0x410] sm:$0xff]  ;;  %v1063_v2 = vadd.f32 %v1062_v9, %v1061_v55  ;;  %v964_v6 = vrot.slane %v963_v59, 1 }
  0xa7   :  { %v1303_v35 = vadd.f32 %v1302_v25, %v1301_v11  ;;  %v853_v41 = vld [vmem:[%s10017_s1 + $0x4b0] sm:$0xff]  ;;  %v1113_v7 = vadd.f32 %v1112_v60, %v809_v38  ;;  %v1164_v10 = vadd.f32 %v1163_v61, %v833_v39  ;;  %v1013_v12 = vadd.f32 %v1012_v1, %v1011_v54  ;;  %v6087_v61 = vld [vmem:[%s10018_s2 + $0x448] ss:$16 sps:$4 sm:$0xff]  }
  0xa8   :  { %v857_v37 = vld [vmem:[%s10017_s1 + $0x4d0] sm:$0xff]  ;;  %v1706_v49 = vsel %vm1705_vm6, %v1687_v36, %v1704_v16  ;;  %v1214_v62 = vadd.f32 %v1213_v40, %v853_v41  ;;  %v1064_v15 = vrot.slane %v1063_v2, 4  ;;  %v6075_v16 = vld [vmem:[%s10018_s2 + $0x408] ss:$16 sps:$4 sm:$0xff]   ;;  %v965_v19 = vadd.f32 %v964_v6, %v963_v59 }
  0xa9   :  { %v869_v44 = vld [vmem:[%s10017_s1 + $0x530] sm:$0x1]  ;;  %v1371_v48 = vpack.c.bf16 %v1303_v35, %v1303_v35  ;;  %v1115_v20 = vadd.f32 %v1114_v24, %v1113_v7  ;;  %v1014_v28 = vrot.slane %v1013_v12, 2  ;;  %v6081_v41 = vld [vmem:[%s10018_s2 + $0x428] ss:$16 sps:$4 sm:$0xff]  }
  0xaa   :  { %v837_v52 = vld [vmem:[%s10017_s1 + $0x430] sm:$0xff]  ;;  %v1218_v3 = vsel %vm259_vm0, %v869_v44, 0.0  ;;  %v1215_v11 = vadd.f32 %v1214_v62, %v857_v37  ;;  %v1065_v29 = vadd.f32 %v1064_v15, %v1063_v2  ;;  %v1345_v54 = vpack.c.bf16 %v965_v19, %v965_v19 }
  0xab   :  { %v873_v53 = vld [vmem:[%s10017_s1 + $0x550] sm:$0xff]  ;;  %v1691_v63 = vunpack.c.l.b16 %v1371_v48  ;;  %v1165_v21 = vadd.f32 %v1164_v10, %v837_v52  ;;  %v1116_v31 = vrot.slane %v1115_v20, 4  ;;  %v1015_v35 = vadd.f32 %v1014_v28, %v1013_v12  ;;  %v6093_v12 = vld [vmem:[%s10018_s2 + $0x468] ss:$16 sps:$4 sm:$0xff]  }
  0xac   :  { %v861_v57 = vld [vmem:[%s10017_s1 + $0x4f0] sm:$0xff]  ;;  %v1066_v36 = vrot.slane %v1065_v29, 2 }
  0xad   :  { %v877_v58 = vld [vmem:[%s10017_s1 + $0x570] sm:$0xff]  ;;  %v1708_v9 = vsel %vm1707_vm7, %v1691_v63, %v1706_v49  ;;  %v1216_v23 = vadd.f32 %v1215_v11, %v861_v57  ;;  %v1167_v27 = vadd.f32 %v1166_v34, %v1165_v21  ;;  %v1117_v43 = vadd.f32 %v1116_v31, %v1115_v20 }
  0xae   :  { %v881_v0 = vld [vmem:[%s10017_s1 + $0x590] sm:$0xff]  ;;  %v1265_v13 = vadd.f32 %v877_v58, %v873_v53  ;;  %v7751_v8 = vpack.c.b16 %v1708_v9, %v1708_v9  ;;  %v1016_v47 = vrot.slane %v1015_v35, 1 }
  0xaf   :  { %v897_v51 = vld [vmem:[%s10017_s1 + $0x610] sm:$0x1]  ;;  %v1168_v34 = vrot.slane %v1167_v27, 4  ;;  %v1118_v49 = vrot.slane %v1117_v43, 2 }
  0xb0   :  { %v901_v50 = vld [vmem:[%s10017_s1 + $0x630] sm:$0xff]  ;;  %v1266_v30 = vadd.f32 %v1265_v13, %v881_v0  ;;  %2411 = vmatmul.mubr.bf16.vlgmr.msra.gmra.mrb[0].mxu0 %v7751_v8  ;;  %v1270_v32 = vsel %vm259_vm0, %v897_v51, 0.0  ;;  %v1017_v57 = vadd.f32 %v1016_v47, %v1015_v35  ;;  %v1665_v51 = vunpack.c.l.b16 %v1345_v54 }
  0xb1   :  { %v865_v4 = vld [vmem:[%s10017_s1 + $0x510] sm:$0xff]  ;;  %2461 = vmatpush1.bf16.msra.mxu0 %v6075_v16  ;;  %2492 = vmatprep.mubr.bf16.mxu0 %v7352_v14  ;;  %v1067_v14 = vadd.f32 %v1066_v36, %v1065_v29  ;;  %v1169_v52 = vadd.f32 %v1168_v34, %v1167_v27  ;;  %v1119_v62 = vadd.f32 %v1118_v49, %v1117_v43  ;;  %v6105_v34 = vld [vmem:[%s10018_s2 + $0x4a8] ss:$16 sps:$4 sm:$0xff]  }
  0xb2   :  { %v885_v56 = vld [vmem:[%s10017_s1 + $0x5b0] sm:$0xff]  ;;  %v1217_v38 = vadd.f32 %v1216_v23, %v865_v4  ;;  %2462 = vmatprep.subr.bf16.mxu0 %v6083_v22  ;;  %v1349_v4 = vpack.c.bf16 %v1017_v57, %v1017_v57 }
  0xb3   :  { %v905_v5 = vld [vmem:[%s10017_s1 + $0x650] sm:$0xff]  ;;  %v1267_v39 = vadd.f32 %v1266_v30, %v885_v56  ;;  %v1068_v58 = vrot.slane %v1067_v14, 1  ;;  %v1170_v63 = vrot.slane %v1169_v52, 2  ;;  %v1120_v56 = vrot.slane %v1119_v62, 1 }
  0xb4   :  { %v889_v18 = vld [vmem:[%s10017_s1 + $0x5d0] sm:$0xff]  ;;  %v1317_v33 = vadd.f32 %v905_v5, %v901_v50  ;;  %v1219_v40 = vadd.f32 %v1218_v3, %v1217_v38  ;;  %v6095_v50 = vld [vmem:[%s10018_s2 + $0x46c] ss:$16 sps:$4 sm:$0xff]   ;;  %v1669_v9 = vunpack.c.l.b16 %v1349_v4 }
  0xb5   :  { %v909_v25 = vld [vmem:[%s10017_s1 + $0x670] sm:$0xff]  ;;  %v1268_v48 = vadd.f32 %v1267_v39, %v889_v18  ;;  %2463 = vmatpush1.bf16.msra.mxu0 %v6081_v41  ;;  %v1069_v1 = vadd.f32 %v1068_v58, %v1067_v14  ;;  %v1171_v5 = vadd.f32 %v1170_v63, %v1169_v52  ;;  %v1121_v15 = vadd.f32 %v1120_v56, %v1119_v62  ;;  %v6101_v18 = vld [vmem:[%s10018_s2 + $0x48c] ss:$16 sps:$4 sm:$0xff]   ;;  %v6117_v58 = vld [vmem:[%s10018_s2 + $0x4e8] ss:$16 sps:$4 sm:$0xff]  }
  0xb6   :  { %v925_v26 = vld [vmem:[%s10017_s1 + $0x6f0] sm:$0x1]  ;;  %v1318_v37 = vadd.f32 %v1317_v33, %v909_v25  ;;  %v1220_v59 = vrot.slane %v1219_v40, 4  ;;  %2464 = vmatprep.subr.bf16.mxu0 %v6089_v45  ;;  %v1716_v22 = vsel %vm1695_vm1, %v1669_v9, %v1665_v51  ;;  %v6107_v33 = vld [vmem:[%s10018_s2 + $0x4ac] ss:$16 sps:$4 sm:$0xff]  }
  0xb7   :  { %v913_v24 = vld [vmem:[%s10017_s1 + $0x690] sm:$0xff]  ;;  %v1322_v44 = vsel %vm259_vm0, %v925_v26, 0.0  ;;  %v1353_v11 = vpack.c.bf16 %v1069_v1, %v1069_v1  ;;  %v1172_v13 = vrot.slane %v1171_v5, 1  ;;  %v1357_v28 = vpack.c.bf16 %v1121_v15, %v1121_v15  ;;  %v6078_v62 = vld [vmem:[%s10018_s2 + $0x608] ss:$16 sps:$4 sm:$0xff]  }
  0xb8   :  { %v893_v42 = vld [vmem:[%s10017_s1 + $0x5f0] sm:$0xff]  ;;  %v1319_v53 = vadd.f32 %v1318_v37, %v913_v24  ;;  %v1221_v2 = vadd.f32 %v1220_v59, %v1219_v40  ;;  %v6099_v24 = vld [vmem:[%s10018_s2 + $0x488] ss:$16 sps:$4 sm:$0xff]   ;;  %v6137_v4 = vld [vmem:[%s10018_s2 + $0x54c] ss:$16 sps:$4 sm:$0xff]  }
  0xb9   :  { %v917_v46 = vld [vmem:[%s10017_s1 + $0x6b0] sm:$0xff]  ;;  %v1269_v60 = vadd.f32 %v1268_v48, %v893_v42  ;;  %2465 = vmatpush1.bf16.msra.mxu0 %v6087_v61  ;;  %v1673_v21 = vunpack.c.l.b16 %v1353_v11  ;;  %v1173_v25 = vadd.f32 %v1172_v13, %v1171_v5  ;;  %v6111_v48 = vld [vmem:[%s10018_s2 + $0x4c8] ss:$16 sps:$4 sm:$0xff]   ;;  %v6098_v56 = vld [vmem:[%s10018_s2 + $0x66c] ss:$16 sps:$4 sm:$0xff]  }
  0xba   :  { %v921_v55 = vld [vmem:[%s10017_s1 + $0x6d0] sm:$0xff]  ;;  %v1320_v0 = vadd.f32 %v1319_v53, %v917_v46  ;;  %v1222_v7 = vrot.slane %v1221_v2, 2  ;;  %2466 = vmatprep.subr.bf16.mxu0 %v6095_v50  ;;  %v6119_v53 = vld [vmem:[%s10018_s2 + $0x4ec] ss:$16 sps:$4 sm:$0xff]   ;;  %v6123_v51 = vld [vmem:[%s10018_s2 + $0x508] ss:$16 sps:$4 sm:$0xff]  }
  0xbb   :  { %v1271_v3 = vadd.f32 %v1270_v32, %v1269_v60  ;;  %v1717_v30 = vsel %vm1697_vm2, %v1673_v21, %v1716_v22  ;;  %v1361_v27 = vpack.c.bf16 %v1173_v25, %v1173_v25  ;;  %v1677_v32 = vunpack.c.l.b16 %v1357_v28  ;;  %v6125_v60 = vld [vmem:[%s10018_s2 + $0x50c] ss:$16 sps:$4 sm:$0xff]   ;;  %v6084_v1 = vld [vmem:[%s10018_s2 + $0x628] ss:$16 sps:$4 sm:$0xff]  }
  0xbc   :  { %v1321_v6 = vadd.f32 %v1320_v0, %v921_v55  ;;  %v1223_v19 = vadd.f32 %v1222_v7, %v1221_v2  ;;  %v6086_v0 = vld [vmem:[%s10018_s2 + $0x62c] ss:$16 sps:$4 sm:$0xff]   ;;  %v6135_v5 = vld [vmem:[%s10018_s2 + $0x548] ss:$16 sps:$4 sm:$0xff]  }
  0xbd   :  { %v1272_v10 = vrot.slane %v1271_v3, 4  ;;  %2467 = vmatpush1.bf16.msra.mxu0 %v6093_v12  ;;  %v1681_v39 = vunpack.c.l.b16 %v1361_v27  ;;  %v1718_v41 = vsel %vm1699_vm3, %v1677_v32, %v1717_v30  ;;  %v6131_v50 = vld [vmem:[%s10018_s2 + $0x52c] ss:$16 sps:$4 sm:$0xff]   ;;  %v6096_v7 = vld [vmem:[%s10018_s2 + $0x668] ss:$16 sps:$4 sm:$0xff]  }
  0xbe   :  { %v1323_v16 = vadd.f32 %v1322_v44, %v1321_v6  ;;  %v1224_v29 = vrot.slane %v1223_v19, 1  ;;  %2468 = vmatprep.subr.bf16.mxu0 %v6101_v18  ;;  %v6113_v44 = vld [vmem:[%s10018_s2 + $0x4cc] ss:$16 sps:$4 sm:$0xff]   ;;  %v6141_v11 = vld [vmem:[%s10018_s2 + $0x568] ss:$16 sps:$4 sm:$0xff]  }
  0xbf   :  { %v1273_v20 = vadd.f32 %v1272_v10, %v1271_v3  ;;  %v1719_v47 = vsel %vm1701_vm4, %v1681_v39, %v1718_v41  ;;  %v6092_v2 = vld [vmem:[%s10018_s2 + $0x64c] ss:$16 sps:$4 sm:$0xff]   ;;  %v6129_v3 = vld [vmem:[%s10018_s2 + $0x528] ss:$16 sps:$4 sm:$0xff]  }
  0xc0   :  { %v1324_v26 = vrot.slane %v1323_v16, 4  ;;  %v1225_v35 = vadd.f32 %v1224_v29, %v1223_v19  ;;  %v6143_v6 = vld [vmem:[%s10018_s2 + $0x56c] ss:$16 sps:$4 sm:$0xff]   ;;  %v6102_v12 = vld [vmem:[%s10018_s2 + $0x688] ss:$16 sps:$4 sm:$0xff]  }
  0xc1   :  { %v1274_v23 = vrot.slane %v1273_v20, 2  ;;  %2469 = vmatpush1.bf16.msra.mxu0 %v6099_v24  ;;  %v6104_v10 = vld [vmem:[%s10018_s2 + $0x68c] ss:$16 sps:$4 sm:$0xff]   ;;  %v6147_v13 = vld [vmem:[%s10018_s2 + $0x588] ss:$16 sps:$4 sm:$0xff]  }
  0xc2   :  { %v1325_v31 = vadd.f32 %v1324_v26, %v1323_v16  ;;  %v1365_v43 = vpack.c.bf16 %v1225_v35, %v1225_v35  ;;  %2470 = vmatprep.subr.bf16.mxu0 %v6107_v33  ;;  %v6149_v9 = vld [vmem:[%s10018_s2 + $0x58c] ss:$16 sps:$4 sm:$0xff]   ;;  %v6108_v21 = vld [vmem:[%s10018_s2 + $0x6a8] ss:$16 sps:$4 sm:$0xff]  }
  0xc3   :  { %v1275_v36 = vadd.f32 %v1274_v23, %v1273_v20  ;;  %v6110_v15 = vld [vmem:[%s10018_s2 + $0x6ac] ss:$16 sps:$4 sm:$0xff]   ;;  %v6153_v25 = vld [vmem:[%s10018_s2 + $0x5a8] ss:$16 sps:$4 sm:$0xff]  }
  0xc4   :  { %v1326_v38 = vrot.slane %v1325_v31, 2  ;;  %v1685_v46 = vunpack.c.l.b16 %v1365_v43  ;;  %v6155_v16 = vld [vmem:[%s10018_s2 + $0x5ac] ss:$16 sps:$4 sm:$0xff]   ;;  %v6114_v33 = vld [vmem:[%s10018_s2 + $0x6c8] ss:$16 sps:$4 sm:$0xff]  }
  0xc5   :  { %v1276_v42 = vrot.slane %v1275_v36, 1  ;;  %2471 = vmatpush1.bf16.msra.mxu0 %v6105_v34  ;;  %v31_v18 = vld [vmem:[%s10016_s0 + $0x8] sm:$0xff] }
  0xc6   :  { %v1327_v37 = vadd.f32 %v1326_v38, %v1325_v31  ;;  %v1720_v52 = vsel %vm1703_vm5, %v1685_v46, %v1719_v47  ;;  %2472 = vmatprep.subr.bf16.mxu0 %v6113_v44  ;;  %v35_v19 = vld [vmem:[%s10016_s0 + $0x28] sm:$0xff] }
  0xc7   :  { %v1277_v45 = vadd.f32 %v1276_v42, %v1275_v36  ;;  %v39_v20 = vld [vmem:[%s10016_s0 + $0x48] sm:$0xff]  ;;  %v268_v26 = vadd.f32 %v35_v19, %v31_v18 }
  0xc8   :  { %v1328_v14 = vrot.slane %v1327_v37, 1  ;;  %v6116_v22 = vld [vmem:[%s10018_s2 + $0x6cc] ss:$16 sps:$4 sm:$0xff]   ;;  %v6159_v41 = vld [vmem:[%s10018_s2 + $0x5c8] ss:$16 sps:$4 sm:$0xff]  }
  0xc9   :  { %v1369_v40 = vpack.c.bf16 %v1277_v45, %v1277_v45  ;;  %2473 = vmatpush1.bf16.msra.mxu0 %v6111_v48  ;;  %v43_v28 = vld [vmem:[%s10016_s0 + $0x68] sm:$0xff]  ;;  %v269_v27 = vadd.f32 %v268_v26, %v39_v20 }
  0xca   :  { %v1329_v49 = vadd.f32 %v1328_v14, %v1327_v37  ;;  %2474 = vmatprep.subr.bf16.mxu0 %v6119_v53  ;;  %v59_v29 = vld [vmem:[%s10016_s0 + $0xe8] sm:$0xff] }
  0xcb   :  { %v1689_v54 = vunpack.c.l.b16 %v1369_v40  ;;  %v63_v23 = vld [vmem:[%s10016_s0 + $0x108] sm:$0xff]  ;;  %v270_v37 = vadd.f32 %v269_v27, %v43_v28 }
  0xcc   :  { %v1373_v55 = vpack.c.bf16 %v1329_v49, %v1329_v49  ;;  %v6161_v30 = vld [vmem:[%s10018_s2 + $0x5cc] ss:$16 sps:$4 sm:$0xff]   ;;  %v320_v32 = vadd.f32 %v63_v23, %v59_v29  ;;  %v55_v42 = vld [vmem:[%s10016_s0 + $0xc8] sm:$0x1] }
  0xcd   :  { %v1721_v57 = vsel %vm1705_vm6, %v1689_v54, %v1720_v52  ;;  %2475 = vmatpush1.bf16.msra.mxu0 %v6117_v58  ;;  %v47_v24 = vld [vmem:[%s10016_s0 + $0x88] sm:$0xff] }
  0xce   :  { %v1693_v59 = vunpack.c.l.b16 %v1373_v55  ;;  %2476 = vmatprep.subr.bf16.mxu0 %v6125_v60  ;;  %v67_v31 = vld [vmem:[%s10016_s0 + $0x128] sm:$0xff]  ;;  %v271_v53 = vadd.f32 %v270_v37, %v47_v24  ;;  %v273_v60 = vsel %vm259_vm0, %v55_v42, 0.0 }
  0xcf   :  { %v51_v35 = vld [vmem:[%s10016_s0 + $0xa8] sm:$0xff]  ;;  %v321_v44 = vadd.f32 %v320_v32, %v67_v31 }
  0xd0   :  { %v1722_v61 = vsel %vm1707_vm7, %v1693_v59, %v1721_v57  ;;  %v71_v36 = vld [vmem:[%s10016_s0 + $0x148] sm:$0xff] }
  0xd1   :  { %v7833_v63 = vpack.c.b16 %v1722_v61, %v1722_v61  ;;  %2477 = vmatpush1.bf16.msra.mxu0 %v6123_v51  ;;  %v87_v38 = vld [vmem:[%s10016_s0 + $0x1c8] sm:$0xff]  ;;  %v322_v54 = vadd.f32 %v321_v44, %v71_v36  ;;  %v6171_v44 = vld [vmem:[%s10018_s2] ss:$16 sps:$4 sm:$0xff]  }
  0xd2   :  { %2478 = vmatprep.subr.bf16.mxu0 %v6131_v50  ;;  %v6122_v39 = vld [vmem:[%s10018_s2 + $0x6ec] ss:$16 sps:$4 sm:$0xff]   ;;  %v83_v47 = vld [vmem:[%s10016_s0 + $0x1a8] sm:$0x1] }
  0xd3   :  { %2452 = vmatmul.mubr.bf16.vlgmr.msra.gmra.mrb[0].mxu1 %v7833_v63  ;;  %v91_v43 = vld [vmem:[%s10016_s0 + $0x1e8] sm:$0xff] }
  0xd4   :  { %2502 = vmatpush1.bf16.msra.mxu1 %v6078_v62  ;;  %2533 = vmatprep.mubr.bf16.mxu1 %v7553_v17  ;;  %v6090_v17 = vld [vmem:[%s10018_s2 + $0x648] ss:$16 sps:$4 sm:$0xff]   ;;  %v6167_v45 = vld [vmem:[%s10018_s2 + $0x5ec] ss:$16 sps:$4 sm:$0xff]   ;;  %v372_v40 = vadd.f32 %v91_v43, %v87_v38 }
  0xd5   :  { %2503 = vmatprep.subr.bf16.mxu1 %v6086_v0  ;;  %2479 = vmatpush1.bf16.msra.mxu0 %v6129_v3  ;;  %v95_v34 = vld [vmem:[%s10016_s0 + $0x208] sm:$0xff] }
  0xd6   :  { %2480 = vmatprep.subr.bf16.mxu0 %v6137_v4  ;;  %v75_v46 = vld [vmem:[%s10016_s0 + $0x168] sm:$0xff]  ;;  %v373_v61 = vadd.f32 %v372_v40, %v95_v34  ;;  %v272_v4 = vadd.f32 %v271_v53, %v51_v35 }
  0xd7   :  { %v99_v14 = vld [vmem:[%s10016_s0 + $0x228] sm:$0xff] }
  0xd8   :  { %2504 = vmatpush1.bf16.msra.mxu1 %v6084_v1  ;;  %v115_v48 = vld [vmem:[%s10016_s0 + $0x2a8] sm:$0xff]  ;;  %v274_v18 = vadd.f32 %v273_v60, %v272_v4 }
  0xd9   :  { %2505 = vmatprep.subr.bf16.mxu1 %v6092_v2  ;;  %2481 = vmatpush1.bf16.msra.mxu0 %v6135_v5  ;;  %v119_v49 = vld [vmem:[%s10016_s0 + $0x2c8] sm:$0xff] }
  0xda   :  { %2482 = vmatprep.subr.bf16.mxu0 %v6143_v6  ;;  %v123_v52 = vld [vmem:[%s10016_s0 + $0x2e8] sm:$0xff]  ;;  %v424_v62 = vadd.f32 %v119_v49, %v115_v48  ;;  %v275_v32 = vrot.slane %v274_v18, 4 }
  0xdb   :  { %v6120_v55 = vld [vmem:[%s10018_s2 + $0x6e8] ss:$16 sps:$4 sm:$0xff]   ;;  %v6128_v0 = vld [vmem:[%s10018_s2 + $0x70c] ss:$16 sps:$4 sm:$0xff]  }
  0xdc   :  { %2506 = vmatpush1.bf16.msra.mxu1 %v6090_v17  ;;  %v79_v57 = vld [vmem:[%s10016_s0 + $0x188] sm:$0xff]  ;;  %v323_v17 = vadd.f32 %v322_v54, %v75_v46 }
  0xdd   :  { %2507 = vmatprep.subr.bf16.mxu1 %v6098_v56  ;;  %2483 = vmatpush1.bf16.msra.mxu0 %v6141_v11  ;;  %v103_v58 = vld [vmem:[%s10016_s0 + $0x248] sm:$0xff]  ;;  %v6173_v56 = vld [vmem:[%s10018_s2 + $0x4] ss:$16 sps:$4 sm:$0xff]   ;;  %v374_v11 = vadd.f32 %v373_v61, %v99_v14 }
  0xde   :  { %2484 = vmatprep.subr.bf16.mxu0 %v6149_v9  ;;  %v111_v59 = vld [vmem:[%s10016_s0 + $0x288] sm:$0x1]  ;;  %v425_v9 = vadd.f32 %v424_v62, %v123_v52  ;;  %v324_v19 = vadd.f32 %v323_v17, %v79_v57 }
  0xdf   :  { %v6165_v51 = vld [vmem:[%s10018_s2 + $0x5e8] ss:$16 sps:$4 sm:$0xff]   ;;  %v375_v26 = vadd.f32 %v374_v11, %v103_v58  ;;  %v377_v28 = vsel %vm259_vm0, %v111_v59, 0.0 }
  0xe0   :  { %2508 = vmatpush1.bf16.msra.mxu1 %v6096_v7  ;;  %v107_v50 = vld [vmem:[%s10016_s0 + $0x268] sm:$0xff] }
  0xe1   :  { %2509 = vmatprep.subr.bf16.mxu1 %v6104_v10  ;;  %2485 = vmatpush1.bf16.msra.mxu0 %v6147_v13  ;;  %v127_v1 = vld [vmem:[%s10016_s0 + $0x308] sm:$0xff]  ;;  %v325_v10 = vsel %vm259_vm0, %v83_v47, 0.0  ;;  %v376_v42 = vadd.f32 %v375_v26, %v107_v50  ;;  %v276_v47 = vadd.f32 %v275_v32, %v274_v18  ;;  %v6183_v32 = vld [vmem:[%s10018_s2 + $0x40] ss:$16 sps:$4 sm:$0xff]  }
  0xe2   :  { %2486 = vmatprep.subr.bf16.mxu0 %v6155_v16  ;;  %v143_v2 = vld [vmem:[%s10016_s0 + $0x388] sm:$0xff]  ;;  %v426_v29 = vadd.f32 %v425_v9, %v127_v1 }
  0xe3   :  { %v147_v3 = vld [vmem:[%s10016_s0 + $0x3a8] sm:$0xff]  ;;  %v378_v54 = vadd.f32 %v377_v28, %v376_v42  ;;  %v277_v61 = vrot.slane %v276_v47, 2 }
  0xe4   :  { %2510 = vmatpush1.bf16.msra.mxu1 %v6102_v12  ;;  %v131_v5 = vld [vmem:[%s10016_s0 + $0x328] sm:$0xff]  ;;  %v476_v12 = vadd.f32 %v147_v3, %v143_v2 }
  0xe5   :  { %2511 = vmatprep.subr.bf16.mxu1 %v6110_v15  ;;  %2487 = vmatpush1.bf16.msra.mxu0 %v6153_v25  ;;  %v139_v6 = vld [vmem:[%s10016_s0 + $0x368] sm:$0x1]  ;;  %v427_v43 = vadd.f32 %v426_v29, %v131_v5  ;;  %v379_v3 = vrot.slane %v378_v54, 4  ;;  %v6140_v5 = vld [vmem:[%s10018_s2 + $0x74c] ss:$16 sps:$4 sm:$0xff]  }
  0xe6   :  { %2488 = vmatprep.subr.bf16.mxu0 %v6161_v30  ;;  %v151_v7 = vld [vmem:[%s10016_s0 + $0x3c8] sm:$0xff]  ;;  %v429_v35 = vsel %vm259_vm0, %v139_v6, 0.0 }
  0xe7   :  { %v155_v15 = vld [vmem:[%s10016_s0 + $0x3e8] sm:$0xff]  ;;  %v477_v23 = vadd.f32 %v476_v12, %v151_v7  ;;  %v278_v7 = vadd.f32 %v277_v61, %v276_v47  ;;  %v6185_v12 = vld [vmem:[%s10018_s2 + $0x44] ss:$16 sps:$4 sm:$0xff]  }
  0xe8   :  { %2512 = vmatpush1.bf16.msra.mxu1 %v6108_v21  ;;  %v167_v13 = vld [vmem:[%s10016_s0 + $0x448] sm:$0x1]  ;;  %v6134_v30 = vld [vmem:[%s10018_s2 + $0x72c] ss:$16 sps:$4 sm:$0xff]   ;;  %v6197_v61 = vld [vmem:[%s10018_s2 + $0x84] ss:$16 sps:$4 sm:$0xff]  }
  0xe9   :  { %2513 = vmatprep.subr.bf16.mxu1 %v6116_v22  ;;  %2489 = vmatpush1.bf16.msra.mxu0 %v6159_v41  ;;  %v171_v16 = vld [vmem:[%s10016_s0 + $0x468] sm:$0xff]  ;;  %v478_v34 = vadd.f32 %v477_v23, %v155_v15  ;;  %v481_v37 = vsel %vm259_vm0, %v167_v13, 0.0  ;;  %v380_v13 = vadd.f32 %v379_v3, %v378_v54 }
  0xea   :  { %v6126_v20 = vld [vmem:[%s10018_s2 + $0x708] ss:$16 sps:$4 sm:$0xff]   ;;  %2490 = vmatprep.subr.bf16.mxu0 %v6167_v45  ;;  %v6179_v45 = vld [vmem:[%s10018_s2 + $0x24] ss:$16 sps:$4 sm:$0xff]   ;;  %v6152_v54 = vld [vmem:[%s10018_s2 + $0x78c] ss:$16 sps:$4 sm:$0xff]  }
  0xeb   :  { %v135_v21 = vld [vmem:[%s10016_s0 + $0x348] sm:$0xff]  ;;  %v381_v23 = vrot.slane %v380_v13, 2 }
  0xec   :  { %2514 = vmatpush1.bf16.msra.mxu1 %v6114_v33  ;;  %v175_v22 = vld [vmem:[%s10016_s0 + $0x488] sm:$0xff]  ;;  %v326_v33 = vadd.f32 %v325_v10, %v324_v19 }
  0xed   :  { %2515 = vmatprep.subr.bf16.mxu1 %v6122_v39  ;;  %v179_v25 = vld [vmem:[%s10016_s0 + $0x4a8] sm:$0xff]  ;;  %v528_v36 = vadd.f32 %v175_v22, %v171_v16  ;;  %2491 = vmatpush1.bf16.msra.mxu0 %v6165_v51  ;;  %v382_v42 = vadd.f32 %v381_v23, %v380_v13  ;;  %v6203_v13 = vld [vmem:[%s10018_s2 + $0xa4] ss:$16 sps:$4 sm:$0xff]   ;;  %v61_v23 = vld [vmem:[%s10016_s0 + $0xf8] sm:$0xff] }
  0xee   :  { %v159_v24 = vld [vmem:[%s10016_s0 + $0x408] sm:$0xff]  ;;  %v327_v14 = vrot.slane %v326_v33, 4  ;;  %3282 = vmatprep.subr.bf16.mxu0 %v6173_v56 }
  0xef   :  { %v183_v31 = vld [vmem:[%s10016_s0 + $0x4c8] sm:$0xff]  ;;  %v529_v40 = vadd.f32 %v528_v36, %v179_v25  ;;  %v479_v57 = vadd.f32 %v478_v34, %v159_v24 }
  0xf0   :  { %v195_v27 = vld [vmem:[%s10016_s0 + $0x528] sm:$0x1]  ;;  %2516 = vmatpush1.bf16.msra.mxu1 %v6120_v55  ;;  %v428_v55 = vadd.f32 %v427_v43, %v135_v21  ;;  %v328_v62 = vadd.f32 %v327_v14, %v326_v33  ;;  %2493 = vmatmul.mubr.bf16.vlgmr.msra.gmra.mrb[4].mxu0 %v7751_v8  ;;  %v6177_v8 = vld [vmem:[%s10018_s2 + $0x20] ss:$16 sps:$4 sm:$0xff]   ;;  %v279_v21 = vrot.slane %v278_v7, 1 }
  0xf1   :  { %v199_v38 = vld [vmem:[%s10016_s0 + $0x548] sm:$0xff]  ;;  %2517 = vmatprep.subr.bf16.mxu1 %v6128_v0  ;;  %v533_v58 = vsel %vm259_vm0, %v195_v27, 0.0  ;;  %v530_v0 = vadd.f32 %v529_v40, %v183_v31  ;;  %3283 = vmatpush1.bf16.msra.mxu0 %v6171_v44 }
  0xf2   :  { %v203_v39 = vld [vmem:[%s10016_s0 + $0x568] sm:$0xff]  ;;  %v430_v4 = vadd.f32 %v429_v35, %v428_v55  ;;  %v329_v10 = vrot.slane %v328_v62, 2  ;;  %3284 = vmatprep.subr.bf16.mxu0 %v6179_v45  ;;  %v280_v35 = vadd.f32 %v279_v21, %v278_v7  ;;  %v6189_v55 = vld [vmem:[%s10018_s2 + $0x60] ss:$16 sps:$4 sm:$0xff]  }
  0xf3   :  { %v207_v41 = vld [vmem:[%s10016_s0 + $0x588] sm:$0xff]  ;;  %v580_v48 = vadd.f32 %v203_v39, %v199_v38 }
  0xf4   :  { %v163_v46 = vld [vmem:[%s10016_s0 + $0x428] sm:$0xff]  ;;  %2518 = vmatpush1.bf16.msra.mxu1 %v6126_v20  ;;  %v431_v16 = vrot.slane %v430_v4, 4  ;;  %v330_v22 = vadd.f32 %v329_v10, %v328_v62 }
  0xf5   :  { %v187_v49 = vld [vmem:[%s10016_s0 + $0x4e8] sm:$0xff]  ;;  %v581_v51 = vadd.f32 %v580_v48, %v207_v41  ;;  %v480_v17 = vadd.f32 %v479_v57, %v163_v46  ;;  %2519 = vmatprep.subr.bf16.mxu1 %v6134_v30  ;;  %3285 = vmatpush1.bf16.msra.mxu0 %v6177_v8  ;;  %v6191_v41 = vld [vmem:[%s10018_s2 + $0x64] ss:$16 sps:$4 sm:$0xff]   ;;  %v383_v48 = vrot.slane %v382_v42, 1 }
  0xf6   :  { %v211_v52 = vld [vmem:[%s10016_s0 + $0x5a8] sm:$0xff]  ;;  %v531_v11 = vadd.f32 %v530_v0, %v187_v49  ;;  %v432_v30 = vadd.f32 %v431_v16, %v430_v4  ;;  %v331_v36 = vrot.slane %v330_v22, 1  ;;  %3286 = vmatprep.subr.bf16.mxu0 %v6185_v12  ;;  %v57_v12 = vld [vmem:[%s10016_s0 + $0xd8] sm:$0x1] }
  0xf7   :  { %v223_v53 = vld [vmem:[%s10016_s0 + $0x608] sm:$0x1]  ;;  %v582_v9 = vadd.f32 %v581_v51, %v211_v52  ;;  %v482_v18 = vadd.f32 %v481_v37, %v480_v17  ;;  %v6146_v27 = vld [vmem:[%s10018_s2 + $0x76c] ss:$16 sps:$4 sm:$0xff]   ;;  %v384_v62 = vadd.f32 %v383_v48, %v382_v42 }
  0xf8   :  { %v227_v59 = vld [vmem:[%s10016_s0 + $0x628] sm:$0xff]  ;;  %v585_v56 = vsel %vm259_vm0, %v223_v53, 0.0  ;;  %v433_v43 = vrot.slane %v432_v30, 2  ;;  %v332_v45 = vadd.f32 %v331_v36, %v330_v22  ;;  %v8202_v36 = vsel %vm259_vm0, %v57_v12, 0.0  ;;  %v145_v12 = vld [vmem:[%s10016_s0 + $0x398] sm:$0xff] }
  0xf9   :  { %v231_v60 = vld [vmem:[%s10016_s0 + $0x648] sm:$0xff]  ;;  %v483_v24 = vrot.slane %v482_v18, 4  ;;  %3287 = vmatpush1.bf16.msra.mxu0 %v6183_v32 }
  0xfa   :  { %v6132_v50 = vld [vmem:[%s10018_s2 + $0x728] ss:$16 sps:$4 sm:$0xff]   ;;  %v632_v19 = vadd.f32 %v231_v60, %v227_v59  ;;  %v434_v49 = vadd.f32 %v433_v43, %v432_v30  ;;  %v672_v59 = vpack.c.bf16 %v280_v35, %v280_v35  ;;  %v676_v60 = vpack.c.bf16 %v332_v45, %v332_v45  ;;  %3288 = vmatprep.subr.bf16.mxu0 %v6191_v41  ;;  %v6158_v8 = vld [vmem:[%s10018_s2 + $0x7ac] ss:$16 sps:$4 sm:$0xff]  }
  0xfb   :  { %v191_v1 = vld [vmem:[%s10016_s0 + $0x508] sm:$0xff]  ;;  %2520 = vmatpush1.bf16.msra.mxu1 %v6132_v50  ;;  %v484_v34 = vadd.f32 %v483_v24, %v482_v18  ;;  %v65_v30 = vld [vmem:[%s10016_s0 + $0x118] sm:$0xff] }
  0xfc   :  { %v215_v2 = vld [vmem:[%s10016_s0 + $0x5c8] sm:$0xff]  ;;  %v532_v25 = vadd.f32 %v531_v11, %v191_v1  ;;  %2521 = vmatprep.subr.bf16.mxu1 %v6140_v5  ;;  %v435_v0 = vrot.slane %v434_v49, 1  ;;  %v33_v1 = vld [vmem:[%s10016_s0 + $0x18] sm:$0xff]  ;;  %v2579_v5 = vunpack.c.l.b16 %v676_v60  ;;  %v680_v11 = vpack.c.bf16 %v384_v62, %v384_v62 }
  0xfd   :  { %v235_v6 = vld [vmem:[%s10016_s0 + $0x668] sm:$0xff]  ;;  %v583_v26 = vadd.f32 %v582_v9, %v215_v2  ;;  %v485_v52 = vrot.slane %v484_v34, 2  ;;  %v37_v2 = vld [vmem:[%s10016_s0 + $0x38] sm:$0xff]  ;;  %3289 = vmatpush1.bf16.msra.mxu0 %v6189_v55  ;;  %v346_v48 = vadd.f32 %v65_v30, %v61_v23 }
  0xfe   :  { %v219_v15 = vld [vmem:[%s10016_s0 + $0x5e8] sm:$0xff]  ;;  %v633_v31 = vadd.f32 %v632_v19, %v235_v6  ;;  %v534_v38 = vadd.f32 %v533_v58, %v532_v25  ;;  %v436_v6 = vadd.f32 %v435_v0, %v434_v49  ;;  %v41_v9 = vld [vmem:[%s10016_s0 + $0x58] sm:$0xff]  ;;  %3290 = vmatprep.subr.bf16.mxu0 %v6197_v61  ;;  %v6207_v61 = vld [vmem:[%s10018_s2 + $0xc0] ss:$16 sps:$4 sm:$0xff]  }
  0xff   :  { %v239_v20 = vld [vmem:[%s10016_s0 + $0x688] sm:$0xff]  ;;  %v584_v39 = vadd.f32 %v583_v26, %v219_v15  ;;  %v486_v51 = vadd.f32 %v485_v52, %v484_v34  ;;  %v6195_v15 = vld [vmem:[%s10018_s2 + $0x80] ss:$16 sps:$4 sm:$0xff]   ;;  %v49_v34 = vld [vmem:[%s10016_s0 + $0x98] sm:$0xff] }
 0x100   :  { %v6138_v28 = vld [vmem:[%s10018_s2 + $0x748] ss:$16 sps:$4 sm:$0xff]   ;;  %v634_v37 = vadd.f32 %v633_v31, %v239_v20  ;;  %v535_v46 = vrot.slane %v534_v38, 4  ;;  %v294_v20 = vadd.f32 %v37_v2, %v33_v1  ;;  %v684_v26 = vpack.c.bf16 %v436_v6, %v436_v6  ;;  %v6164_v24 = vld [vmem:[%s10018_s2 + $0x7cc] ss:$16 sps:$4 sm:$0xff]  }
 0x101   :  { %v251_v29 = vld [vmem:[%s10016_s0 + $0x6e8] sm:$0x1]  ;;  %v586_v47 = vadd.f32 %v585_v56, %v584_v39  ;;  %2522 = vmatpush1.bf16.msra.mxu1 %v6138_v28  ;;  %v2575_v56 = vunpack.c.l.b16 %v672_v59  ;;  %v487_v7 = vrot.slane %v486_v51, 1  ;;  %v2583_v28 = vunpack.c.l.b16 %v680_v11  ;;  %v6201_v31 = vld [vmem:[%s10018_s2 + $0xa0] ss:$16 sps:$4 sm:$0xff]   ;;  %3291 = vmatpush1.bf16.msra.mxu0 %v6195_v15  ;;  %v53_v55 = vld [vmem:[%s10016_s0 + $0xb8] sm:$0xff] }
 0x102   :  { %v243_v33 = vld [vmem:[%s10016_s0 + $0x6a8] sm:$0xff]  ;;  %v637_v14 = vsel %vm259_vm0, %v251_v29, 0.0  ;;  %2523 = vmatprep.subr.bf16.mxu1 %v6146_v27  ;;  %v536_v57 = vadd.f32 %v535_v46, %v534_v38  ;;  %v45_v29 = vld [vmem:[%s10016_s0 + $0x78] sm:$0xff]  ;;  %v295_v35 = vadd.f32 %v294_v20, %v41_v9  ;;  %v6209_v38 = vld [vmem:[%s10018_s2 + $0xc4] ss:$16 sps:$4 sm:$0xff]   ;;  %v2587_v42 = vunpack.c.l.b16 %v684_v26  ;;  %3292 = vmatprep.subr.bf16.mxu0 %v6203_v13 }
 0x103   :  { %v247_v44 = vld [vmem:[%s10016_s0 + $0x6c8] sm:$0xff]  ;;  %v635_v53 = vadd.f32 %v634_v37, %v243_v33  ;;  %v587_v58 = vrot.slane %v586_v47, 4  ;;  %v2613_v19 = vsel %vm1695_vm1, %v2579_v5, %v2575_v56  ;;  %v488_v22 = vadd.f32 %v487_v7, %v486_v51  ;;  %v85_v33 = vld [vmem:[%s10016_s0 + $0x1b8] sm:$0x1] }
 0x104   :  { %v6144_v40 = vld [vmem:[%s10018_s2 + $0x768] ss:$16 sps:$4 sm:$0xff]   ;;  %v537_v4 = vrot.slane %v536_v57, 2  ;;  %v2614_v43 = vsel %vm1697_vm2, %v2583_v28, %v2613_v19  ;;  %v8237_v59 = vsel %vm259_vm0, %v85_v33, 0.0  ;;  %v6170_v60 = vld [vmem:[%s10018_s2 + $0x7ec] ss:$16 sps:$4 sm:$0xff]  }
 0x105   :  { %v636_v50 = vadd.f32 %v635_v53, %v247_v44  ;;  %v6150_v3 = vld [vmem:[%s10018_s2 + $0x788] ss:$16 sps:$4 sm:$0xff]   ;;  %v588_v17 = vadd.f32 %v587_v58, %v586_v47  ;;  %2524 = vmatpush1.bf16.msra.mxu1 %v6144_v40  ;;  %v688_v41 = vpack.c.bf16 %v488_v22, %v488_v22  ;;  %v296_v40 = vadd.f32 %v295_v35, %v45_v29  ;;  %v6176_v28 = vld [vmem:[%s10018_s2 + $0x204] ss:$16 sps:$4 sm:$0xff]   ;;  %v6213_v29 = vld [vmem:[%s10018_s2 + $0xe0] ss:$16 sps:$4 sm:$0xff]  }
 0x106   :  { %2525 = vmatprep.subr.bf16.mxu1 %v6152_v54  ;;  %v538_v16 = vadd.f32 %v537_v4, %v536_v57  ;;  %v6156_v21 = vld [vmem:[%s10018_s2 + $0x7a8] ss:$16 sps:$4 sm:$0xff]   ;;  %v2615_v54 = vsel %vm1699_vm3, %v2587_v42, %v2614_v43  ;;  %v6215_v4 = vld [vmem:[%s10018_s2 + $0xe4] ss:$16 sps:$4 sm:$0xff]   ;;  %3293 = vmatpush1.bf16.msra.mxu0 %v6201_v31 }
 0x107   :  { %v638_v10 = vadd.f32 %v637_v14, %v636_v50  ;;  %v589_v18 = vrot.slane %v588_v17, 2  ;;  %v69_v37 = vld [vmem:[%s10016_s0 + $0x138] sm:$0xff]  ;;  %v2591_v53 = vunpack.c.l.b16 %v688_v41  ;;  %v297_v2 = vadd.f32 %v296_v40, %v49_v34  ;;  %3294 = vmatprep.subr.bf16.mxu0 %v6209_v38  ;;  %v6221_v35 = vld [vmem:[%s10018_s2 + $0x104] ss:$16 sps:$4 sm:$0xff]  }
 0x108   :  { %v539_v27 = vrot.slane %v538_v16, 1  ;;  %v89_v46 = vld [vmem:[%s10016_s0 + $0x1d8] sm:$0xff] }
 0x109   :  { %v639_v25 = vrot.slane %v638_v10, 4  ;;  %v590_v32 = vadd.f32 %v589_v18, %v588_v17  ;;  %2526 = vmatpush1.bf16.msra.mxu1 %v6150_v3  ;;  %v93_v47 = vld [vmem:[%s10016_s0 + $0x1f8] sm:$0xff]  ;;  %v347_v3 = vadd.f32 %v346_v48, %v69_v37  ;;  %v2616_v56 = vsel %vm1701_vm4, %v2591_v53, %v2615_v54 }
 0x10a   :  { %2527 = vmatprep.subr.bf16.mxu1 %v6158_v8  ;;  %v540_v44 = vadd.f32 %v539_v27, %v538_v16  ;;  %v113_v14 = vld [vmem:[%s10016_s0 + $0x298] sm:$0x1]  ;;  %v398_v6 = vadd.f32 %v93_v47, %v89_v46  ;;  %v298_v13 = vadd.f32 %v297_v2, %v53_v55  ;;  %3295 = vmatpush1.bf16.msra.mxu0 %v6207_v61 }
 0x10b   :  { %v640_v39 = vadd.f32 %v639_v25, %v638_v10  ;;  %v591_v45 = vrot.slane %v590_v32, 1  ;;  %v6162_v49 = vld [vmem:[%s10018_s2 + $0x7c8] ss:$16 sps:$4 sm:$0xff]   ;;  %v8265_v7 = vsel %vm259_vm0, %v113_v14, 0.0  ;;  %3296 = vmatprep.subr.bf16.mxu0 %v6215_v4 }
 0x10c   :  { %v73_v57 = vld [vmem:[%s10016_s0 + $0x158] sm:$0xff]  ;;  %v692_v0 = vpack.c.bf16 %v540_v44, %v540_v44 }
 0x10d   :  { %v641_v52 = vrot.slane %v640_v39, 2  ;;  %v97_v58 = vld [vmem:[%s10016_s0 + $0x218] sm:$0xff]  ;;  %v592_v62 = vadd.f32 %v591_v45, %v590_v32  ;;  %2528 = vmatpush1.bf16.msra.mxu1 %v6156_v21  ;;  %v348_v16 = vadd.f32 %v347_v3, %v73_v57  ;;  %v300_v32 = vadd.f32 %v8202_v36, %v298_v13 }
 0x10e   :  { %v117_v51 = vld [vmem:[%s10016_s0 + $0x2b8] sm:$0xff]  ;;  %2529 = vmatprep.subr.bf16.mxu1 %v6164_v24  ;;  %v2595_v11 = vunpack.c.l.b16 %v692_v0  ;;  %v399_v22 = vadd.f32 %v398_v6, %v97_v58  ;;  %3297 = vmatpush1.bf16.msra.mxu0 %v6213_v29 }
 0x10f   :  { %v121_v50 = vld [vmem:[%s10016_s0 + $0x2d8] sm:$0xff]  ;;  %v642_v17 = vadd.f32 %v641_v52, %v640_v39  ;;  %v696_v10 = vpack.c.bf16 %v592_v62, %v592_v62  ;;  %v301_v47 = vrot.slane %v300_v32, 4  ;;  %3298 = vmatprep.subr.bf16.mxu0 %v6221_v35  ;;  %v6225_v35 = vld [vmem:[%s10018_s2 + $0x120] ss:$16 sps:$4 sm:$0xff]  }
 0x110   :  { %v141_v1 = vld [vmem:[%s10016_s0 + $0x378] sm:$0x1]  ;;  %v450_v25 = vadd.f32 %v121_v50, %v117_v51  ;;  %v2617_v30 = vsel %vm1703_vm5, %v2595_v11, %v2616_v56  ;;  %v6174_v50 = vld [vmem:[%s10018_s2 + $0x200] ss:$16 sps:$4 sm:$0xff]  }
 0x111   :  { %v77_v5 = vld [vmem:[%s10016_s0 + $0x178] sm:$0xff]  ;;  %v643_v19 = vrot.slane %v642_v17, 1  ;;  %v8286_v26 = vsel %vm259_vm0, %v141_v1, 0.0  ;;  %v2599_v23 = vunpack.c.l.b16 %v696_v10  ;;  %2530 = vmatpush1.bf16.msra.mxu1 %v6162_v49  ;;  %v302_v61 = vadd.f32 %v301_v47, %v300_v32  ;;  %v6182_v1 = vld [vmem:[%s10018_s2 + $0x224] ss:$16 sps:$4 sm:$0xff]  }
 0x112   :  { %v101_v8 = vld [vmem:[%s10016_s0 + $0x238] sm:$0xff]  ;;  %v349_v33 = vadd.f32 %v348_v16, %v77_v5  ;;  %2531 = vmatprep.subr.bf16.mxu1 %v6170_v60  ;;  %v6219_v56 = vld [vmem:[%s10018_s2 + $0x100] ss:$16 sps:$4 sm:$0xff]  }
 0x113   :  { %v125_v9 = vld [vmem:[%s10016_s0 + $0x2f8] sm:$0xff]  ;;  %v644_v38 = vadd.f32 %v643_v19, %v642_v17  ;;  %v400_v36 = vadd.f32 %v399_v22, %v101_v8  ;;  %v2618_v37 = vsel %vm1705_vm6, %v2599_v23, %v2617_v30  ;;  %v303_v6 = vrot.slane %v302_v61, 2  ;;  %v6188_v22 = vld [vmem:[%s10018_s2 + $0x244] ss:$16 sps:$4 sm:$0xff]   ;;  %3299 = vmatpush1.bf16.msra.mxu0 %v6219_v56 }
 0x114   :  { %v149_v15 = vld [vmem:[%s10016_s0 + $0x3b8] sm:$0xff]  ;;  %v451_v43 = vadd.f32 %v450_v25, %v125_v9 }
 0x115   :  { %v6168_v18 = vld [vmem:[%s10018_s2 + $0x7e8] ss:$16 sps:$4 sm:$0xff]   ;;  %v502_v34 = vadd.f32 %v149_v15, %v145_v12  ;;  %v700_v48 = vpack.c.bf16 %v644_v38, %v644_v38  ;;  %v6227_v12 = vld [vmem:[%s10018_s2 + $0x124] ss:$16 sps:$4 sm:$0xff]   ;;  %v304_v29 = vadd.f32 %v303_v6, %v302_v61  ;;  %v6231_v61 = vld [vmem:[%s10018_s2 + $0x140] ss:$16 sps:$4 sm:$0xff]  }
 0x116   :  { %v81_v20 = vld [vmem:[%s10016_s0 + $0x198] sm:$0xff]  ;;  %2532 = vmatpush1.bf16.msra.mxu1 %v6168_v18  ;;  %3300 = vmatprep.subr.bf16.mxu0 %v6227_v12 }
 0x117   :  { %v169_v21 = vld [vmem:[%s10016_s0 + $0x458] sm:$0x1]  ;;  %v350_v14 = vadd.f32 %v349_v33, %v81_v20  ;;  %v2603_v2 = vunpack.c.l.b16 %v700_v48  ;;  %3323 = vmatprep.subr.bf16.mxu1 %v6176_v28  ;;  %3301 = vmatpush1.bf16.msra.mxu0 %v6225_v35 }
 0x118   :  { %v105_v24 = vld [vmem:[%s10016_s0 + $0x258] sm:$0xff]  ;;  %v8328_v40 = vsel %vm259_vm0, %v169_v21, 0.0  ;;  %v6180_v21 = vld [vmem:[%s10018_s2 + $0x220] ss:$16 sps:$4 sm:$0xff]  }
 0x119   :  { %v129_v31 = vld [vmem:[%s10016_s0 + $0x318] sm:$0xff]  ;;  %v401_v54 = vadd.f32 %v400_v36, %v105_v24  ;;  %v352_v62 = vadd.f32 %v8237_v59, %v350_v14  ;;  %v2619_v15 = vsel %vm1707_vm7, %v2603_v2, %v2618_v37  ;;  %2534 = vmatmul.mubr.bf16.vlgmr.msra.gmra.mrb[4].mxu1 %v7833_v63  ;;  %v6239_v2 = vld [vmem:[%s10018_s2 + $0x164] ss:$16 sps:$4 sm:$0xff]  }
 0x11a   :  { %v153_v27 = vld [vmem:[%s10016_s0 + $0x3d8] sm:$0xff]  ;;  %v452_v55 = vadd.f32 %v451_v43, %v129_v31  ;;  %v8385_v25 = vpack.c.b16 %v2619_v15, %v2619_v15  ;;  %3324 = vmatpush1.bf16.msra.mxu1 %v6174_v50 }
 0x11b   :  { %v173_v39 = vld [vmem:[%s10016_s0 + $0x478] sm:$0xff]  ;;  %v503_v57 = vadd.f32 %v502_v34, %v153_v27  ;;  %v353_v10 = vrot.slane %v352_v62, 4  ;;  %3325 = vmatprep.subr.bf16.mxu1 %v6182_v1 }
 0x11c   :  { %v177_v41 = vld [vmem:[%s10016_s0 + $0x498] sm:$0xff]  ;;  %3314 = vmatprep.mubr.bf16.mxu0 %v8385_v25 }
 0x11d   :  { %v197_v42 = vld [vmem:[%s10016_s0 + $0x538] sm:$0x1]  ;;  %v554_v0 = vadd.f32 %v177_v41, %v173_v39  ;;  %v305_v39 = vrot.slane %v304_v29, 1 }
 0x11e   :  { %v109_v44 = vld [vmem:[%s10016_s0 + $0x278] sm:$0xff]  ;;  %v8347_v51 = vsel %vm259_vm0, %v197_v42, 0.0  ;;  %3326 = vmatpush1.bf16.msra.mxu1 %v6180_v21 }
 0x11f   :  { %v133_v45 = vld [vmem:[%s10016_s0 + $0x338] sm:$0xff]  ;;  %v402_v4 = vadd.f32 %v401_v54, %v109_v44  ;;  %v306_v14 = vadd.f32 %v305_v39, %v304_v29  ;;  %3327 = vmatprep.subr.bf16.mxu1 %v6188_v22 }
 0x120   :  { %v157_v46 = vld [vmem:[%s10016_s0 + $0x3f8] sm:$0xff]  ;;  %v453_v59 = vadd.f32 %v452_v55, %v133_v45 }
 0x121   :  { %v181_v49 = vld [vmem:[%s10016_s0 + $0x4b8] sm:$0xff]  ;;  %v504_v17 = vadd.f32 %v503_v57, %v157_v46  ;;  %v404_v18 = vadd.f32 %v8265_v7, %v402_v4  ;;  %v354_v7 = vadd.f32 %v353_v10, %v352_v62  ;;  %v674_v10 = vpack.c.bf16 %v306_v14, %v306_v14 }
 0x122   :  { %v201_v52 = vld [vmem:[%s10016_s0 + $0x558] sm:$0xff]  ;;  %v555_v11 = vadd.f32 %v554_v0, %v181_v49 }
 0x123   :  { %v205_v53 = vld [vmem:[%s10016_s0 + $0x578] sm:$0xff]  ;;  %v405_v31 = vrot.slane %v404_v18, 4  ;;  %v355_v41 = vrot.slane %v354_v7, 2  ;;  %v2577_v29 = vunpack.c.l.b16 %v674_v10  ;;  %v70_v10 = vld [vmem:[%s10016_s0 + $0x140] sm:$0xff] }
 0x124   :  { %v137_v58 = vld [vmem:[%s10016_s0 + $0x358] sm:$0xff]  ;;  %v606_v9 = vadd.f32 %v205_v53, %v201_v52  ;;  %v6186_v53 = vld [vmem:[%s10018_s2 + $0x240] ss:$16 sps:$4 sm:$0xff]  }
 0x125   :  { %v161_v60 = vld [vmem:[%s10016_s0 + $0x418] sm:$0xff]  ;;  %v454_v19 = vadd.f32 %v453_v59, %v137_v58  ;;  %v406_v37 = vadd.f32 %v405_v31, %v404_v18  ;;  %v356_v48 = vadd.f32 %v355_v41, %v354_v7  ;;  %3328 = vmatpush1.bf16.msra.mxu1 %v6186_v53  ;;  %v34_v18 = vld [vmem:[%s10016_s0 + $0x20] sm:$0xff] }
 0x126   :  { %v185_v3 = vld [vmem:[%s10016_s0 + $0x4d8] sm:$0xff]  ;;  %v505_v20 = vadd.f32 %v504_v17, %v161_v60  ;;  %v6194_v60 = vld [vmem:[%s10018_s2 + $0x264] ss:$16 sps:$4 sm:$0xff]   ;;  %v54_v31 = vld [vmem:[%s10016_s0 + $0xc0] sm:$0x1] }
 0x127   :  { %v165_v5 = vld [vmem:[%s10016_s0 + $0x438] sm:$0xff]  ;;  %v556_v23 = vadd.f32 %v555_v11, %v185_v3  ;;  %v456_v27 = vadd.f32 %v8286_v26, %v454_v19  ;;  %v6233_v26 = vld [vmem:[%s10018_s2 + $0x144] ss:$16 sps:$4 sm:$0xff]   ;;  %v407_v55 = vrot.slane %v406_v37, 2  ;;  %v357_v62 = vrot.slane %v356_v48, 1  ;;  %3329 = vmatprep.subr.bf16.mxu1 %v6194_v60 }
 0x128   :  { %v209_v8 = vld [vmem:[%s10016_s0 + $0x598] sm:$0xff]  ;;  %v506_v32 = vadd.f32 %v505_v20, %v165_v5  ;;  %3302 = vmatprep.subr.bf16.mxu0 %v6233_v26  ;;  %v6200_v19 = vld [vmem:[%s10018_s2 + $0x284] ss:$16 sps:$4 sm:$0xff]   ;;  %v6237_v20 = vld [vmem:[%s10018_s2 + $0x160] ss:$16 sps:$4 sm:$0xff]   ;;  %v8485_v14 = vsel %vm259_vm0, %v54_v31, 0.0 }
 0x129   :  { %v189_v13 = vld [vmem:[%s10016_s0 + $0x4f8] sm:$0xff]  ;;  %v607_v33 = vadd.f32 %v606_v9, %v209_v8  ;;  %v457_v44 = vrot.slane %v456_v27, 4  ;;  %v408_v4 = vadd.f32 %v407_v55, %v406_v37  ;;  %v358_v5 = vadd.f32 %v357_v62, %v356_v48  ;;  %3303 = vmatpush1.bf16.msra.mxu0 %v6231_v61  ;;  %v6245_v7 = vld [vmem:[%s10018_s2 + $0x184] ss:$16 sps:$4 sm:$0xff]   ;;  %v6204_v48 = vld [vmem:[%s10018_s2 + $0x2a0] ss:$16 sps:$4 sm:$0xff]  }
 0x12a   :  { %v225_v16 = vld [vmem:[%s10016_s0 + $0x618] sm:$0x1]  ;;  %v557_v42 = vadd.f32 %v556_v23, %v189_v13  ;;  %v508_v45 = vadd.f32 %v8328_v40, %v506_v32  ;;  %3304 = vmatprep.subr.bf16.mxu0 %v6239_v2  ;;  %v38_v26 = vld [vmem:[%s10016_s0 + $0x40] sm:$0xff] }
 0x12b   :  { %v213_v28 = vld [vmem:[%s10016_s0 + $0x5b8] sm:$0xff]  ;;  %v611_v36 = vsel %vm259_vm0, %v225_v16, 0.0  ;;  %v458_v40 = vadd.f32 %v457_v44, %v456_v27  ;;  %v409_v9 = vrot.slane %v408_v4, 1  ;;  %v30_v16 = vld [vmem:[%s10016_s0] sm:$0xff] }
 0x12c   :  { %v193_v63 = vld [vmem:[%s10016_s0 + $0x518] sm:$0xff]  ;;  %v608_v46 = vadd.f32 %v607_v33, %v213_v28  ;;  %v509_v57 = vrot.slane %v508_v45, 4  ;;  %v678_v28 = vpack.c.bf16 %v358_v5, %v358_v5  ;;  %v6198_v27 = vld [vmem:[%s10018_s2 + $0x280] ss:$16 sps:$4 sm:$0xff]   ;;  %v6206_v37 = vld [vmem:[%s10018_s2 + $0x2a4] ss:$16 sps:$4 sm:$0xff]  }
 0x12d   :  { %v229_v30 = vld [vmem:[%s10016_s0 + $0x638] sm:$0xff]  ;;  %v558_v49 = vadd.f32 %v557_v42, %v193_v63  ;;  %v459_v59 = vrot.slane %v458_v40, 2  ;;  %v410_v23 = vadd.f32 %v409_v9, %v408_v4  ;;  %3305 = vmatpush1.bf16.msra.mxu0 %v6237_v20  ;;  %v6243_v44 = vld [vmem:[%s10018_s2 + $0x180] ss:$16 sps:$4 sm:$0xff]   ;;  %v6257_v5 = vld [vmem:[%s10018_s2 + $0x1c4] ss:$16 sps:$4 sm:$0xff]  }
 0x12e   :  { %v233_v24 = vld [vmem:[%s10016_s0 + $0x658] sm:$0xff]  ;;  %v510_v17 = vadd.f32 %v509_v57, %v508_v45  ;;  %v2581_v35 = vunpack.c.l.b16 %v678_v28  ;;  %3306 = vmatprep.subr.bf16.mxu0 %v6245_v7  ;;  %v82_v57 = vld [vmem:[%s10016_s0 + $0x1a0] sm:$0x1]  ;;  %v6218_v28 = vld [vmem:[%s10018_s2 + $0x2e4] ss:$16 sps:$4 sm:$0xff]  }
 0x12f   :  { %v217_v38 = vld [vmem:[%s10016_s0 + $0x5d8] sm:$0xff]  ;;  %v658_v52 = vadd.f32 %v233_v24, %v229_v30  ;;  %v560_v0 = vadd.f32 %v8347_v51, %v558_v49  ;;  %v6192_v51 = vld [vmem:[%s10018_s2 + $0x260] ss:$16 sps:$4 sm:$0xff]   ;;  %v460_v12 = vadd.f32 %v459_v59, %v458_v40  ;;  %v6251_v49 = vld [vmem:[%s10018_s2 + $0x1a4] ss:$16 sps:$4 sm:$0xff]  }
 0x130   :  { %v237_v43 = vld [vmem:[%s10016_s0 + $0x678] sm:$0xff]  ;;  %v609_v58 = vadd.f32 %v608_v46, %v217_v38  ;;  %v511_v15 = vrot.slane %v510_v17, 2  ;;  %v254_v38 = vadd.f32 %v34_v18, %v30_v16  ;;  %3330 = vmatpush1.bf16.msra.mxu1 %v6192_v51  ;;  %v42_v40 = vld [vmem:[%s10016_s0 + $0x60] sm:$0xff] }
 0x131   :  { %v253_v34 = vld [vmem:[%s10016_s0 + $0x6f8] sm:$0x1]  ;;  %v659_v50 = vadd.f32 %v658_v52, %v237_v43  ;;  %v561_v8 = vrot.slane %v560_v0, 4  ;;  %v461_v63 = vrot.slane %v460_v12, 1  ;;  %v58_v43 = vld [vmem:[%s10016_s0 + $0xe0] sm:$0xff]  ;;  %3331 = vmatprep.subr.bf16.mxu1 %v6200_v19  ;;  %3307 = vmatpush1.bf16.msra.mxu0 %v6243_v44 }
 0x132   :  { %v221_v47 = vld [vmem:[%s10016_s0 + $0x5f8] sm:$0xff]  ;;  %v663_v1 = vsel %vm259_vm0, %v253_v34, 0.0  ;;  %v512_v30 = vadd.f32 %v511_v15, %v510_v17  ;;  %v62_v34 = vld [vmem:[%s10016_s0 + $0x100] sm:$0xff]  ;;  %3308 = vmatprep.subr.bf16.mxu0 %v6251_v49 }
 0x133   :  { %v241_v54 = vld [vmem:[%s10016_s0 + $0x698] sm:$0xff]  ;;  %v610_v56 = vadd.f32 %v609_v58, %v221_v47  ;;  %v562_v21 = vadd.f32 %v561_v8, %v560_v0  ;;  %v462_v39 = vadd.f32 %v461_v63, %v460_v12  ;;  %v2627_v47 = vsel %vm1695_vm1, %v2581_v35, %v2577_v29  ;;  %v6212_v58 = vld [vmem:[%s10018_s2 + $0x2c4] ss:$16 sps:$4 sm:$0xff]   ;;  %v6249_v60 = vld [vmem:[%s10018_s2 + $0x1a0] ss:$16 sps:$4 sm:$0xff]  }
 0x134   :  { %v245_v3 = vld [vmem:[%s10016_s0 + $0x6b8] sm:$0xff]  ;;  %v660_v6 = vadd.f32 %v659_v50, %v241_v54  ;;  %v513_v41 = vrot.slane %v512_v30, 1  ;;  %v66_v0 = vld [vmem:[%s10016_s0 + $0x120] sm:$0xff]  ;;  %v255_v50 = vadd.f32 %v254_v38, %v38_v26  ;;  %3332 = vmatpush1.bf16.msra.mxu1 %v6198_v27  ;;  %v8528_v12 = vsel %vm259_vm0, %v82_v57, 0.0 }
 0x135   :  { %v249_v11 = vld [vmem:[%s10016_s0 + $0x6d8] sm:$0xff]  ;;  %v612_v13 = vadd.f32 %v611_v36, %v610_v56  ;;  %v563_v32 = vrot.slane %v562_v21, 2  ;;  %v682_v36 = vpack.c.bf16 %v410_v23, %v410_v23  ;;  %v686_v54 = vpack.c.bf16 %v462_v39, %v462_v39  ;;  %v46_v17 = vld [vmem:[%s10016_s0 + $0x80] sm:$0xff]  ;;  %3333 = vmatprep.subr.bf16.mxu1 %v6206_v37  ;;  %3309 = vmatpush1.bf16.msra.mxu0 %v6249_v60 }
 0x136   :  { %v661_v22 = vadd.f32 %v660_v6, %v245_v3  ;;  %v514_v52 = vadd.f32 %v513_v41, %v512_v30  ;;  %v86_v56 = vld [vmem:[%s10016_s0 + $0x1c0] sm:$0xff]  ;;  %v256_v9 = vadd.f32 %v255_v50, %v42_v40  ;;  %3310 = vmatprep.subr.bf16.mxu0 %v6257_v5 }
 0x137   :  { %v613_v24 = vrot.slane %v612_v13, 4  ;;  %v564_v45 = vadd.f32 %v563_v32, %v562_v21  ;;  %v2585_v55 = vunpack.c.l.b16 %v682_v36  ;;  %v2589_v4 = vunpack.c.l.b16 %v686_v54  ;;  %v90_v51 = vld [vmem:[%s10016_s0 + $0x1e0] sm:$0xff] }
 0x138   :  { %v662_v33 = vadd.f32 %v661_v22, %v249_v11  ;;  %v690_v3 = vpack.c.bf16 %v514_v52, %v514_v52  ;;  %v110_v11 = vld [vmem:[%s10016_s0 + $0x280] sm:$0x1]  ;;  %v257_v31 = vadd.f32 %v256_v9, %v46_v17  ;;  %v359_v27 = vadd.f32 %v90_v51, %v86_v56  ;;  %3334 = vmatpush1.bf16.msra.mxu1 %v6204_v48  ;;  %v6263_v32 = vld [vmem:[%s10018_s2 + $0x1e4] ss:$16 sps:$4 sm:$0xff]  }
 0x139   :  { %v614_v42 = vadd.f32 %v613_v24, %v612_v13  ;;  %v565_v61 = vrot.slane %v564_v45, 1  ;;  %v2628_v59 = vsel %vm1697_vm2, %v2585_v55, %v2627_v47  ;;  %v6210_v15 = vld [vmem:[%s10018_s2 + $0x2c0] ss:$16 sps:$4 sm:$0xff]   ;;  %v8572_v36 = vsel %vm259_vm0, %v110_v11, 0.0  ;;  %3335 = vmatprep.subr.bf16.mxu1 %v6212_v58  ;;  %v6224_v57 = vld [vmem:[%s10018_s2 + $0x304] ss:$16 sps:$4 sm:$0xff]  }
 0x13a   :  { %v664_v46 = vadd.f32 %v663_v1, %v662_v33  ;;  %v307_v1 = vadd.f32 %v62_v34, %v58_v43  ;;  %v2593_v16 = vunpack.c.l.b16 %v690_v3  ;;  %v2629_v18 = vsel %vm1699_vm3, %v2589_v4, %v2628_v59  ;;  %v50_v19 = vld [vmem:[%s10016_s0 + $0xa0] sm:$0xff] }
 0x13b   :  { %v615_v53 = vrot.slane %v614_v42, 2  ;;  %v566_v8 = vadd.f32 %v565_v61, %v564_v45  ;;  %v74_v20 = vld [vmem:[%s10016_s0 + $0x160] sm:$0xff]  ;;  %v258_v45 = vadd.f32 %v257_v31, %v50_v19 }
 0x13c   :  { %v665_v62 = vrot.slane %v664_v46, 4  ;;  %v94_v21 = vld [vmem:[%s10016_s0 + $0x200] sm:$0xff]  ;;  %v308_v22 = vadd.f32 %v307_v1, %v66_v0  ;;  %v2630_v35 = vsel %vm1701_vm4, %v2593_v16, %v2629_v18  ;;  %3336 = vmatpush1.bf16.msra.mxu1 %v6210_v15 }
 0x13d   :  { %v616_v2 = vadd.f32 %v615_v53, %v614_v42  ;;  %v6255_v29 = vld [vmem:[%s10018_s2 + $0x1c0] ss:$16 sps:$4 sm:$0xff]   ;;  %v694_v23 = vpack.c.bf16 %v566_v8, %v566_v8  ;;  %v261_v1 = vadd.f32 %v8485_v14, %v258_v45  ;;  %3337 = vmatprep.subr.bf16.mxu1 %v6218_v28 }
 0x13e   :  { %v666_v6 = vadd.f32 %v665_v62, %v664_v46  ;;  %v114_v63 = vld [vmem:[%s10016_s0 + $0x2a0] sm:$0xff]  ;;  %v309_v42 = vadd.f32 %v308_v22, %v70_v10  ;;  %v360_v46 = vadd.f32 %v359_v27, %v94_v21  ;;  %3311 = vmatpush1.bf16.msra.mxu0 %v6255_v29  ;;  %v6269_v21 = vld [vmem:[%s10018_s2 + $0xc] ss:$16 sps:$4 sm:$0xff]  }
 0x13f   :  { %v617_v13 = vrot.slane %v616_v2, 1  ;;  %v118_v30 = vld [vmem:[%s10016_s0 + $0x2c0] sm:$0xff]  ;;  %v2597_v43 = vunpack.c.l.b16 %v694_v23  ;;  %v262_v11 = vrot.slane %v261_v1, 4  ;;  %3312 = vmatprep.subr.bf16.mxu0 %v6263_v32 }
 0x140   :  { %v667_v7 = vrot.slane %v666_v6, 2  ;;  %v138_v24 = vld [vmem:[%s10016_s0 + $0x360] sm:$0x1]  ;;  %v310_v54 = vadd.f32 %v309_v42, %v74_v20  ;;  %v411_v55 = vadd.f32 %v118_v30, %v114_v63  ;;  %v6230_v22 = vld [vmem:[%s10018_s2 + $0x324] ss:$16 sps:$4 sm:$0xff]  }
 0x141   :  { %v618_v33 = vadd.f32 %v617_v13, %v616_v2  ;;  %v78_v38 = vld [vmem:[%s10016_s0 + $0x180] sm:$0xff]  ;;  %v8596_v40 = vsel %vm259_vm0, %v138_v24, 0.0  ;;  %v2631_v61 = vsel %vm1703_vm5, %v2597_v43, %v2630_v35 }
 0x142   :  { %v98_v39 = vld [vmem:[%s10016_s0 + $0x220] sm:$0xff]  ;;  %v668_v26 = vadd.f32 %v667_v7, %v666_v6  ;;  %v311_v56 = vadd.f32 %v310_v54, %v78_v38 }
 0x143   :  { %v102_v41 = vld [vmem:[%s10016_s0 + $0x240] sm:$0xff]  ;;  %v698_v48 = vpack.c.bf16 %v618_v33, %v618_v33  ;;  %v361_v2 = vadd.f32 %v360_v46, %v98_v39 }
 0x144   :  { %v122_v34 = vld [vmem:[%s10016_s0 + $0x2e0] sm:$0xff]  ;;  %v669_v60 = vrot.slane %v668_v26, 1  ;;  %v313_v18 = vadd.f32 %v8528_v12, %v311_v56  ;;  %v263_v12 = vadd.f32 %v262_v11, %v261_v1 }
 0x145   :  { %v142_v37 = vld [vmem:[%s10016_s0 + $0x380] sm:$0xff]  ;;  %v2601_v3 = vunpack.c.l.b16 %v698_v48  ;;  %v412_v51 = vadd.f32 %v411_v55, %v122_v34  ;;  %v362_v9 = vadd.f32 %v361_v2, %v102_v41 }
 0x146   :  { %v146_v44 = vld [vmem:[%s10016_s0 + $0x3a0] sm:$0xff]  ;;  %v670_v14 = vadd.f32 %v669_v60, %v668_v26  ;;  %v314_v24 = vrot.slane %v313_v18, 4  ;;  %v264_v39 = vrot.slane %v263_v12, 2 }
 0x147   :  { %v6216_v47 = vld [vmem:[%s10018_s2 + $0x2e0] ss:$16 sps:$4 sm:$0xff]   ;;  %v463_v5 = vadd.f32 %v146_v44, %v142_v37  ;;  %v2632_v16 = vsel %vm1705_vm6, %v2601_v3, %v2631_v61 }
 0x148   :  { %v106_v49 = vld [vmem:[%s10016_s0 + $0x260] sm:$0xff]  ;;  %v702_v28 = vpack.c.bf16 %v670_v14, %v670_v14  ;;  %3338 = vmatpush1.bf16.msra.mxu1 %v6216_v47  ;;  %v315_v37 = vadd.f32 %v314_v24, %v313_v18 }
 0x149   :  { %v126_v52 = vld [vmem:[%s10016_s0 + $0x300] sm:$0xff]  ;;  %v363_v23 = vadd.f32 %v362_v9, %v106_v49  ;;  %3339 = vmatprep.subr.bf16.mxu1 %v6224_v57 }
 0x14a   :  { %v166_v53 = vld [vmem:[%s10016_s0 + $0x440] sm:$0x1]  ;;  %v413_v19 = vadd.f32 %v412_v51, %v126_v52  ;;  %v2605_v33 = vunpack.c.l.b16 %v702_v28  ;;  %v265_v52 = vadd.f32 %v264_v39, %v263_v12  ;;  %v316_v60 = vrot.slane %v315_v37, 2  ;;  %v6242_v18 = vld [vmem:[%s10018_s2 + $0x364] ss:$16 sps:$4 sm:$0xff]  }
 0x14b   :  { %v6261_v58 = vld [vmem:[%s10018_s2 + $0x1e0] ss:$16 sps:$4 sm:$0xff]   ;;  %v468_v15 = vsel %vm259_vm0, %v166_v53, 0.0  ;;  %v365_v41 = vadd.f32 %v8572_v36, %v363_v23  ;;  %v6236_v36 = vld [vmem:[%s10018_s2 + $0x344] ss:$16 sps:$4 sm:$0xff]  }
 0x14c   :  { %v130_v62 = vld [vmem:[%s10016_s0 + $0x320] sm:$0xff]  ;;  %3313 = vmatpush1.bf16.msra.mxu0 %v6261_v58  ;;  %v2633_v47 = vsel %vm1707_vm7, %v2605_v33, %v2632_v16 }
 0x14d   :  { %v150_v0 = vld [vmem:[%s10016_s0 + $0x3c0] sm:$0xff]  ;;  %v414_v31 = vadd.f32 %v413_v19, %v130_v62  ;;  %3364 = vmatprep.subr.bf16.mxu0 %v6269_v21  ;;  %v366_v53 = vrot.slane %v365_v41, 4  ;;  %v8681_v55 = vpack.c.b16 %v2633_v47, %v2633_v47 }
 0x14e   :  { %v154_v50 = vld [vmem:[%s10016_s0 + $0x3e0] sm:$0xff]  ;;  %v464_v20 = vadd.f32 %v463_v5, %v150_v0 }
 0x14f   :  { %v170_v4 = vld [vmem:[%s10016_s0 + $0x460] sm:$0xff]  ;;  %v367_v1 = vadd.f32 %v366_v53, %v365_v41  ;;  %3355 = vmatprep.mubr.bf16.mxu1 %v8681_v55  ;;  %v44_v53 = vld [vmem:[%s10016_s0 + $0x70] sm:$0xff] }
 0x150   :  { %v174_v59 = vld [vmem:[%s10016_s0 + $0x480] sm:$0xff]  ;;  %v465_v27 = vadd.f32 %v464_v20, %v154_v50  ;;  %v266_v50 = vrot.slane %v265_v52, 1 }
 0x151   :  { %v178_v17 = vld [vmem:[%s10016_s0 + $0x4a0] sm:$0xff]  ;;  %v515_v63 = vadd.f32 %v174_v59, %v170_v4  ;;  %v317_v59 = vadd.f32 %v316_v60, %v315_v37 }
 0x152   :  { %v134_v8 = vld [vmem:[%s10016_s0 + $0x340] sm:$0xff]  ;;  %v267_v14 = vadd.f32 %v266_v50, %v265_v52  ;;  %v40_v52 = vld [vmem:[%s10016_s0 + $0x50] sm:$0xff] }
 0x153   :  { %v158_v6 = vld [vmem:[%s10016_s0 + $0x400] sm:$0xff]  ;;  %v516_v42 = vadd.f32 %v515_v63, %v178_v17  ;;  %v415_v44 = vadd.f32 %v414_v31, %v134_v8  ;;  %v368_v8 = vrot.slane %v367_v1, 2  ;;  %v318_v9 = vrot.slane %v317_v59, 1 }
 0x154   :  { %v194_v10 = vld [vmem:[%s10016_s0 + $0x520] sm:$0x1]  ;;  %v466_v45 = vadd.f32 %v465_v27, %v158_v6  ;;  %v671_v33 = vpack.c.bf16 %v267_v14, %v267_v14 }
 0x155   :  { %v6222_v13 = vld [vmem:[%s10018_s2 + $0x300] ss:$16 sps:$4 sm:$0xff]   ;;  %v520_v32 = vsel %vm259_vm0, %v194_v10, 0.0  ;;  %v417_v61 = vadd.f32 %v8596_v40, %v415_v44  ;;  %v369_v20 = vadd.f32 %v368_v8, %v367_v1 }
 0x156   :  { %v198_v29 = vld [vmem:[%s10016_s0 + $0x540] sm:$0xff]  ;;  %3340 = vmatpush1.bf16.msra.mxu1 %v6222_v13 }
 0x157   :  { %v202_v7 = vld [vmem:[%s10016_s0 + $0x560] sm:$0xff]  ;;  %3341 = vmatprep.subr.bf16.mxu1 %v6230_v22  ;;  %v418_v17 = vrot.slane %v417_v61, 4  ;;  %v370_v31 = vrot.slane %v369_v20, 1 }
 0x158   :  { %v182_v30 = vld [vmem:[%s10016_s0 + $0x4c0] sm:$0xff]  ;;  %v567_v46 = vadd.f32 %v202_v7, %v198_v29  ;;  %v319_v7 = vadd.f32 %v318_v9, %v317_v59  ;;  %v84_v9 = vld [vmem:[%s10016_s0 + $0x1b0] sm:$0x1] }
 0x159   :  { %v162_v35 = vld [vmem:[%s10016_s0 + $0x420] sm:$0xff]  ;;  %v517_v54 = vadd.f32 %v516_v42, %v182_v30 }
 0x15a   :  { %v186_v38 = vld [vmem:[%s10016_s0 + $0x4e0] sm:$0xff]  ;;  %v467_v62 = vadd.f32 %v466_v45, %v162_v35  ;;  %v32_v35 = vld [vmem:[%s10016_s0 + $0x10] sm:$0xff]  ;;  %v675_v42 = vpack.c.bf16 %v319_v7, %v319_v7  ;;  %v2574_v45 = vunpack.c.l.b16 %v671_v33  ;;  %v8793_v33 = vsel %vm259_vm0, %v84_v9, 0.0 }
 0x15b   :  { %v6228_v26 = vld [vmem:[%s10018_s2 + $0x320] ss:$16 sps:$4 sm:$0xff]   ;;  %v518_v2 = vadd.f32 %v517_v54, %v186_v38  ;;  %v6248_v30 = vld [vmem:[%s10018_s2 + $0x384] ss:$16 sps:$4 sm:$0xff]  }
 0x15c   :  { %v190_v43 = vld [vmem:[%s10016_s0 + $0x500] sm:$0xff]  ;;  %v469_v56 = vadd.f32 %v468_v15, %v467_v62  ;;  %3342 = vmatpush1.bf16.msra.mxu1 %v6228_v26  ;;  %v419_v15 = vadd.f32 %v418_v17, %v417_v61  ;;  %v36_v26 = vld [vmem:[%s10016_s0 + $0x30] sm:$0xff] }
 0x15d   :  { %v206_v34 = vld [vmem:[%s10016_s0 + $0x580] sm:$0xff]  ;;  %v519_v6 = vadd.f32 %v518_v2, %v190_v43  ;;  %3343 = vmatprep.subr.bf16.mxu1 %v6236_v36  ;;  %v56_v61 = vld [vmem:[%s10016_s0 + $0xd0] sm:$0x1]  ;;  %v281_v62 = vadd.f32 %v36_v26, %v32_v35 }
 0x15e   :  { %v210_v48 = vld [vmem:[%s10016_s0 + $0x5a0] sm:$0xff]  ;;  %v568_v3 = vadd.f32 %v567_v46, %v206_v34  ;;  %v470_v13 = vrot.slane %v469_v56, 4  ;;  %v420_v12 = vrot.slane %v419_v15, 2  ;;  %v371_v34 = vadd.f32 %v370_v31, %v369_v20  ;;  %v72_v20 = vld [vmem:[%s10016_s0 + $0x150] sm:$0xff] }
 0x15f   :  { %v222_v49 = vld [vmem:[%s10016_s0 + $0x600] sm:$0x1]  ;;  %v521_v21 = vadd.f32 %v520_v32, %v519_v6  ;;  %v6254_v54 = vld [vmem:[%s10018_s2 + $0x3a4] ss:$16 sps:$4 sm:$0xff]  }
 0x160   :  { %v214_v57 = vld [vmem:[%s10016_s0 + $0x5c0] sm:$0xff]  ;;  %v572_v40 = vsel %vm259_vm0, %v222_v49, 0.0  ;;  %v569_v10 = vadd.f32 %v568_v3, %v210_v48  ;;  %v471_v23 = vadd.f32 %v470_v13, %v469_v56  ;;  %v421_v38 = vadd.f32 %v420_v12, %v419_v15  ;;  %v48_v3 = vld [vmem:[%s10016_s0 + $0x90] sm:$0xff] }
 0x161   :  { %v226_v58 = vld [vmem:[%s10016_s0 + $0x620] sm:$0xff]  ;;  %v522_v27 = vrot.slane %v521_v21, 4  ;;  %v2578_v49 = vunpack.c.l.b16 %v675_v42  ;;  %v679_v60 = vpack.c.bf16 %v371_v34, %v371_v34  ;;  %v286_v15 = vsel %vm259_vm0, %v56_v61, 0.0  ;;  %v92_v12 = vld [vmem:[%s10016_s0 + $0x1f0] sm:$0xff] }
 0x162   :  { %v230_v0 = vld [vmem:[%s10016_s0 + $0x640] sm:$0xff]  ;;  %v570_v22 = vadd.f32 %v569_v10, %v214_v57  ;;  %v472_v39 = vrot.slane %v471_v23, 2  ;;  %v422_v36 = vrot.slane %v421_v38, 1  ;;  %v52_v10 = vld [vmem:[%s10016_s0 + $0xb0] sm:$0xff] }
 0x163   :  { %v250_v4 = vld [vmem:[%s10016_s0 + $0x6e0] sm:$0x1]  ;;  %v619_v16 = vadd.f32 %v230_v0, %v226_v58  ;;  %v523_v37 = vadd.f32 %v522_v27, %v521_v21  ;;  %v2606_v2 = vsel %vm1695_vm1, %v2578_v49, %v2574_v45  ;;  %v2582_v56 = vunpack.c.l.b16 %v679_v60  ;;  %v6260_v13 = vld [vmem:[%s10018_s2 + $0x3c4] ss:$16 sps:$4 sm:$0xff]   ;;  %v112_v27 = vld [vmem:[%s10016_s0 + $0x290] sm:$0x1] }
 0x164   :  { %v6234_v51 = vld [vmem:[%s10018_s2 + $0x340] ss:$16 sps:$4 sm:$0xff]   ;;  %v624_v28 = vsel %vm259_vm0, %v250_v4, 0.0  ;;  %v473_v47 = vadd.f32 %v472_v39, %v471_v23  ;;  %v423_v0 = vadd.f32 %v422_v36, %v421_v38  ;;  %v390_v60 = vsel %vm259_vm0, %v112_v27, 0.0 }
 0x165   :  { %v234_v5 = vld [vmem:[%s10016_s0 + $0x660] sm:$0xff]  ;;  %3344 = vmatpush1.bf16.msra.mxu1 %v6234_v51  ;;  %v524_v57 = vrot.slane %v523_v37, 2  ;;  %v60_v4 = vld [vmem:[%s10016_s0 + $0xf0] sm:$0xff]  ;;  %v282_v51 = vadd.f32 %v281_v62, %v40_v52 }
 0x166   :  { %v218_v11 = vld [vmem:[%s10016_s0 + $0x5e0] sm:$0xff]  ;;  %v620_v63 = vadd.f32 %v619_v16, %v234_v5  ;;  %3345 = vmatprep.subr.bf16.mxu1 %v6242_v18  ;;  %v474_v50 = vrot.slane %v473_v47, 1  ;;  %v683_v6 = vpack.c.bf16 %v423_v0, %v423_v0  ;;  %v88_v21 = vld [vmem:[%s10016_s0 + $0x1d0] sm:$0xff] }
 0x167   :  { %v238_v19 = vld [vmem:[%s10016_s0 + $0x680] sm:$0xff]  ;;  %v571_v32 = vadd.f32 %v570_v22, %v218_v11  ;;  %v525_v59 = vadd.f32 %v524_v57, %v523_v37  ;;  %v68_v11 = vld [vmem:[%s10016_s0 + $0x130] sm:$0xff]  ;;  %v283_v22 = vadd.f32 %v282_v51, %v44_v53  ;;  %v385_v49 = vadd.f32 %v92_v12, %v88_v21 }
 0x168   :  { %v6240_v29 = vld [vmem:[%s10018_s2 + $0x360] ss:$16 sps:$4 sm:$0xff]   ;;  %v621_v41 = vadd.f32 %v620_v63, %v238_v19  ;;  %v475_v14 = vadd.f32 %v474_v50, %v473_v47  ;;  %v2607_v19 = vsel %vm1697_vm2, %v2582_v56, %v2606_v2  ;;  %v2586_v7 = vunpack.c.l.b16 %v683_v6  ;;  %v6266_v37 = vld [vmem:[%s10018_s2 + $0x3e4] ss:$16 sps:$4 sm:$0xff]  }
 0x169   :  { %v242_v24 = vld [vmem:[%s10016_s0 + $0x6a0] sm:$0xff]  ;;  %v573_v44 = vadd.f32 %v572_v40, %v571_v32  ;;  %3346 = vmatpush1.bf16.msra.mxu1 %v6240_v29  ;;  %v64_v40 = vld [vmem:[%s10016_s0 + $0x110] sm:$0xff]  ;;  %v526_v16 = vrot.slane %v525_v59, 1  ;;  %v284_v32 = vadd.f32 %v283_v22, %v48_v3 }
 0x16a   :  { %v246_v43 = vld [vmem:[%s10016_s0 + $0x6c0] sm:$0xff]  ;;  %v622_v48 = vadd.f32 %v621_v41, %v242_v24  ;;  %3347 = vmatprep.subr.bf16.mxu1 %v6248_v30  ;;  %v687_v29 = vpack.c.bf16 %v475_v14, %v475_v14  ;;  %v96_v23 = vld [vmem:[%s10016_s0 + $0x210] sm:$0xff]  ;;  %v333_v63 = vadd.f32 %v64_v40, %v60_v4  ;;  %v2608_v41 = vsel %vm1699_vm3, %v2586_v7, %v2607_v19 }
 0x16b   :  { %v6246_v46 = vld [vmem:[%s10018_s2 + $0x380] ss:$16 sps:$4 sm:$0xff]   ;;  %v574_v58 = vrot.slane %v573_v44, 4  ;;  %v527_v30 = vadd.f32 %v526_v16, %v525_v59  ;;  %v386_v2 = vadd.f32 %v385_v49, %v96_v23  ;;  %v6272_v23 = vld [vmem:[%s10018_s2 + $0x20c] ss:$16 sps:$4 sm:$0xff]  }
 0x16c   :  { %v623_v1 = vadd.f32 %v622_v48, %v246_v43  ;;  %v6252_v5 = vld [vmem:[%s10018_s2 + $0x3a0] ss:$16 sps:$4 sm:$0xff]   ;;  %v2590_v39 = vunpack.c.l.b16 %v687_v29  ;;  %v334_v34 = vadd.f32 %v333_v63, %v68_v11  ;;  %v285_v48 = vadd.f32 %v284_v32, %v52_v10 }
 0x16d   :  { %v575_v17 = vadd.f32 %v574_v58, %v573_v44  ;;  %3348 = vmatpush1.bf16.msra.mxu1 %v6246_v46  ;;  %v76_v31 = vld [vmem:[%s10016_s0 + $0x170] sm:$0xff]  ;;  %v691_v45 = vpack.c.bf16 %v527_v30, %v527_v30 }
 0x16e   :  { %v625_v8 = vadd.f32 %v624_v28, %v623_v1  ;;  %3349 = vmatprep.subr.bf16.mxu1 %v6254_v54  ;;  %v6258_v35 = vld [vmem:[%s10018_s2 + $0x3c0] ss:$16 sps:$4 sm:$0xff]   ;;  %v2609_v53 = vsel %vm1701_vm4, %v2590_v39, %v2608_v41  ;;  %v335_v58 = vadd.f32 %v334_v34, %v72_v20  ;;  %v287_v1 = vadd.f32 %v286_v15, %v285_v48 }
 0x16f   :  { %v576_v18 = vrot.slane %v575_v17, 2  ;;  %v100_v42 = vld [vmem:[%s10016_s0 + $0x230] sm:$0xff]  ;;  %v2594_v62 = vunpack.c.l.b16 %v691_v45 }
 0x170   :  { %v626_v28 = vrot.slane %v625_v8, 4  ;;  %v116_v26 = vld [vmem:[%s10016_s0 + $0x2b0] sm:$0xff]  ;;  %v336_v40 = vadd.f32 %v335_v58, %v76_v31  ;;  %v288_v9 = vrot.slane %v287_v1, 4  ;;  %v387_v15 = vadd.f32 %v386_v2, %v100_v42 }
 0x171   :  { %v577_v24 = vadd.f32 %v576_v18, %v575_v17  ;;  %v120_v43 = vld [vmem:[%s10016_s0 + $0x2d0] sm:$0xff]  ;;  %3350 = vmatpush1.bf16.msra.mxu1 %v6252_v5 }
 0x172   :  { %v627_v38 = vadd.f32 %v626_v28, %v625_v8  ;;  %v80_v46 = vld [vmem:[%s10016_s0 + $0x190] sm:$0xff]  ;;  %3351 = vmatprep.subr.bf16.mxu1 %v6260_v13  ;;  %v437_v51 = vadd.f32 %v120_v43, %v116_v26  ;;  %v2610_v8 = vsel %vm1703_vm5, %v2594_v62, %v2609_v53  ;;  %v289_v29 = vadd.f32 %v288_v9, %v287_v1 }
 0x173   :  { %v578_v44 = vrot.slane %v577_v24, 1  ;;  %v124_v36 = vld [vmem:[%s10016_s0 + $0x2f0] sm:$0xff]  ;;  %v337_v18 = vadd.f32 %v336_v40, %v80_v46 }
 0x174   :  { %v140_v47 = vld [vmem:[%s10016_s0 + $0x370] sm:$0x1]  ;;  %v628_v52 = vrot.slane %v627_v38, 2  ;;  %v438_v19 = vadd.f32 %v437_v51, %v124_v36  ;;  %v290_v42 = vrot.slane %v289_v29, 2 }
 0x175   :  { %v104_v54 = vld [vmem:[%s10016_s0 + $0x250] sm:$0xff]  ;;  %v579_v61 = vadd.f32 %v578_v44, %v577_v24  ;;  %v8847_v5 = vsel %vm259_vm0, %v140_v47, 0.0  ;;  %3352 = vmatpush1.bf16.msra.mxu1 %v6258_v35  ;;  %v339_v31 = vadd.f32 %v8793_v33, %v337_v18 }
 0x176   :  { %v144_v57 = vld [vmem:[%s10016_s0 + $0x390] sm:$0xff]  ;;  %v629_v4 = vadd.f32 %v628_v52, %v627_v38  ;;  %3353 = vmatprep.subr.bf16.mxu1 %v6266_v37  ;;  %v388_v7 = vadd.f32 %v387_v15, %v104_v54  ;;  %v291_v47 = vadd.f32 %v290_v42, %v289_v29  ;;  %v6275_v15 = vld [vmem:[%s10018_s2 + $0x2c] ss:$16 sps:$4 sm:$0xff]  }
 0x177   :  { %v128_v0 = vld [vmem:[%s10016_s0 + $0x310] sm:$0xff]  ;;  %v695_v14 = vpack.c.bf16 %v579_v61, %v579_v61  ;;  %v340_v44 = vrot.slane %v339_v31, 4 }
 0x178   :  { %v148_v50 = vld [vmem:[%s10016_s0 + $0x3b0] sm:$0xff]  ;;  %v630_v13 = vrot.slane %v629_v4, 1  ;;  %v439_v27 = vadd.f32 %v438_v19, %v128_v0  ;;  %v292_v1 = vrot.slane %v291_v47, 1 }
 0x179   :  { %v6264_v3 = vld [vmem:[%s10018_s2 + $0x3e0] ss:$16 sps:$4 sm:$0xff]   ;;  %v489_v20 = vadd.f32 %v148_v50, %v144_v57  ;;  %v2598_v21 = vunpack.c.l.b16 %v695_v14  ;;  %v341_v61 = vadd.f32 %v340_v44, %v339_v31  ;;  %v6267_v14 = vld [vmem:[%s10018_s2 + $0x8] ss:$16 sps:$4 sm:$0xff]  }
 0x17a   :  { %v108_v59 = vld [vmem:[%s10016_s0 + $0x270] sm:$0xff]  ;;  %v631_v63 = vadd.f32 %v630_v13, %v629_v4  ;;  %3354 = vmatpush1.bf16.msra.mxu1 %v6264_v3 }
 0x17b   :  { %v152_v17 = vld [vmem:[%s10016_s0 + $0x3d0] sm:$0xff]  ;;  %v2611_v35 = vsel %vm1705_vm6, %v2598_v21, %v2610_v8  ;;  %v389_v26 = vadd.f32 %v388_v7, %v108_v59  ;;  %3405 = vmatprep.subr.bf16.mxu1 %v6272_v23  ;;  %v6273_v23 = vld [vmem:[%s10018_s2 + $0x28] ss:$16 sps:$4 sm:$0xff]  }
 0x17c   :  { %v168_v56 = vld [vmem:[%s10016_s0 + $0x450] sm:$0x1]  ;;  %v490_v32 = vadd.f32 %v489_v20, %v152_v17  ;;  %v699_v33 = vpack.c.bf16 %v631_v63, %v631_v63 }
 0x17d   :  { %v132_v6 = vld [vmem:[%s10016_s0 + $0x330] sm:$0xff]  ;;  %v494_v12 = vsel %vm259_vm0, %v168_v56, 0.0  ;;  %v391_v48 = vadd.f32 %v390_v60, %v389_v26  ;;  %v342_v56 = vrot.slane %v341_v61, 2 }
 0x17e   :  { %v156_v10 = vld [vmem:[%s10016_s0 + $0x3f0] sm:$0xff]  ;;  %v440_v45 = vadd.f32 %v439_v27, %v132_v6  ;;  %v2602_v53 = vunpack.c.l.b16 %v699_v33  ;;  %v6281_v27 = vld [vmem:[%s10018_s2 + $0x4c] ss:$16 sps:$4 sm:$0xff]  }
 0x17f   :  { %v172_v11 = vld [vmem:[%s10016_s0 + $0x470] sm:$0xff]  ;;  %v491_v46 = vadd.f32 %v490_v32, %v156_v10  ;;  %v392_v2 = vrot.slane %v391_v48, 4  ;;  %v293_v10 = vadd.f32 %v292_v1, %v291_v47 }
 0x180   :  { %v176_v16 = vld [vmem:[%s10016_s0 + $0x490] sm:$0xff]  ;;  %v2612_v59 = vsel %vm1707_vm7, %v2602_v53, %v2611_v35 }
 0x181   :  { %v136_v22 = vld [vmem:[%s10016_s0 + $0x350] sm:$0xff]  ;;  %v541_v43 = vadd.f32 %v176_v16, %v172_v11  ;;  %v8922_v8 = vpack.c.b16 %v2612_v59, %v2612_v59  ;;  %v393_v11 = vadd.f32 %v392_v2, %v391_v48  ;;  %v343_v16 = vadd.f32 %v342_v56, %v341_v61 }
 0x182   :  { %v160_v28 = vld [vmem:[%s10016_s0 + $0x410] sm:$0xff]  ;;  %v441_v62 = vadd.f32 %v440_v45, %v136_v22  ;;  %v673_v45 = vpack.c.bf16 %v293_v10, %v293_v10 }
 0x183   :  { %v180_v30 = vld [vmem:[%s10016_s0 + $0x4b0] sm:$0xff]  ;;  %v492_v60 = vadd.f32 %v491_v46, %v160_v28  ;;  %3315 = vmatmul.mubr.bf16.vlgmr.msra.gmra.mrb[8].mxu0 %v8922_v8  ;;  %v394_v22 = vrot.slane %v393_v11, 2  ;;  %v344_v63 = vrot.slane %v343_v16, 1  ;;  %v6287_v46 = vld [vmem:[%s10018_s2 + $0x6c] ss:$16 sps:$4 sm:$0xff]  }
 0x184   :  { %v196_v24 = vld [vmem:[%s10016_s0 + $0x530] sm:$0x1]  ;;  %v542_v49 = vadd.f32 %v541_v43, %v180_v30  ;;  %v443_v40 = vadd.f32 %v8847_v5, %v441_v62  ;;  %3365 = vmatpush1.bf16.msra.mxu0 %v6267_v14  ;;  %3396 = vmatprep.mubr.bf16.mxu0 %v8385_v25 }
 0x185   :  { %v164_v38 = vld [vmem:[%s10016_s0 + $0x430] sm:$0xff]  ;;  %v546_v52 = vsel %vm259_vm0, %v196_v24, 0.0  ;;  %v395_v32 = vadd.f32 %v394_v22, %v393_v11  ;;  %3366 = vmatprep.subr.bf16.mxu0 %v6275_v15  ;;  %v345_v42 = vadd.f32 %v344_v63, %v343_v16 }
 0x186   :  { %v184_v39 = vld [vmem:[%s10016_s0 + $0x4d0] sm:$0xff]  ;;  %v493_v51 = vadd.f32 %v492_v60, %v164_v38  ;;  %v444_v18 = vrot.slane %v443_v40, 4 }
 0x187   :  { %v200_v41 = vld [vmem:[%s10016_s0 + $0x550] sm:$0xff]  ;;  %v543_v3 = vadd.f32 %v542_v49, %v184_v39  ;;  %v677_v49 = vpack.c.bf16 %v345_v42, %v345_v42 }
 0x188   :  { %v188_v34 = vld [vmem:[%s10016_s0 + $0x4f0] sm:$0xff]  ;;  %v495_v19 = vadd.f32 %v494_v12, %v493_v51  ;;  %v445_v30 = vadd.f32 %v444_v18, %v443_v40  ;;  %3367 = vmatpush1.bf16.msra.mxu0 %v6273_v23 }
 0x189   :  { %v204_v37 = vld [vmem:[%s10016_s0 + $0x570] sm:$0xff]  ;;  %v544_v9 = vadd.f32 %v543_v3, %v188_v34  ;;  %v6279_v34 = vld [vmem:[%s10018_s2 + $0x48] ss:$16 sps:$4 sm:$0xff]   ;;  %3368 = vmatprep.subr.bf16.mxu0 %v6281_v27  ;;  %v2580_v60 = vunpack.c.l.b16 %v677_v49  ;;  %v6293_v3 = vld [vmem:[%s10018_s2 + $0x8c] ss:$16 sps:$4 sm:$0xff]  }
 0x18a   :  { %v208_v36 = vld [vmem:[%s10016_s0 + $0x590] sm:$0xff]  ;;  %v593_v4 = vadd.f32 %v204_v37, %v200_v41  ;;  %v496_v24 = vrot.slane %v495_v19, 4  ;;  %v446_v26 = vrot.slane %v445_v30, 2  ;;  %v396_v37 = vrot.slane %v395_v32, 1  ;;  %v6305_v27 = vld [vmem:[%s10018_s2 + $0xcc] ss:$16 sps:$4 sm:$0xff]  }
 0x18b   :  { %v192_v54 = vld [vmem:[%s10016_s0 + $0x510] sm:$0xff]  ;;  %v6315_v49 = vld [vmem:[%s10018_s2 + $0x108] ss:$16 sps:$4 sm:$0xff]  }
 0x18c   :  { %v224_v57 = vld [vmem:[%s10016_s0 + $0x610] sm:$0x1]  ;;  %v594_v20 = vadd.f32 %v593_v4, %v208_v36  ;;  %v545_v28 = vadd.f32 %v544_v9, %v192_v54  ;;  %v497_v43 = vadd.f32 %v496_v24, %v495_v19  ;;  %v447_v36 = vadd.f32 %v446_v26, %v445_v30  ;;  %3369 = vmatpush1.bf16.msra.mxu0 %v6279_v34  ;;  %v6291_v9 = vld [vmem:[%s10018_s2 + $0x88] ss:$16 sps:$4 sm:$0xff]  }
 0x18d   :  { %v228_v58 = vld [vmem:[%s10016_s0 + $0x630] sm:$0xff]  ;;  %v598_v29 = vsel %vm259_vm0, %v224_v57, 0.0  ;;  %v2576_v57 = vunpack.c.l.b16 %v673_v45  ;;  %3370 = vmatprep.subr.bf16.mxu0 %v6287_v46  ;;  %v6317_v45 = vld [vmem:[%s10018_s2 + $0x10c] ss:$16 sps:$4 sm:$0xff]  }
 0x18e   :  { %v212_v0 = vld [vmem:[%s10016_s0 + $0x5b0] sm:$0xff]  ;;  %v547_v35 = vadd.f32 %v546_v52, %v545_v28  ;;  %v498_v47 = vrot.slane %v497_v43, 2  ;;  %v397_v52 = vadd.f32 %v396_v37, %v395_v32 }
 0x18f   :  { %v232_v50 = vld [vmem:[%s10016_s0 + $0x650] sm:$0xff]  ;;  %v595_v31 = vadd.f32 %v594_v20, %v212_v0  ;;  %v6285_v0 = vld [vmem:[%s10018_s2 + $0x68] ss:$16 sps:$4 sm:$0xff]   ;;  %v2620_v14 = vsel %vm1695_vm1, %v2580_v60, %v2576_v57 }
 0x190   :  { %v236_v17 = vld [vmem:[%s10016_s0 + $0x670] sm:$0xff]  ;;  %v645_v7 = vadd.f32 %v232_v50, %v228_v58  ;;  %v548_v25 = vrot.slane %v547_v35, 4  ;;  %v448_v58 = vrot.slane %v447_v36, 1  ;;  %v499_v61 = vadd.f32 %v498_v47, %v497_v43  ;;  %3371 = vmatpush1.bf16.msra.mxu0 %v6285_v0  ;;  %v6311_v43 = vld [vmem:[%s10018_s2 + $0xec] ss:$16 sps:$4 sm:$0xff]  }
 0x191   :  { %v216_v6 = vld [vmem:[%s10016_s0 + $0x5d0] sm:$0xff]  ;;  %v681_v2 = vpack.c.bf16 %v397_v52, %v397_v52  ;;  %3372 = vmatprep.subr.bf16.mxu0 %v6293_v3  ;;  %v6323_v52 = vld [vmem:[%s10018_s2 + $0x12c] ss:$16 sps:$4 sm:$0xff]   ;;  %v6321_v57 = vld [vmem:[%s10018_s2 + $0x128] ss:$16 sps:$4 sm:$0xff]  }
 0x192   :  { %v240_v5 = vld [vmem:[%s10016_s0 + $0x690] sm:$0xff]  ;;  %v646_v38 = vadd.f32 %v645_v7, %v236_v17  ;;  %v596_v33 = vadd.f32 %v595_v31, %v216_v6  ;;  %v549_v53 = vadd.f32 %v548_v25, %v547_v35  ;;  %v449_v4 = vadd.f32 %v448_v58, %v447_v36  ;;  %v6297_v7 = vld [vmem:[%s10018_s2 + $0xa8] ss:$16 sps:$4 sm:$0xff]   ;;  %v6329_v58 = vld [vmem:[%s10018_s2 + $0x14c] ss:$16 sps:$4 sm:$0xff]  }
 0x193   :  { %v252_v13 = vld [vmem:[%s10016_s0 + $0x6f0] sm:$0x1]  ;;  %v500_v59 = vrot.slane %v499_v61, 1  ;;  %v2584_v51 = vunpack.c.l.b16 %v681_v2  ;;  %v6309_v25 = vld [vmem:[%s10018_s2 + $0xe8] ss:$16 sps:$4 sm:$0xff]  }
 0x194   :  { %v220_v21 = vld [vmem:[%s10016_s0 + $0x5f0] sm:$0xff]  ;;  %v650_v39 = vsel %vm259_vm0, %v252_v13, 0.0  ;;  %v647_v44 = vadd.f32 %v646_v38, %v240_v5  ;;  %v550_v50 = vrot.slane %v549_v53, 2  ;;  %v685_v11 = vpack.c.bf16 %v449_v4, %v449_v4  ;;  %v6299_v13 = vld [vmem:[%s10018_s2 + $0xac] ss:$16 sps:$4 sm:$0xff]   ;;  %3373 = vmatpush1.bf16.msra.mxu0 %v6291_v9 }
 0x195   :  { %v244_v12 = vld [vmem:[%s10016_s0 + $0x6b0] sm:$0xff]  ;;  %v597_v48 = vadd.f32 %v596_v33, %v220_v21  ;;  %v501_v6 = vadd.f32 %v500_v59, %v499_v61  ;;  %v2621_v20 = vsel %vm1697_vm2, %v2584_v51, %v2620_v14  ;;  %3374 = vmatprep.subr.bf16.mxu0 %v6299_v13  ;;  %v6270_v36 = vld [vmem:[%s10018_s2 + $0x208] ss:$16 sps:$4 sm:$0xff]   ;;  %v6290_v61 = vld [vmem:[%s10018_s2 + $0x26c] ss:$16 sps:$4 sm:$0xff]  }
 0x196   :  { %v248_v41 = vld [vmem:[%s10016_s0 + $0x6d0] sm:$0xff]  ;;  %v648_v54 = vadd.f32 %v647_v44, %v244_v12  ;;  %v551_v56 = vadd.f32 %v550_v50, %v549_v53  ;;  %v2588_v19 = vunpack.c.l.b16 %v685_v11  ;;  %v6276_v53 = vld [vmem:[%s10018_s2 + $0x228] ss:$16 sps:$4 sm:$0xff]   ;;  %v6335_v0 = vld [vmem:[%s10018_s2 + $0x16c] ss:$16 sps:$4 sm:$0xff]  }
 0x197   :  { %v599_v62 = vadd.f32 %v598_v29, %v597_v48  ;;  %v689_v18 = vpack.c.bf16 %v501_v6, %v501_v6  ;;  %v6278_v48 = vld [vmem:[%s10018_s2 + $0x22c] ss:$16 sps:$4 sm:$0xff]   ;;  %v6288_v60 = vld [vmem:[%s10018_s2 + $0x268] ss:$16 sps:$4 sm:$0xff]   ;;  %v9074_v6 = vpop.f32.mrb[0].mxu0 }
 0x198   :  { %v649_v1 = vadd.f32 %v648_v54, %v248_v41  ;;  %v552_v15 = vrot.slane %v551_v56, 1  ;;  %v2622_v63 = vsel %vm1699_vm3, %v2588_v19, %v2621_v20  ;;  %3375 = vmatpush1.bf16.msra.mxu0 %v6297_v7  ;;  %v6303_v41 = vld [vmem:[%s10018_s2 + $0xc8] ss:$16 sps:$4 sm:$0xff]   ;;  %v6284_v54 = vld [vmem:[%s10018_s2 + $0x24c] ss:$16 sps:$4 sm:$0xff]  }
 0x199   :  { %v600_v17 = vrot.slane %v599_v62, 4  ;;  %v2592_v29 = vunpack.c.l.b16 %v689_v18  ;;  %3376 = vmatprep.subr.bf16.mxu0 %v6305_v27  ;;  %v6296_v50 = vld [vmem:[%s10018_s2 + $0x28c] ss:$16 sps:$4 sm:$0xff]   ;;  %v6294_v3 = vld [vmem:[%s10018_s2 + $0x288] ss:$16 sps:$4 sm:$0xff]  }
 0x19a   :  { %v651_v40 = vadd.f32 %v650_v39, %v649_v1  ;;  %v553_v21 = vadd.f32 %v552_v15, %v551_v56  ;;  %v6333_v1 = vld [vmem:[%s10018_s2 + $0x168] ss:$16 sps:$4 sm:$0xff]   ;;  %v6341_v2 = vld [vmem:[%s10018_s2 + $0x18c] ss:$16 sps:$4 sm:$0xff]   ;;  %v6371_v7 = vld [vmem:[%s10020_s4 + $0x24] ss:$16 sps:$4 sm:$0xff]  }
 0x19b   :  { %v601_v10 = vadd.f32 %v600_v17, %v599_v62  ;;  %v2623_v35 = vsel %vm1701_vm4, %v2592_v29, %v2622_v63  ;;  %v6327_v62 = vld [vmem:[%s10018_s2 + $0x148] ss:$16 sps:$4 sm:$0xff]   ;;  %v6302_v4 = vld [vmem:[%s10018_s2 + $0x2ac] ss:$16 sps:$4 sm:$0xff]   ;;  %v6363_v29 = vld [vmem:[%s10020_s4] ss:$16 sps:$4 sm:$0xff]  }
 0x19c   :  { %v652_v5 = vrot.slane %v651_v40, 4  ;;  %v693_v12 = vpack.c.bf16 %v553_v21, %v553_v21  ;;  %3377 = vmatpush1.bf16.msra.mxu0 %v6303_v41  ;;  %v6339_v59 = vld [vmem:[%s10018_s2 + $0x188] ss:$16 sps:$4 sm:$0xff]   ;;  %v6347_v17 = vld [vmem:[%s10018_s2 + $0x1ac] ss:$16 sps:$4 sm:$0xff]  }
 0x19d   :  { %v602_v16 = vrot.slane %v601_v10, 2  ;;  %3378 = vmatprep.subr.bf16.mxu0 %v6311_v43  ;;  %v6300_v56 = vld [vmem:[%s10018_s2 + $0x2a8] ss:$16 sps:$4 sm:$0xff]   ;;  %v6353_v14 = vld [vmem:[%s10018_s2 + $0x1cc] ss:$16 sps:$4 sm:$0xff]  }
 0x19e   :  { %v653_v22 = vadd.f32 %v652_v5, %v651_v40  ;;  %v2596_v31 = vunpack.c.l.b16 %v693_v12  ;;  %v6308_v40 = vld [vmem:[%s10018_s2 + $0x2cc] ss:$16 sps:$4 sm:$0xff]   ;;  %v6345_v51 = vld [vmem:[%s10018_s2 + $0x1a8] ss:$16 sps:$4 sm:$0xff]   ;;  %v6365_v21 = vld [vmem:[%s10020_s4 + $0x4] ss:$16 sps:$4 sm:$0xff]  }
 0x19f   :  { %v603_v28 = vadd.f32 %v602_v16, %v601_v10  ;;  %v9076_v10 = vpop.f32.mrb[1].mxu0  ;;  %v6306_v11 = vld [vmem:[%s10018_s2 + $0x2c8] ss:$16 sps:$4 sm:$0xff]   ;;  %v6314_v15 = vld [vmem:[%s10018_s2 + $0x2ec] ss:$16 sps:$4 sm:$0xff]  }
 0x1a0   :  { %v654_v23 = vrot.slane %v653_v22, 2  ;;  %v2624_v26 = vsel %vm1703_vm5, %v2596_v31, %v2623_v35  ;;  %3379 = vmatpush1.bf16.msra.mxu0 %v6309_v25  ;;  %v2416_v9 = vpop.f32.mrb[2].mxu0  ;;  %v6351_v5 = vld [vmem:[%s10018_s2 + $0x1c8] ss:$16 sps:$4 sm:$0xff]   ;;  %v6359_v16 = vld [vmem:[%s10018_s2 + $0x1ec] ss:$16 sps:$4 sm:$0xff]  }
 0x1a1   :  { %v604_v30 = vrot.slane %v603_v28, 1  ;;  %3380 = vmatprep.subr.bf16.mxu0 %v6317_v45  ;;  %v2417_v13 = vpop.f32.mrb[3].mxu0  ;;  %v6312_v18 = vld [vmem:[%s10018_s2 + $0x2e8] ss:$16 sps:$4 sm:$0xff]   ;;  %v6320_v19 = vld [vmem:[%s10018_s2 + $0x30c] ss:$16 sps:$4 sm:$0xff]  }
 0x1a2   :  { %v655_v24 = vadd.f32 %v654_v23, %v653_v22  ;;  %v6357_v20 = vld [vmem:[%s10018_s2 + $0x1e8] ss:$16 sps:$4 sm:$0xff]   ;;  %v6332_v12 = vld [vmem:[%s10018_s2 + $0x34c] ss:$16 sps:$4 sm:$0xff]   ;;  %v6369_v63 = vld [vmem:[%s10020_s4 + $0x20] ss:$16 sps:$4 sm:$0xff]  }
 0x1a3   :  { %v605_v32 = vadd.f32 %v604_v30, %v603_v28  ;;  %v6318_v22 = vld [vmem:[%s10018_s2 + $0x308] ss:$16 sps:$4 sm:$0xff]   ;;  %v6326_v28 = vld [vmem:[%s10018_s2 + $0x32c] ss:$16 sps:$4 sm:$0xff]   ;;  %v6377_v30 = vld [vmem:[%s10020_s4 + $0x44] ss:$16 sps:$4 sm:$0xff]  }
 0x1a4   :  { %v656_v38 = vrot.slane %v655_v24, 1  ;;  %3381 = vmatpush1.bf16.msra.mxu0 %v6315_v49  ;;  %v6324_v23 = vld [vmem:[%s10018_s2 + $0x328] ss:$16 sps:$4 sm:$0xff]   ;;  %v6338_v31 = vld [vmem:[%s10018_s2 + $0x36c] ss:$16 sps:$4 sm:$0xff]  }
 0x1a5   :  { %v697_v39 = vpack.c.bf16 %v605_v32, %v605_v32  ;;  %3382 = vmatprep.subr.bf16.mxu0 %v6323_v52  ;;  %v6375_v27 = vld [vmem:[%s10020_s4 + $0x40] ss:$16 sps:$4 sm:$0xff]   ;;  %v6336_v32 = vld [vmem:[%s10018_s2 + $0x368] ss:$16 sps:$4 sm:$0xff]   ;;  %v6344_v35 = vld [vmem:[%s10018_s2 + $0x38c] ss:$16 sps:$4 sm:$0xff]  }
 0x1a6   :  { %v657_v42 = vadd.f32 %v656_v38, %v655_v24  ;;  %v6330_v24 = vld [vmem:[%s10018_s2 + $0x348] ss:$16 sps:$4 sm:$0xff]   ;;  %v6381_v38 = vld [vmem:[%s10020_s4 + $0x60] ss:$16 sps:$4 sm:$0xff]   ;;  %v6395_v43 = vld [vmem:[%s10020_s4 + $0xa4] ss:$16 sps:$4 sm:$0xff]  }
 0x1a7   :  { %v2600_v33 = vunpack.c.l.b16 %v697_v39  ;;  %v6389_v39 = vld [vmem:[%s10020_s4 + $0x84] ss:$16 sps:$4 sm:$0xff]   ;;  %v6342_v41 = vld [vmem:[%s10018_s2 + $0x388] ss:$16 sps:$4 sm:$0xff]   ;;  %v6393_v25 = vld [vmem:[%s10020_s4 + $0xa0] ss:$16 sps:$4 sm:$0xff]  }
 0x1a8   :  { %v701_v34 = vpack.c.bf16 %v657_v42, %v657_v42  ;;  %3383 = vmatpush1.bf16.msra.mxu0 %v6321_v57  ;;  %v6350_v42 = vld [vmem:[%s10018_s2 + $0x3ac] ss:$16 sps:$4 sm:$0xff]   ;;  %v6354_v49 = vld [vmem:[%s10018_s2 + $0x3c8] ss:$16 sps:$4 sm:$0xff]   ;;  %v6407_v57 = vld [vmem:[%s10020_s4 + $0xe4] ss:$16 sps:$4 sm:$0xff]  }
 0x1a9   :  { %v2625_v37 = vsel %vm1705_vm6, %v2600_v33, %v2624_v26  ;;  %3384 = vmatprep.subr.bf16.mxu0 %v6329_v58  ;;  %v6387_v26 = vld [vmem:[%s10020_s4 + $0x80] ss:$16 sps:$4 sm:$0xff]   ;;  %v6348_v33 = vld [vmem:[%s10018_s2 + $0x3a8] ss:$16 sps:$4 sm:$0xff]  }
 0x1aa   :  { %v2604_v44 = vunpack.c.l.b16 %v701_v34  ;;  %v6356_v34 = vld [vmem:[%s10018_s2 + $0x3cc] ss:$16 sps:$4 sm:$0xff]   ;;  %v6360_v58 = vld [vmem:[%s10018_s2 + $0x3e8] ss:$16 sps:$4 sm:$0xff]  }
 0x1ac   :  { %v2626_v46 = vsel %vm1707_vm7, %v2604_v44, %v2625_v37  ;;  %3385 = vmatpush1.bf16.msra.mxu0 %v6327_v62  ;;  %v2453_v37 = vpop.f32.mrb[0].mxu1  ;;  %v6413_v62 = vld [vmem:[%s10020_s4 + $0x104] ss:$16 sps:$4 sm:$0xff]  }
 0x1ad   :  { %v9001_v47 = vpack.c.b16 %v2626_v46, %v2626_v46  ;;  %3386 = vmatprep.subr.bf16.mxu0 %v6335_v0  ;;  %v9173_v44 = vadd.f32 %v2453_v37, %v9074_v6  ;;  %v2455_v45 = vpop.f32.mrb[1].mxu1  ;;  %v6401_v46 = vld [vmem:[%s10020_s4 + $0xc4] ss:$16 sps:$4 sm:$0xff]   ;;  %v6374_v0 = vld [vmem:[%s10020_s4 + $0x2c] ss:$16 sps:$4 sm:$0xff]  }
 0x1ae   :  { %v6429_v6 = vld [vmem:[%s10020_s4 + $0x160] ss:$16 sps:$4 sm:$0xff]  }
 0x1af   :  { %3356 = vmatmul.mubr.bf16.vlgmr.msra.gmra.mrb[8].mxu1 %v9001_v47 }
 0x1b0   :  { %3406 = vmatpush1.bf16.msra.mxu1 %v6270_v36  ;;  %3437 = vmatprep.mubr.bf16.mxu1 %v8681_v55  ;;  %v6282_v55 = vld [vmem:[%s10018_s2 + $0x248] ss:$16 sps:$4 sm:$0xff]   ;;  %v9179_v36 = vadd.f32 %v2455_v45, %v9076_v10 }
 0x1b1   :  { %3407 = vmatprep.subr.bf16.mxu1 %v6278_v48  ;;  %3387 = vmatpush1.bf16.msra.mxu0 %v6333_v1  ;;  %v2457_v48 = vpop.f32.mrb[2].mxu1  ;;  %v6419_v1 = vld [vmem:[%s10020_s4 + $0x124] ss:$16 sps:$4 sm:$0xff]  }
 0x1b2   :  { %3388 = vmatprep.subr.bf16.mxu0 %v6341_v2  ;;  %v2458_v52 = vpop.f32.mrb[3].mxu1  ;;  %v6372_v2 = vld [vmem:[%s10020_s4 + $0x28] ss:$16 sps:$4 sm:$0xff]  }
 0x1b4   :  { %3408 = vmatpush1.bf16.msra.mxu1 %v6276_v53  ;;  %v6362_v53 = vld [vmem:[%s10018_s2 + $0x3ec] ss:$16 sps:$4 sm:$0xff]  }
 0x1b5   :  { %3409 = vmatprep.subr.bf16.mxu1 %v6284_v54  ;;  %3389 = vmatpush1.bf16.msra.mxu0 %v6339_v59  ;;  %v6399_v54 = vld [vmem:[%s10020_s4 + $0xc0] ss:$16 sps:$4 sm:$0xff]   ;;  %v6425_v59 = vld [vmem:[%s10020_s4 + $0x144] ss:$16 sps:$4 sm:$0xff]  }
 0x1b6   :  { %3390 = vmatprep.subr.bf16.mxu0 %v6347_v17  ;;  %v6378_v17 = vld [vmem:[%s10020_s4 + $0x48] ss:$16 sps:$4 sm:$0xff]  }
 0x1b8   :  { %3410 = vmatpush1.bf16.msra.mxu1 %v6282_v55  ;;  %v6368_v55 = vld [vmem:[%s10020_s4 + $0xc] ss:$16 sps:$4 sm:$0xff]  }
 0x1b9   :  { %3411 = vmatprep.subr.bf16.mxu1 %v6290_v61  ;;  %3391 = vmatpush1.bf16.msra.mxu0 %v6345_v51  ;;  %v6405_v61 = vld [vmem:[%s10020_s4 + $0xe0] ss:$16 sps:$4 sm:$0xff]   ;;  %v6384_v51 = vld [vmem:[%s10020_s4 + $0x68] ss:$16 sps:$4 sm:$0xff]  }
 0x1ba   :  { %3392 = vmatprep.subr.bf16.mxu0 %v6353_v14  ;;  %v6392_v14 = vld [vmem:[%s10020_s4 + $0x8c] ss:$16 sps:$4 sm:$0xff]  }
 0x1bc   :  { %3412 = vmatpush1.bf16.msra.mxu1 %v6288_v60  ;;  %v6366_v60 = vld [vmem:[%s10020_s4 + $0x8] ss:$16 sps:$4 sm:$0xff]  }
 0x1bd   :  { %3413 = vmatprep.subr.bf16.mxu1 %v6296_v50  ;;  %3393 = vmatpush1.bf16.msra.mxu0 %v6351_v5  ;;  %v6411_v50 = vld [vmem:[%s10020_s4 + $0x100] ss:$16 sps:$4 sm:$0xff]  }
 0x1be   :  { %3394 = vmatprep.subr.bf16.mxu0 %v6359_v16 }
 0x1c0   :  { %3414 = vmatpush1.bf16.msra.mxu1 %v6294_v3  ;;  %v6380_v3 = vld [vmem:[%s10020_s4 + $0x4c] ss:$16 sps:$4 sm:$0xff]  }
 0x1c1   :  { %3415 = vmatprep.subr.bf16.mxu1 %v6302_v4  ;;  %3395 = vmatpush1.bf16.msra.mxu0 %v6357_v20  ;;  %v6417_v4 = vld [vmem:[%s10020_s4 + $0x120] ss:$16 sps:$4 sm:$0xff]  }
 0x1c2   :  { %4266 = vmatprep.subr.bf16.mxu0 %v6365_v21 }
 0x1c4   :  { %3416 = vmatpush1.bf16.msra.mxu1 %v6300_v56  ;;  %3397 = vmatmul.mubr.bf16.vlgmr.msra.gmra.mrb[12].mxu0 %v8922_v8  ;;  %v6383_v8 = vld [vmem:[%s10020_s4 + $0x64] ss:$16 sps:$4 sm:$0xff]   ;;  %v6423_v56 = vld [vmem:[%s10020_s4 + $0x140] ss:$16 sps:$4 sm:$0xff]  }
 0x1c5   :  { %3417 = vmatprep.subr.bf16.mxu1 %v6308_v40  ;;  %4267 = vmatpush1.bf16.msra.mxu0 %v6363_v29  ;;  %v6431_v40 = vld [vmem:[%s10020_s4 + $0x164] ss:$16 sps:$4 sm:$0xff]  }
 0x1c6   :  { %4268 = vmatprep.subr.bf16.mxu0 %v6371_v7 }
 0x1c8   :  { %3418 = vmatpush1.bf16.msra.mxu1 %v6306_v11 }
 0x1c9   :  { %3419 = vmatprep.subr.bf16.mxu1 %v6314_v15  ;;  %4269 = vmatpush1.bf16.msra.mxu0 %v6369_v63 }
 0x1ca   :  { %4270 = vmatprep.subr.bf16.mxu0 %v6377_v30 }
 0x1cc   :  { %3420 = vmatpush1.bf16.msra.mxu1 %v6312_v18 }
 0x1cd   :  { %3421 = vmatprep.subr.bf16.mxu1 %v6320_v19  ;;  %4271 = vmatpush1.bf16.msra.mxu0 %v6375_v27 }
 0x1ce   :  { %4272 = vmatprep.subr.bf16.mxu0 %v6383_v8 }
 0x1d0   :  { %3422 = vmatpush1.bf16.msra.mxu1 %v6318_v22 }
 0x1d1   :  { %3423 = vmatprep.subr.bf16.mxu1 %v6326_v28  ;;  %4273 = vmatpush1.bf16.msra.mxu0 %v6381_v38 }
 0x1d2   :  { %4274 = vmatprep.subr.bf16.mxu0 %v6389_v39 }
 0x1d4   :  { %3424 = vmatpush1.bf16.msra.mxu1 %v6324_v23 }
 0x1d5   :  { %3425 = vmatprep.subr.bf16.mxu1 %v6332_v12  ;;  %4275 = vmatpush1.bf16.msra.mxu0 %v6387_v26 }
 0x1d6   :  { %4276 = vmatprep.subr.bf16.mxu0 %v6395_v43 }
 0x1d8   :  { %3426 = vmatpush1.bf16.msra.mxu1 %v6330_v24 }
 0x1d9   :  { %3427 = vmatprep.subr.bf16.mxu1 %v6338_v31  ;;  %4277 = vmatpush1.bf16.msra.mxu0 %v6393_v25 }
 0x1da   :  { %4278 = vmatprep.subr.bf16.mxu0 %v6401_v46 }
 0x1dc   :  { %3428 = vmatpush1.bf16.msra.mxu1 %v6336_v32 }
 0x1dd   :  { %3429 = vmatprep.subr.bf16.mxu1 %v6344_v35  ;;  %4279 = vmatpush1.bf16.msra.mxu0 %v6399_v54 }
 0x1de   :  { %4280 = vmatprep.subr.bf16.mxu0 %v6407_v57 }
 0x1e0   :  { %3430 = vmatpush1.bf16.msra.mxu1 %v6342_v41 }
 0x1e1   :  { %3431 = vmatprep.subr.bf16.mxu1 %v6350_v42  ;;  %4281 = vmatpush1.bf16.msra.mxu0 %v6405_v61 }
 0x1e2   :  { %4282 = vmatprep.subr.bf16.mxu0 %v6413_v62 }
 0x1e4   :  { %3432 = vmatpush1.bf16.msra.mxu1 %v6348_v33 }
 0x1e5   :  { %3433 = vmatprep.subr.bf16.mxu1 %v6356_v34  ;;  %4283 = vmatpush1.bf16.msra.mxu0 %v6411_v50 }
 0x1e6   :  { %4284 = vmatprep.subr.bf16.mxu0 %v6419_v1 }
 0x1e8   :  { %3434 = vmatpush1.bf16.msra.mxu1 %v6354_v49 }
 0x1e9   :  { %3435 = vmatprep.subr.bf16.mxu1 %v6362_v53  ;;  %4285 = vmatpush1.bf16.msra.mxu0 %v6417_v4 }
 0x1ea   :  { %4286 = vmatprep.subr.bf16.mxu0 %v6425_v59 }
 0x1ec   :  { %3436 = vmatpush1.bf16.msra.mxu1 %v6360_v58 }
 0x1ed   :  { %4348 = vmatprep.subr.bf16.mxu1 %v6368_v55  ;;  %4287 = vmatpush1.bf16.msra.mxu0 %v6423_v56 }
 0x1ef   :  { %3438 = vmatmul.mubr.bf16.vlgmr.msra.gmra.mrb[12].mxu1 %v9001_v47  ;;  %v6386_v47 = vld [vmem:[%s10020_s4 + $0x6c] ss:$16 sps:$4 sm:$0xff]  }
 0x1f0   :  { %4349 = vmatpush1.bf16.msra.mxu1 %v6366_v60 }
 0x1f1   :  { %4350 = vmatprep.subr.bf16.mxu1 %v6374_v0 }
 0x1f4   :  { %4351 = vmatpush1.bf16.msra.mxu1 %v6372_v2 }
 0x1f5   :  { %4352 = vmatprep.subr.bf16.mxu1 %v6380_v3 }
 0x1f8   :  { %4353 = vmatpush1.bf16.msra.mxu1 %v6378_v17 }
 0x1f9   :  { %4354 = vmatprep.subr.bf16.mxu1 %v6386_v47 }
 0x1fa   :  { %13 = vsyncpa [#allocation3], 0  ;;  %4288 = vmatprep.subr.bf16.mxu0 %v6431_v40  ;;  %v6437_v10 = vld [vmem:[%s10020_s4 + $0x184] ss:$16 sps:$4 sm:$0xff]   ;;  %v6390_v11 = vld [vmem:[%s10020_s4 + $0x88] ss:$16 sps:$4 sm:$0xff]   ;;  %v3448_v50 = vlaneseq }
 0x1fb   :  { %v6398_v9 = vld [vmem:[%s10020_s4 + $0xac] ss:$16 sps:$4 sm:$0xff]   ;;  %4289 = vmatpush1.bf16.msra.mxu0 %v6429_v6  ;;  %v6435_v15 = vld [vmem:[%s10020_s4 + $0x180] ss:$16 sps:$4 sm:$0xff]   ;;  %v6443_v5 = vld [vmem:[%s10020_s4 + $0x1a4] ss:$16 sps:$4 sm:$0xff]  }
 0x1fc   :  { %4355 = vmatpush1.bf16.msra.mxu1 %v6384_v51  ;;  %4290 = vmatprep.subr.bf16.mxu0 %v6437_v10  ;;  %v2494_v13 = vpop.f32.mrb[4].mxu0  ;;  %v6396_v16 = vld [vmem:[%s10020_s4 + $0xa8] ss:$16 sps:$4 sm:$0xff]   ;;  %v6404_v19 = vld [vmem:[%s10020_s4 + $0xcc] ss:$16 sps:$4 sm:$0xff]   ;;  %v2535_v33 = vpop.f32.mrb[4].mxu1 }
 0x1fd   :  { %4356 = vmatprep.subr.bf16.mxu1 %v6392_v14  ;;  %v2496_v18 = vpop.f32.mrb[5].mxu0  ;;  %v6441_v20 = vld [vmem:[%s10020_s4 + $0x1a0] ss:$16 sps:$4 sm:$0xff]   ;;  %v6449_v28 = vld [vmem:[%s10020_s4 + $0x1c4] ss:$16 sps:$4 sm:$0xff]   ;;  %v9332_v34 = vadd.f32 %v2535_v33, %v2494_v13  ;;  %v2537_v37 = vpop.f32.mrb[5].mxu1 }
 0x1fe   :  { %v2498_v21 = vpop.f32.mrb[6].mxu0  ;;  %v6402_v29 = vld [vmem:[%s10020_s4 + $0xc8] ss:$16 sps:$4 sm:$0xff]   ;;  %v6410_v7 = vld [vmem:[%s10020_s4 + $0xec] ss:$16 sps:$4 sm:$0xff]   ;;  %v9337_v45 = vadd.f32 %v2537_v37, %v2496_v18  ;;  %v2539_v46 = vpop.f32.mrb[6].mxu1 }
 0x1ff   :  { %4291 = vmatpush1.bf16.msra.mxu0 %v6435_v15  ;;  %v2499_v22 = vpop.f32.mrb[7].mxu0  ;;  %v6447_v23 = vld [vmem:[%s10020_s4 + $0x1c0] ss:$16 sps:$4 sm:$0xff]   ;;  %v6455_v12 = vld [vmem:[%s10020_s4 + $0x1e4] ss:$16 sps:$4 sm:$0xff]   ;;  %v2540_v49 = vpop.f32.mrb[7].mxu1 }
 0x200   :  { %4357 = vmatpush1.bf16.msra.mxu1 %v6390_v11  ;;  %4292 = vmatprep.subr.bf16.mxu0 %v6443_v5  ;;  %v6408_v63 = vld [vmem:[%s10020_s4 + $0xe8] ss:$16 sps:$4 sm:$0xff]   ;;  %v6416_v30 = vld [vmem:[%s10020_s4 + $0x10c] ss:$16 sps:$4 sm:$0xff]   ;;  %v6453_v24 = vld [vmem:[%s10020_s4 + $0x1e0] ss:$16 sps:$4 sm:$0xff]  }
 0x201   :  { %4358 = vmatprep.subr.bf16.mxu1 %v6398_v9  ;;  %v6461_v31 = vld [vmem:[%s10020_s4 + $0x204] ss:$16 sps:$4 sm:$0xff]   ;;  %v6414_v27 = vld [vmem:[%s10020_s4 + $0x108] ss:$16 sps:$4 sm:$0xff]   ;;  %v6422_v8 = vld [vmem:[%s10020_s4 + $0x12c] ss:$16 sps:$4 sm:$0xff]  }
 0x202   :  { %v6420_v32 = vld [vmem:[%s10020_s4 + $0x128] ss:$16 sps:$4 sm:$0xff]   ;;  %v6428_v35 = vld [vmem:[%s10020_s4 + $0x14c] ss:$16 sps:$4 sm:$0xff]   ;;  %v9356_v1 = vshrl.u32 %v3448_v50, 7 }
 0x203   :  { %4293 = vmatpush1.bf16.msra.mxu0 %v6441_v20  ;;  %v6426_v38 = vld [vmem:[%s10020_s4 + $0x148] ss:$16 sps:$4 sm:$0xff]   ;;  %v6434_v39 = vld [vmem:[%s10020_s4 + $0x16c] ss:$16 sps:$4 sm:$0xff]   ;;  %v9364_v3 = vld [vmem:[%s10019_s3] sm:$0xf] }
 0x204   :  { %4359 = vmatpush1.bf16.msra.mxu1 %v6396_v16  ;;  %4294 = vmatprep.subr.bf16.mxu0 %v6449_v28  ;;  %v6432_v41 = vld [vmem:[%s10020_s4 + $0x168] ss:$16 sps:$4 sm:$0xff]   ;;  %v6440_v42 = vld [vmem:[%s10020_s4 + $0x18c] ss:$16 sps:$4 sm:$0xff]   ;;  %v9359_v2 = vsub.s32 0, %v9356_v1  ;;  %v9367_v4 = vsub.s32 1, %v9356_v1 }
 0x205   :  { %4360 = vmatprep.subr.bf16.mxu1 %v6404_v19  ;;  %v6438_v26 = vld [vmem:[%s10020_s4 + $0x188] ss:$16 sps:$4 sm:$0xff]   ;;  %v6446_v43 = vld [vmem:[%s10020_s4 + $0x1ac] ss:$16 sps:$4 sm:$0xff]   ;;  %v6459_v11 = vld [vmem:[%s10020_s4 + $0x200] ss:$16 sps:$4 sm:$0xff]  }
 0x206   :  { %v6444_v25 = vld [vmem:[%s10020_s4 + $0x1a8] ss:$16 sps:$4 sm:$0xff]   ;;  %v6452_v48 = vld [vmem:[%s10020_s4 + $0x1cc] ss:$16 sps:$4 sm:$0xff]   ;;  %v3455_v59 = vrot.slane %v9364_v3, %v9367_v4  ;;  %v6467_v5 = vld [vmem:[%s10020_s4 + $0x224] ss:$16 sps:$4 sm:$0xff]  }
 0x207   :  { %4295 = vmatpush1.bf16.msra.mxu0 %v6447_v23  ;;  %v6450_v52 = vld [vmem:[%s10020_s4 + $0x1c8] ss:$16 sps:$4 sm:$0xff]   ;;  %v6458_v53 = vld [vmem:[%s10020_s4 + $0x1ec] ss:$16 sps:$4 sm:$0xff]   ;;  %v6465_v16 = vld [vmem:[%s10020_s4 + $0x220] ss:$16 sps:$4 sm:$0xff]  }
 0x208   :  { %4361 = vmatpush1.bf16.msra.mxu1 %v6402_v29  ;;  %4296 = vmatprep.subr.bf16.mxu0 %v6455_v12  ;;  %v6456_v54 = vld [vmem:[%s10020_s4 + $0x1e8] ss:$16 sps:$4 sm:$0xff]   ;;  %v6464_v57 = vld [vmem:[%s10020_s4 + $0x20c] ss:$16 sps:$4 sm:$0xff]   ;;  %v6473_v19 = vld [vmem:[%s10020_s4 + $0x244] ss:$16 sps:$4 sm:$0xff]  }
 0x209   :  { %4362 = vmatprep.subr.bf16.mxu1 %v6410_v7  ;;  %v6462_v9 = vld [vmem:[%s10020_s4 + $0x208] ss:$16 sps:$4 sm:$0xff]   ;;  %v6470_v13 = vld [vmem:[%s10020_s4 + $0x22c] ss:$16 sps:$4 sm:$0xff]   ;;  %v6471_v21 = vld [vmem:[%s10020_s4 + $0x240] ss:$16 sps:$4 sm:$0xff]  }
 0x20a   :  { %v6468_v18 = vld [vmem:[%s10020_s4 + $0x228] ss:$16 sps:$4 sm:$0xff]   ;;  %v6476_v20 = vld [vmem:[%s10020_s4 + $0x24c] ss:$16 sps:$4 sm:$0xff]   ;;  %v6479_v28 = vld [vmem:[%s10020_s4 + $0x264] ss:$16 sps:$4 sm:$0xff]  }
 0x20b   :  { %4297 = vmatpush1.bf16.msra.mxu0 %v6453_v24  ;;  %v6474_v22 = vld [vmem:[%s10020_s4 + $0x248] ss:$16 sps:$4 sm:$0xff]   ;;  %v6482_v29 = vld [vmem:[%s10020_s4 + $0x26c] ss:$16 sps:$4 sm:$0xff]   ;;  %v6477_v7 = vld [vmem:[%s10020_s4 + $0x260] ss:$16 sps:$4 sm:$0xff]  }
 0x20c   :  { %4363 = vmatpush1.bf16.msra.mxu1 %v6408_v63  ;;  %4307 = vmatprep.subr.bf16.mxu0 %v6461_v31  ;;  %v6480_v23 = vld [vmem:[%s10020_s4 + $0x268] ss:$16 sps:$4 sm:$0xff]   ;;  %v6485_v12 = vld [vmem:[%s10020_s4 + $0x284] ss:$16 sps:$4 sm:$0xff]   ;;  %v6488_v63 = vld [vmem:[%s10020_s4 + $0x28c] ss:$16 sps:$4 sm:$0xff]  }
 0x20d   :  { %4364 = vmatprep.subr.bf16.mxu1 %v6416_v30  ;;  %v6483_v30 = vld [vmem:[%s10020_s4 + $0x280] ss:$16 sps:$4 sm:$0xff]   ;;  %v6486_v24 = vld [vmem:[%s10020_s4 + $0x288] ss:$16 sps:$4 sm:$0xff]   ;;  %v6491_v31 = vld [vmem:[%s10020_s4 + $0x2a4] ss:$16 sps:$4 sm:$0xff]  }
 0x20e   :  { %v6501_v33 = vld [vmem:[%s10020_s4 + $0x2e0] ss:$16 sps:$4 sm:$0xff]   ;;  %v6504_v37 = vld [vmem:[%s10020_s4 + $0x2e8] ss:$16 sps:$4 sm:$0xff]   ;;  %v6512_v49 = vld [vmem:[%s10020_s4 + $0x30c] ss:$16 sps:$4 sm:$0xff]  }
 0x20f   :  { %v6522_v50 = vld [vmem:[%s10020_s4 + $0x348] ss:$16 sps:$4 sm:$0xff]  }
 0x210   :  { %4365 = vmatpush1.bf16.msra.mxu1 %v6414_v27  ;;  %v6494_v27 = vld [vmem:[%s10020_s4 + $0x2ac] ss:$16 sps:$4 sm:$0xff]  }
 0x211   :  { %4366 = vmatprep.subr.bf16.mxu1 %v6422_v8  ;;  %v6489_v8 = vld [vmem:[%s10020_s4 + $0x2a0] ss:$16 sps:$4 sm:$0xff]  }
 0x214   :  { %4367 = vmatpush1.bf16.msra.mxu1 %v6420_v32  ;;  %v6492_v32 = vld [vmem:[%s10020_s4 + $0x2a8] ss:$16 sps:$4 sm:$0xff]  }
 0x215   :  { %4368 = vmatprep.subr.bf16.mxu1 %v6428_v35  ;;  %v6497_v35 = vld [vmem:[%s10020_s4 + $0x2c4] ss:$16 sps:$4 sm:$0xff]  }
 0x218   :  { %4369 = vmatpush1.bf16.msra.mxu1 %v6426_v38  ;;  %v6500_v38 = vld [vmem:[%s10020_s4 + $0x2cc] ss:$16 sps:$4 sm:$0xff]  }
 0x219   :  { %4370 = vmatprep.subr.bf16.mxu1 %v6434_v39  ;;  %v6495_v39 = vld [vmem:[%s10020_s4 + $0x2c0] ss:$16 sps:$4 sm:$0xff]  }
 0x21c   :  { %4371 = vmatpush1.bf16.msra.mxu1 %v6432_v41  ;;  %v6498_v41 = vld [vmem:[%s10020_s4 + $0x2c8] ss:$16 sps:$4 sm:$0xff]  }
 0x21d   :  { %4372 = vmatprep.subr.bf16.mxu1 %v6440_v42  ;;  %v6503_v42 = vld [vmem:[%s10020_s4 + $0x2e4] ss:$16 sps:$4 sm:$0xff]  }
 0x220   :  { %4373 = vmatpush1.bf16.msra.mxu1 %v6438_v26  ;;  %v6506_v26 = vld [vmem:[%s10020_s4 + $0x2ec] ss:$16 sps:$4 sm:$0xff]  }
 0x221   :  { %4374 = vmatprep.subr.bf16.mxu1 %v6446_v43 }
 0x224   :  { %4375 = vmatpush1.bf16.msra.mxu1 %v6444_v25 }
 0x225   :  { %4376 = vmatprep.subr.bf16.mxu1 %v6452_v48  ;;  %v6509_v48 = vld [vmem:[%s10020_s4 + $0x304] ss:$16 sps:$4 sm:$0xff]  }
 0x228   :  { %4377 = vmatpush1.bf16.msra.mxu1 %v6450_v52 }
 0x229   :  { %4378 = vmatprep.subr.bf16.mxu1 %v6458_v53 }
 0x22c   :  { %4379 = vmatpush1.bf16.msra.mxu1 %v6456_v54 }
 0x22d   :  { %4389 = vmatprep.subr.bf16.mxu1 %v6464_v57  ;;  %v6510_v57 = vld [vmem:[%s10020_s4 + $0x308] ss:$16 sps:$4 sm:$0xff]  }
 0x256   :  { %v3316_v58 = vpop.f32.mrb[8].mxu0 }
 0x257   :  { %v3317_v55 = vadd.f32 %v3316_v58, %v9173_v44  ;;  %v3318_v61 = vpop.f32.mrb[9].mxu0  ;;  %v3451_v44 = vrot.slane %v9364_v3, %v9359_v2  ;;  %v6515_v58 = vld [vmem:[%s10020_s4 + $0x324] ss:$16 sps:$4 sm:$0xff]  }
 0x258   :  { %v3319_v62 = vadd.f32 %v3318_v61, %v9179_v36  ;;  %v3320_v60 = vpop.f32.mrb[10].mxu0  ;;  %v6516_v61 = vld [vmem:[%s10020_s4 + $0x328] ss:$16 sps:$4 sm:$0xff]  }
 0x259   :  { %v3321_v0 = vpop.f32.mrb[11].mxu0  ;;  %v6524_v60 = vld [vmem:[%s10020_s4 + $0x34c] ss:$16 sps:$4 sm:$0xff]  }
 0x25a   :  { %v6519_v0 = vld [vmem:[%s10020_s4 + $0x340] ss:$16 sps:$4 sm:$0xff]  }
 0x282   :  { %v3357_v36 = vpop.f32.mrb[8].mxu1 }
 0x283   :  { %v3358_v17 = vadd.f32 %v3357_v36, %v3317_v55  ;;  %v3359_v47 = vpop.f32.mrb[9].mxu1  ;;  %v6513_v55 = vld [vmem:[%s10020_s4 + $0x320] ss:$16 sps:$4 sm:$0xff]   ;;  %v6530_v36 = vld [vmem:[%s10020_s4 + $0x36c] ss:$16 sps:$4 sm:$0xff]  }
 0x284   :  { %v3360_v56 = vadd.f32 %v3359_v47, %v3319_v62  ;;  %v3361_v40 = vpop.f32.mrb[10].mxu1  ;;  %v6521_v62 = vld [vmem:[%s10020_s4 + $0x344] ss:$16 sps:$4 sm:$0xff]  }
 0x285   :  { %v9373_v51 = vadd.f32 %v3451_v44, %v3358_v17  ;;  %v3362_v14 = vpop.f32.mrb[11].mxu1  ;;  %v6527_v44 = vld [vmem:[%s10020_s4 + $0x364] ss:$16 sps:$4 sm:$0xff]   ;;  %v6528_v17 = vld [vmem:[%s10020_s4 + $0x368] ss:$16 sps:$4 sm:$0xff]  }
 0x286   :  { %v9375_v6 = vadd.f32 %v3455_v59, %v3360_v56  ;;  %v6525_v59 = vld [vmem:[%s10020_s4 + $0x360] ss:$16 sps:$4 sm:$0xff]   ;;  %v6533_v47 = vld [vmem:[%s10020_s4 + $0x384] ss:$16 sps:$4 sm:$0xff]   ;;  %v6536_v56 = vld [vmem:[%s10020_s4 + $0x38c] ss:$16 sps:$4 sm:$0xff]  }
 0x287   :  { %v3472_v15 = vpack.c.bf16 %v9373_v51, %v9373_v51  ;;  %v6531_v40 = vld [vmem:[%s10020_s4 + $0x380] ss:$16 sps:$4 sm:$0xff]   ;;  %v6534_v14 = vld [vmem:[%s10020_s4 + $0x388] ss:$16 sps:$4 sm:$0xff]  }
 0x288   :  { %v3473_v10 = vpack.c.bf16 %v9375_v6, %v9375_v6 }
 0x28a   :  { %4298 = vmatprep.mubr.bf16.mxu0 %v3473_v10  ;;  %4380 = vmatprep.mubr.bf16.mxu1 %v3473_v10  ;;  %v6539_v10 = vld [vmem:[%s10020_s4 + $0x3a4] ss:$16 sps:$4 sm:$0xff]  }
 0x28b   :  { %4299 = vmatmul.mubr.bf16.vlgmr.msra.gmra.mrb[16].mxu0 %v3472_v15  ;;  %4381 = vmatmul.mubr.bf16.vlgmr.msra.gmra.mrb[16].mxu1 %v3472_v15  ;;  %v6540_v15 = vld [vmem:[%s10020_s4 + $0x3a8] ss:$16 sps:$4 sm:$0xff]  }
 0x28c   :  { %4308 = vmatpush1.bf16.msra.mxu0 %v6459_v11  ;;  %4390 = vmatpush1.bf16.msra.mxu1 %v6462_v9  ;;  %v6542_v11 = vld [vmem:[%s10020_s4 + $0x3ac] ss:$16 sps:$4 sm:$0xff]   ;;  %v6537_v9 = vld [vmem:[%s10020_s4 + $0x3a0] ss:$16 sps:$4 sm:$0xff]  }
 0x28d   :  { %4309 = vmatprep.subr.bf16.mxu0 %v6467_v5  ;;  %4391 = vmatprep.subr.bf16.mxu1 %v6470_v13  ;;  %v9550_v5 = vsub.s32 2, %v9356_v1  ;;  %v6545_v13 = vld [vmem:[%s10020_s4 + $0x3c4] ss:$16 sps:$4 sm:$0xff]  }
 0x290   :  { %4310 = vmatpush1.bf16.msra.mxu0 %v6465_v16  ;;  %4392 = vmatpush1.bf16.msra.mxu1 %v6468_v18  ;;  %v6548_v16 = vld [vmem:[%s10020_s4 + $0x3cc] ss:$16 sps:$4 sm:$0xff]   ;;  %v9559_v18 = vsub.s32 3, %v9356_v1  ;;  %v6551_v1 = vld [vmem:[%s10020_s4 + $0x3e4] ss:$16 sps:$4 sm:$0xff]  }
 0x291   :  { %4311 = vmatprep.subr.bf16.mxu0 %v6473_v19  ;;  %4393 = vmatprep.subr.bf16.mxu1 %v6476_v20  ;;  %v6543_v19 = vld [vmem:[%s10020_s4 + $0x3c0] ss:$16 sps:$4 sm:$0xff]   ;;  %v6546_v20 = vld [vmem:[%s10020_s4 + $0x3c8] ss:$16 sps:$4 sm:$0xff]  }
 0x294   :  { %4312 = vmatpush1.bf16.msra.mxu0 %v6471_v21  ;;  %4394 = vmatpush1.bf16.msra.mxu1 %v6474_v22  ;;  %v3459_v21 = vrot.slane %v9364_v3, %v9550_v5  ;;  %v6554_v22 = vld [vmem:[%s10020_s4 + $0x3ec] ss:$16 sps:$4 sm:$0xff]  }
 0x295   :  { %4313 = vmatprep.subr.bf16.mxu0 %v6479_v28  ;;  %4395 = vmatprep.subr.bf16.mxu1 %v6482_v29  ;;  %v3463_v29 = vrot.slane %v9364_v3, %v9559_v18  ;;  %v6557_v3 = vld [vmem:[%s10022_s6 + $0x4] ss:$16 sps:$4 sm:$0xff]  }
 0x297   :  { %v3398_v43 = vpop.f32.mrb[12].mxu0 }
 0x298   :  { %4314 = vmatpush1.bf16.msra.mxu0 %v6477_v7  ;;  %4396 = vmatpush1.bf16.msra.mxu1 %v6480_v23  ;;  %v9472_v25 = vadd.f32 %v3398_v43, %v9332_v34  ;;  %v3400_v46 = vpop.f32.mrb[13].mxu0  ;;  %v6507_v34 = vld [vmem:[%s10020_s4 + $0x300] ss:$16 sps:$4 sm:$0xff]  }
 0x299   :  { %4315 = vmatprep.subr.bf16.mxu0 %v6485_v12  ;;  %4397 = vmatprep.subr.bf16.mxu1 %v6488_v63  ;;  %v9481_v52 = vadd.f32 %v3400_v46, %v9337_v45  ;;  %v3402_v53 = vpop.f32.mrb[14].mxu0  ;;  %v6518_v45 = vld [vmem:[%s10020_s4 + $0x32c] ss:$16 sps:$4 sm:$0xff]   ;;  %v6561_v43 = vld [vmem:[%s10022_s6 + $0x20] ss:$16 sps:$4 sm:$0xff]  }
 0x29a   :  { %v3403_v54 = vpop.f32.mrb[15].mxu0  ;;  %v6567_v46 = vld [vmem:[%s10022_s6 + $0x40] ss:$16 sps:$4 sm:$0xff]  }
 0x29b   :  { %v6573_v53 = vld [vmem:[%s10022_s6 + $0x60] ss:$16 sps:$4 sm:$0xff]   ;;  %v6576_v54 = vld [vmem:[%s10022_s6 + $0x68] ss:$16 sps:$4 sm:$0xff]  }
 0x29c   :  { %4316 = vmatpush1.bf16.msra.mxu0 %v6483_v30  ;;  %4398 = vmatpush1.bf16.msra.mxu1 %v6486_v24  ;;  %v6549_v30 = vld [vmem:[%s10020_s4 + $0x3e0] ss:$16 sps:$4 sm:$0xff]   ;;  %v6552_v24 = vld [vmem:[%s10020_s4 + $0x3e8] ss:$16 sps:$4 sm:$0xff]  }
 0x29d   :  { %4317 = vmatprep.subr.bf16.mxu0 %v6491_v31  ;;  %4399 = vmatprep.subr.bf16.mxu1 %v6494_v27 }
 0x2a0   :  { %4318 = vmatpush1.bf16.msra.mxu0 %v6489_v8  ;;  %4400 = vmatpush1.bf16.msra.mxu1 %v6492_v32  ;;  %v6560_v8 = vld [vmem:[%s10022_s6 + $0xc] ss:$16 sps:$4 sm:$0xff]  }
 0x2a1   :  { %4319 = vmatprep.subr.bf16.mxu0 %v6497_v35  ;;  %4401 = vmatprep.subr.bf16.mxu1 %v6500_v38  ;;  %v6555_v38 = vld [vmem:[%s10022_s6] ss:$16 sps:$4 sm:$0xff]  }
 0x2a4   :  { %4320 = vmatpush1.bf16.msra.mxu0 %v6495_v39  ;;  %4402 = vmatpush1.bf16.msra.mxu1 %v6498_v41  ;;  %v6558_v39 = vld [vmem:[%s10022_s6 + $0x8] ss:$16 sps:$4 sm:$0xff]  }
 0x2a5   :  { %4321 = vmatprep.subr.bf16.mxu0 %v6503_v42  ;;  %4403 = vmatprep.subr.bf16.mxu1 %v6506_v26  ;;  %v6563_v42 = vld [vmem:[%s10022_s6 + $0x24] ss:$16 sps:$4 sm:$0xff]   ;;  %v6566_v26 = vld [vmem:[%s10022_s6 + $0x2c] ss:$16 sps:$4 sm:$0xff]  }
 0x2a8   :  { %4322 = vmatpush1.bf16.msra.mxu0 %v6501_v33  ;;  %4404 = vmatpush1.bf16.msra.mxu1 %v6504_v37  ;;  %v6564_v33 = vld [vmem:[%s10022_s6 + $0x28] ss:$16 sps:$4 sm:$0xff]   ;;  %v6569_v37 = vld [vmem:[%s10022_s6 + $0x44] ss:$16 sps:$4 sm:$0xff]  }
 0x2a9   :  { %4323 = vmatprep.subr.bf16.mxu0 %v6509_v48  ;;  %4405 = vmatprep.subr.bf16.mxu1 %v6512_v49  ;;  %v6570_v48 = vld [vmem:[%s10022_s6 + $0x48] ss:$16 sps:$4 sm:$0xff]   ;;  %v6575_v49 = vld [vmem:[%s10022_s6 + $0x64] ss:$16 sps:$4 sm:$0xff]  }
 0x2ac   :  { %4324 = vmatpush1.bf16.msra.mxu0 %v6507_v34  ;;  %4406 = vmatpush1.bf16.msra.mxu1 %v6510_v57  ;;  %v6581_v34 = vld [vmem:[%s10022_s6 + $0x84] ss:$16 sps:$4 sm:$0xff]   ;;  %v6584_v57 = vld [vmem:[%s10022_s6 + $0x8c] ss:$16 sps:$4 sm:$0xff]  }
 0x2ad   :  { %4325 = vmatprep.subr.bf16.mxu0 %v6515_v58  ;;  %4407 = vmatprep.subr.bf16.mxu1 %v6518_v45  ;;  %v6579_v58 = vld [vmem:[%s10022_s6 + $0x80] ss:$16 sps:$4 sm:$0xff]   ;;  %v6582_v45 = vld [vmem:[%s10022_s6 + $0x88] ss:$16 sps:$4 sm:$0xff]  }
 0x2b0   :  { %4326 = vmatpush1.bf16.msra.mxu0 %v6513_v55  ;;  %4408 = vmatpush1.bf16.msra.mxu1 %v6516_v61  ;;  %v6587_v55 = vld [vmem:[%s10022_s6 + $0xa4] ss:$16 sps:$4 sm:$0xff]   ;;  %v6590_v61 = vld [vmem:[%s10022_s6 + $0xac] ss:$16 sps:$4 sm:$0xff]  }
 0x2b1   :  { %4327 = vmatprep.subr.bf16.mxu0 %v6521_v62  ;;  %4409 = vmatprep.subr.bf16.mxu1 %v6524_v60  ;;  %v6585_v62 = vld [vmem:[%s10022_s6 + $0xa0] ss:$16 sps:$4 sm:$0xff]   ;;  %v6588_v60 = vld [vmem:[%s10022_s6 + $0xa8] ss:$16 sps:$4 sm:$0xff]  }
 0x2b4   :  { %4328 = vmatpush1.bf16.msra.mxu0 %v6519_v0  ;;  %4410 = vmatpush1.bf16.msra.mxu1 %v6522_v50  ;;  %v6593_v0 = vld [vmem:[%s10022_s6 + $0xc4] ss:$16 sps:$4 sm:$0xff]   ;;  %v6596_v50 = vld [vmem:[%s10022_s6 + $0xcc] ss:$16 sps:$4 sm:$0xff]  }
 0x2b5   :  { %4329 = vmatprep.subr.bf16.mxu0 %v6527_v44  ;;  %4411 = vmatprep.subr.bf16.mxu1 %v6530_v36  ;;  %v6591_v44 = vld [vmem:[%s10022_s6 + $0xc0] ss:$16 sps:$4 sm:$0xff]   ;;  %v6594_v36 = vld [vmem:[%s10022_s6 + $0xc8] ss:$16 sps:$4 sm:$0xff]  }
 0x2b8   :  { %4330 = vmatpush1.bf16.msra.mxu0 %v6525_v59  ;;  %4412 = vmatpush1.bf16.msra.mxu1 %v6528_v17  ;;  %v6599_v59 = vld [vmem:[%s10022_s6 + $0xe4] ss:$16 sps:$4 sm:$0xff]   ;;  %v6602_v17 = vld [vmem:[%s10022_s6 + $0xec] ss:$16 sps:$4 sm:$0xff]  }
 0x2b9   :  { %4331 = vmatprep.subr.bf16.mxu0 %v6533_v47  ;;  %4413 = vmatprep.subr.bf16.mxu1 %v6536_v56  ;;  %v6597_v47 = vld [vmem:[%s10022_s6 + $0xe0] ss:$16 sps:$4 sm:$0xff]   ;;  %v6600_v56 = vld [vmem:[%s10022_s6 + $0xe8] ss:$16 sps:$4 sm:$0xff]  }
 0x2bc   :  { %4332 = vmatpush1.bf16.msra.mxu0 %v6531_v40  ;;  %4414 = vmatpush1.bf16.msra.mxu1 %v6534_v14  ;;  %v6605_v40 = vld [vmem:[%s10022_s6 + $0x104] ss:$16 sps:$4 sm:$0xff]   ;;  %v6608_v14 = vld [vmem:[%s10022_s6 + $0x10c] ss:$16 sps:$4 sm:$0xff]  }
 0x2bd   :  { %4333 = vmatprep.subr.bf16.mxu0 %v6539_v10  ;;  %4415 = vmatprep.subr.bf16.mxu1 %v6542_v11  ;;  %v6603_v10 = vld [vmem:[%s10022_s6 + $0x100] ss:$16 sps:$4 sm:$0xff]   ;;  %v6606_v11 = vld [vmem:[%s10022_s6 + $0x108] ss:$16 sps:$4 sm:$0xff]  }
 0x2c0   :  { %4334 = vmatpush1.bf16.msra.mxu0 %v6537_v9  ;;  %4416 = vmatpush1.bf16.msra.mxu1 %v6540_v15  ;;  %v6611_v9 = vld [vmem:[%s10022_s6 + $0x124] ss:$16 sps:$4 sm:$0xff]   ;;  %v6614_v15 = vld [vmem:[%s10022_s6 + $0x12c] ss:$16 sps:$4 sm:$0xff]  }
 0x2c1   :  { %4335 = vmatprep.subr.bf16.mxu0 %v6545_v13  ;;  %4417 = vmatprep.subr.bf16.mxu1 %v6548_v16  ;;  %v6609_v13 = vld [vmem:[%s10022_s6 + $0x120] ss:$16 sps:$4 sm:$0xff]   ;;  %v6612_v16 = vld [vmem:[%s10022_s6 + $0x128] ss:$16 sps:$4 sm:$0xff]  }
 0x2c2   :  { %v3439_v28 = vpop.f32.mrb[12].mxu1 }
 0x2c3   :  { %v3440_v7 = vadd.f32 %v3439_v28, %v9472_v25  ;;  %v3441_v23 = vpop.f32.mrb[13].mxu1  ;;  %v6572_v25 = vld [vmem:[%s10022_s6 + $0x4c] ss:$16 sps:$4 sm:$0xff]  }
 0x2c4   :  { %v3442_v12 = vadd.f32 %v3441_v23, %v9481_v52  ;;  %v3443_v63 = vpop.f32.mrb[14].mxu1  ;;  %4336 = vmatpush1.bf16.msra.mxu0 %v6543_v19  ;;  %4418 = vmatpush1.bf16.msra.mxu1 %v6546_v20  ;;  %v6578_v52 = vld [vmem:[%s10022_s6 + $0x6c] ss:$16 sps:$4 sm:$0xff]   ;;  %v6617_v19 = vld [vmem:[%s10022_s6 + $0x144] ss:$16 sps:$4 sm:$0xff]  }
 0x2c5   :  { %v9585_v31 = vadd.f32 %v3459_v21, %v3440_v7  ;;  %v3444_v27 = vpop.f32.mrb[15].mxu1  ;;  %4337 = vmatprep.subr.bf16.mxu0 %v6551_v1  ;;  %4419 = vmatprep.subr.bf16.mxu1 %v6554_v22  ;;  %v6620_v20 = vld [vmem:[%s10022_s6 + $0x14c] ss:$16 sps:$4 sm:$0xff]   ;;  %v6615_v21 = vld [vmem:[%s10022_s6 + $0x140] ss:$16 sps:$4 sm:$0xff]  }
 0x2c6   :  { %v9593_v32 = vadd.f32 %v3463_v29, %v3442_v12  ;;  %v6618_v1 = vld [vmem:[%s10022_s6 + $0x148] ss:$16 sps:$4 sm:$0xff]   ;;  %v6623_v22 = vld [vmem:[%s10022_s6 + $0x164] ss:$16 sps:$4 sm:$0xff]   ;;  %v6626_v28 = vld [vmem:[%s10022_s6 + $0x16c] ss:$16 sps:$4 sm:$0xff]  }
 0x2c7   :  { %v3474_v41 = vpack.c.bf16 %v9585_v31, %v9585_v31  ;;  %v6621_v29 = vld [vmem:[%s10022_s6 + $0x160] ss:$16 sps:$4 sm:$0xff]   ;;  %v6624_v7 = vld [vmem:[%s10022_s6 + $0x168] ss:$16 sps:$4 sm:$0xff]   ;;  %v6629_v23 = vld [vmem:[%s10022_s6 + $0x184] ss:$16 sps:$4 sm:$0xff]  }
 0x2c8   :  { %4338 = vmatpush1.bf16.msra.mxu0 %v6549_v30  ;;  %4420 = vmatpush1.bf16.msra.mxu1 %v6552_v24  ;;  %v3475_v35 = vpack.c.bf16 %v9593_v32, %v9593_v32  ;;  %v6632_v12 = vld [vmem:[%s10022_s6 + $0x18c] ss:$16 sps:$4 sm:$0xff]   ;;  %v6627_v63 = vld [vmem:[%s10022_s6 + $0x180] ss:$16 sps:$4 sm:$0xff]   ;;  %v6630_v30 = vld [vmem:[%s10022_s6 + $0x188] ss:$16 sps:$4 sm:$0xff]  }
 0x2c9   :  { %5228 = vmatprep.subr.bf16.mxu0 %v6557_v3  ;;  %5310 = vmatprep.subr.bf16.mxu1 %v6560_v8  ;;  %v6635_v24 = vld [vmem:[%s10022_s6 + $0x1a4] ss:$16 sps:$4 sm:$0xff]   ;;  %v6638_v27 = vld [vmem:[%s10022_s6 + $0x1ac] ss:$16 sps:$4 sm:$0xff]   ;;  %v6633_v3 = vld [vmem:[%s10022_s6 + $0x1a0] ss:$16 sps:$4 sm:$0xff]  }
 0x2ca   :  { %4339 = vmatprep.mubr.bf16.mxu0 %v3475_v35  ;;  %4421 = vmatprep.mubr.bf16.mxu1 %v3475_v35  ;;  %v6636_v8 = vld [vmem:[%s10022_s6 + $0x1a8] ss:$16 sps:$4 sm:$0xff]   ;;  %v6641_v35 = vld [vmem:[%s10022_s6 + $0x1c4] ss:$16 sps:$4 sm:$0xff]  }
 0x2cb   :  { %4340 = vmatmul.mubr.bf16.vlgmr.msra.gmra.mrb[16].mxu0 %v3474_v41  ;;  %4422 = vmatmul.mubr.bf16.vlgmr.msra.gmra.mrb[16].mxu1 %v3474_v41  ;;  %v6642_v41 = vld [vmem:[%s10022_s6 + $0x1c8] ss:$16 sps:$4 sm:$0xff]  }
 0x2cc   :  { %5229 = vmatpush1.bf16.msra.mxu0 %v6555_v38  ;;  %5311 = vmatpush1.bf16.msra.mxu1 %v6558_v39  ;;  %v6644_v38 = vld [vmem:[%s10022_s6 + $0x1cc] ss:$16 sps:$4 sm:$0xff]   ;;  %v6639_v39 = vld [vmem:[%s10022_s6 + $0x1c0] ss:$16 sps:$4 sm:$0xff]  }
 0x2cd   :  { %5230 = vmatprep.subr.bf16.mxu0 %v6563_v42  ;;  %5312 = vmatprep.subr.bf16.mxu1 %v6566_v26  ;;  %v6647_v42 = vld [vmem:[%s10022_s6 + $0x1e4] ss:$16 sps:$4 sm:$0xff]   ;;  %v6650_v26 = vld [vmem:[%s10022_s6 + $0x1ec] ss:$16 sps:$4 sm:$0xff]  }
 0x2d0   :  { %5231 = vmatpush1.bf16.msra.mxu0 %v6561_v43  ;;  %5313 = vmatpush1.bf16.msra.mxu1 %v6564_v33  ;;  %v6645_v43 = vld [vmem:[%s10022_s6 + $0x1e0] ss:$16 sps:$4 sm:$0xff]   ;;  %v6648_v33 = vld [vmem:[%s10022_s6 + $0x1e8] ss:$16 sps:$4 sm:$0xff]  }
 0x2d1   :  { %5232 = vmatprep.subr.bf16.mxu0 %v6569_v37  ;;  %5314 = vmatprep.subr.bf16.mxu1 %v6572_v25  ;;  %v6653_v37 = vld [vmem:[%s10022_s6 + $0x204] ss:$16 sps:$4 sm:$0xff]   ;;  %v6656_v25 = vld [vmem:[%s10022_s6 + $0x20c] ss:$16 sps:$4 sm:$0xff]  }
 0x2d4   :  { %5233 = vmatpush1.bf16.msra.mxu0 %v6567_v46  ;;  %5315 = vmatpush1.bf16.msra.mxu1 %v6570_v48  ;;  %v9794_v46 = vld [vmem:[%s10021_s5] sm:$0xf] }
 0x2d5   :  { %5234 = vmatprep.subr.bf16.mxu0 %v6575_v49  ;;  %5316 = vmatprep.subr.bf16.mxu1 %v6578_v52  ;;  %v3609_v48 = vrot.slane %v9794_v46, %v9359_v2  ;;  %v3613_v49 = vrot.slane %v9794_v46, %v9367_v4  ;;  %v3621_v52 = vrot.slane %v9794_v46, %v9559_v18 }
 0x2d8   :  { %5235 = vmatpush1.bf16.msra.mxu0 %v6573_v53  ;;  %5317 = vmatpush1.bf16.msra.mxu1 %v6576_v54 }
 0x2d9   :  { %5236 = vmatprep.subr.bf16.mxu0 %v6581_v34  ;;  %5318 = vmatprep.subr.bf16.mxu1 %v6584_v57 }
 0x2dc   :  { %5237 = vmatpush1.bf16.msra.mxu0 %v6579_v58  ;;  %5319 = vmatpush1.bf16.msra.mxu1 %v6582_v45 }
 0x2dd   :  { %5238 = vmatprep.subr.bf16.mxu0 %v6587_v55  ;;  %5320 = vmatprep.subr.bf16.mxu1 %v6590_v61 }
 0x2e0   :  { %5239 = vmatpush1.bf16.msra.mxu0 %v6585_v62  ;;  %5321 = vmatpush1.bf16.msra.mxu1 %v6588_v60 }
 0x2e1   :  { %5240 = vmatprep.subr.bf16.mxu0 %v6593_v0  ;;  %5322 = vmatprep.subr.bf16.mxu1 %v6596_v50 }
 0x2e4   :  { %5241 = vmatpush1.bf16.msra.mxu0 %v6591_v44  ;;  %5323 = vmatpush1.bf16.msra.mxu1 %v6594_v36 }
 0x2e5   :  { %5242 = vmatprep.subr.bf16.mxu0 %v6599_v59  ;;  %5324 = vmatprep.subr.bf16.mxu1 %v6602_v17  ;;  %v6651_v17 = vld [vmem:[%s10022_s6 + $0x200] ss:$16 sps:$4 sm:$0xff]  }
 0x2e8   :  { %5243 = vmatpush1.bf16.msra.mxu0 %v6597_v47  ;;  %5325 = vmatpush1.bf16.msra.mxu1 %v6600_v56  ;;  %v6654_v47 = vld [vmem:[%s10022_s6 + $0x208] ss:$16 sps:$4 sm:$0xff]  }
 0x2e9   :  { %5244 = vmatprep.subr.bf16.mxu0 %v6605_v40  ;;  %5326 = vmatprep.subr.bf16.mxu1 %v6608_v14  ;;  %v6659_v40 = vld [vmem:[%s10022_s6 + $0x224] ss:$16 sps:$4 sm:$0xff]   ;;  %v6662_v14 = vld [vmem:[%s10022_s6 + $0x22c] ss:$16 sps:$4 sm:$0xff]  }
 0x2ec   :  { %5245 = vmatpush1.bf16.msra.mxu0 %v6603_v10  ;;  %5327 = vmatpush1.bf16.msra.mxu1 %v6606_v11  ;;  %v6657_v11 = vld [vmem:[%s10022_s6 + $0x220] ss:$16 sps:$4 sm:$0xff]  }
 0x2ed   :  { %5246 = vmatprep.subr.bf16.mxu0 %v6611_v9  ;;  %5328 = vmatprep.subr.bf16.mxu1 %v6614_v15  ;;  %v6660_v9 = vld [vmem:[%s10022_s6 + $0x228] ss:$16 sps:$4 sm:$0xff]   ;;  %v6665_v15 = vld [vmem:[%s10022_s6 + $0x244] ss:$16 sps:$4 sm:$0xff]  }
 0x2f0   :  { %5247 = vmatpush1.bf16.msra.mxu0 %v6609_v13  ;;  %5329 = vmatpush1.bf16.msra.mxu1 %v6612_v16  ;;  %v6668_v13 = vld [vmem:[%s10022_s6 + $0x24c] ss:$16 sps:$4 sm:$0xff]   ;;  %v6663_v16 = vld [vmem:[%s10022_s6 + $0x240] ss:$16 sps:$4 sm:$0xff]  }
 0x2f1   :  { %5248 = vmatprep.subr.bf16.mxu0 %v6617_v19  ;;  %5330 = vmatprep.subr.bf16.mxu1 %v6620_v20  ;;  %v6666_v19 = vld [vmem:[%s10022_s6 + $0x248] ss:$16 sps:$4 sm:$0xff]   ;;  %v6671_v20 = vld [vmem:[%s10022_s6 + $0x264] ss:$16 sps:$4 sm:$0xff]  }
 0x2f4   :  { %5249 = vmatpush1.bf16.msra.mxu0 %v6615_v21  ;;  %5331 = vmatpush1.bf16.msra.mxu1 %v6618_v1  ;;  %v6674_v21 = vld [vmem:[%s10022_s6 + $0x26c] ss:$16 sps:$4 sm:$0xff]   ;;  %v6669_v1 = vld [vmem:[%s10022_s6 + $0x260] ss:$16 sps:$4 sm:$0xff]  }
 0x2f5   :  { %5250 = vmatprep.subr.bf16.mxu0 %v6623_v22  ;;  %5332 = vmatprep.subr.bf16.mxu1 %v6626_v28  ;;  %v6672_v22 = vld [vmem:[%s10022_s6 + $0x268] ss:$16 sps:$4 sm:$0xff]   ;;  %v6677_v28 = vld [vmem:[%s10022_s6 + $0x284] ss:$16 sps:$4 sm:$0xff]  }
 0x2f8   :  { %5251 = vmatpush1.bf16.msra.mxu0 %v6621_v29  ;;  %5333 = vmatpush1.bf16.msra.mxu1 %v6624_v7  ;;  %v6680_v29 = vld [vmem:[%s10022_s6 + $0x28c] ss:$16 sps:$4 sm:$0xff]   ;;  %v6675_v7 = vld [vmem:[%s10022_s6 + $0x280] ss:$16 sps:$4 sm:$0xff]  }
 0x2f9   :  { %5252 = vmatprep.subr.bf16.mxu0 %v6629_v23  ;;  %5334 = vmatprep.subr.bf16.mxu1 %v6632_v12  ;;  %v6678_v23 = vld [vmem:[%s10022_s6 + $0x288] ss:$16 sps:$4 sm:$0xff]   ;;  %v6683_v12 = vld [vmem:[%s10022_s6 + $0x2a4] ss:$16 sps:$4 sm:$0xff]  }
 0x2fc   :  { %5253 = vmatpush1.bf16.msra.mxu0 %v6627_v63  ;;  %5335 = vmatpush1.bf16.msra.mxu1 %v6630_v30  ;;  %v6686_v63 = vld [vmem:[%s10022_s6 + $0x2ac] ss:$16 sps:$4 sm:$0xff]   ;;  %v6681_v30 = vld [vmem:[%s10022_s6 + $0x2a0] ss:$16 sps:$4 sm:$0xff]  }
 0x2fd   :  { %5254 = vmatprep.subr.bf16.mxu0 %v6635_v24  ;;  %5336 = vmatprep.subr.bf16.mxu1 %v6638_v27  ;;  %v6684_v24 = vld [vmem:[%s10022_s6 + $0x2a8] ss:$16 sps:$4 sm:$0xff]   ;;  %v6689_v27 = vld [vmem:[%s10022_s6 + $0x2c4] ss:$16 sps:$4 sm:$0xff]  }
 0x300   :  { %5255 = vmatpush1.bf16.msra.mxu0 %v6633_v3  ;;  %5337 = vmatpush1.bf16.msra.mxu1 %v6636_v8  ;;  %v6692_v3 = vld [vmem:[%s10022_s6 + $0x2cc] ss:$16 sps:$4 sm:$0xff]   ;;  %v6687_v8 = vld [vmem:[%s10022_s6 + $0x2c0] ss:$16 sps:$4 sm:$0xff]  }
 0x301   :  { %5256 = vmatprep.subr.bf16.mxu0 %v6641_v35  ;;  %5338 = vmatprep.subr.bf16.mxu1 %v6644_v38  ;;  %v6690_v35 = vld [vmem:[%s10022_s6 + $0x2c8] ss:$16 sps:$4 sm:$0xff]   ;;  %v6695_v38 = vld [vmem:[%s10022_s6 + $0x2e4] ss:$16 sps:$4 sm:$0xff]  }
 0x304   :  { %5257 = vmatpush1.bf16.msra.mxu0 %v6639_v39  ;;  %5339 = vmatpush1.bf16.msra.mxu1 %v6642_v41  ;;  %v6698_v39 = vld [vmem:[%s10022_s6 + $0x2ec] ss:$16 sps:$4 sm:$0xff]   ;;  %v6693_v41 = vld [vmem:[%s10022_s6 + $0x2e0] ss:$16 sps:$4 sm:$0xff]  }
 0x305   :  { %5258 = vmatprep.subr.bf16.mxu0 %v6647_v42  ;;  %5340 = vmatprep.subr.bf16.mxu1 %v6650_v26  ;;  %v6696_v42 = vld [vmem:[%s10022_s6 + $0x2e8] ss:$16 sps:$4 sm:$0xff]   ;;  %v6701_v26 = vld [vmem:[%s10022_s6 + $0x304] ss:$16 sps:$4 sm:$0xff]  }
 0x308   :  { %5259 = vmatpush1.bf16.msra.mxu0 %v6645_v43  ;;  %5341 = vmatpush1.bf16.msra.mxu1 %v6648_v33  ;;  %v6704_v43 = vld [vmem:[%s10022_s6 + $0x30c] ss:$16 sps:$4 sm:$0xff]   ;;  %v6699_v33 = vld [vmem:[%s10022_s6 + $0x300] ss:$16 sps:$4 sm:$0xff]  }
 0x309   :  { %5269 = vmatprep.subr.bf16.mxu0 %v6653_v37  ;;  %5351 = vmatprep.subr.bf16.mxu1 %v6656_v25  ;;  %v6702_v37 = vld [vmem:[%s10022_s6 + $0x308] ss:$16 sps:$4 sm:$0xff]   ;;  %v6707_v25 = vld [vmem:[%s10022_s6 + $0x324] ss:$16 sps:$4 sm:$0xff]  }
 0x39e   :  { %v4341_v53 = vpop.f32.mrb[16].mxu0  ;;  %v9802_v54 = vpop.f32.mrb[16].mxu1 }
 0x39f   :  { %v5954_v34 = vadd.f32 %v4341_v53, %v3609_v48  ;;  %v4343_v57 = vpop.f32.mrb[17].mxu0  ;;  %v4425_v58 = vpop.f32.mrb[17].mxu1  ;;  %v6710_v48 = vld [vmem:[%s10022_s6 + $0x32c] ss:$16 sps:$4 sm:$0xff]   ;;  %v6713_v53 = vld [vmem:[%s10022_s6 + $0x344] ss:$16 sps:$4 sm:$0xff]  }
 0x3a0   :  { %v5955_v45 = vadd.f32 %v4343_v57, %v3613_v49  ;;  %v5957_v55 = vadd.f32 %v4425_v58, %v3621_v52  ;;  %v4345_v61 = vpop.f32.mrb[18].mxu0  ;;  %v4427_v62 = vpop.f32.mrb[18].mxu1  ;;  %v6705_v49 = vld [vmem:[%s10022_s6 + $0x320] ss:$16 sps:$4 sm:$0xff]   ;;  %v6708_v52 = vld [vmem:[%s10022_s6 + $0x328] ss:$16 sps:$4 sm:$0xff]  }
 0x3a1   :  { %v4430_v60 = vmax.f32 %v5954_v34, 0.0  ;;  %v4346_v0 = vpop.f32.mrb[19].mxu0  ;;  %v4428_v50 = vpop.f32.mrb[19].mxu1  ;;  %v6716_v34 = vld [vmem:[%s10022_s6 + $0x34c] ss:$16 sps:$4 sm:$0xff]  }
 0x3a2   :  { %v4431_v44 = vmax.f32 %v5955_v45, 0.0  ;;  %v4433_v36 = vmax.f32 %v5957_v55, 0.0  ;;  %v6711_v57 = vld [vmem:[%s10022_s6 + $0x340] ss:$16 sps:$4 sm:$0xff]   ;;  %v6714_v58 = vld [vmem:[%s10022_s6 + $0x348] ss:$16 sps:$4 sm:$0xff]  }
 0x3a3   :  { %v4434_v56 = vpack.c.bf16 %v4430_v60, %v4430_v60  ;;  %v6719_v45 = vld [vmem:[%s10022_s6 + $0x364] ss:$16 sps:$4 sm:$0xff]   ;;  %v6722_v55 = vld [vmem:[%s10022_s6 + $0x36c] ss:$16 sps:$4 sm:$0xff]   ;;  %v6717_v61 = vld [vmem:[%s10022_s6 + $0x360] ss:$16 sps:$4 sm:$0xff]  }
 0x3a4   :  { %v4435_v59 = vpack.c.bf16 %v4431_v44, %v4431_v44  ;;  %v4437_v10 = vpack.c.bf16 %v4433_v36, %v4433_v36  ;;  %v6720_v62 = vld [vmem:[%s10022_s6 + $0x368] ss:$16 sps:$4 sm:$0xff]   ;;  %v6725_v60 = vld [vmem:[%s10022_s6 + $0x384] ss:$16 sps:$4 sm:$0xff]   ;;  %v6728_v0 = vld [vmem:[%s10022_s6 + $0x38c] ss:$16 sps:$4 sm:$0xff]  }
 0x3a5   :  { %v6723_v50 = vld [vmem:[%s10022_s6 + $0x380] ss:$16 sps:$4 sm:$0xff]   ;;  %v6726_v44 = vld [vmem:[%s10022_s6 + $0x388] ss:$16 sps:$4 sm:$0xff]   ;;  %v6731_v36 = vld [vmem:[%s10022_s6 + $0x3a4] ss:$16 sps:$4 sm:$0xff]  }
 0x3a6   :  { %5260 = vmatprep.mubr.bf16.mxu0 %v4435_v59  ;;  %5342 = vmatprep.mubr.bf16.mxu1 %v4435_v59  ;;  %v6734_v59 = vld [vmem:[%s10022_s6 + $0x3ac] ss:$16 sps:$4 sm:$0xff]  }
 0x3a7   :  { %5261 = vmatmul.mubr.bf16.vlgmr.msra.gmra.mrb[20].mxu0 %v4434_v56  ;;  %5343 = vmatmul.mubr.bf16.vlgmr.msra.gmra.mrb[20].mxu1 %v4434_v56  ;;  %v3617_v56 = vrot.slane %v9794_v46, %v9550_v5  ;;  %v6738_v46 = vld [vmem:[%s10022_s6 + $0x3c8] ss:$16 sps:$4 sm:$0xff]  }
 0x3a8   :  { %5270 = vmatpush1.bf16.msra.mxu0 %v6651_v17  ;;  %5352 = vmatpush1.bf16.msra.mxu1 %v6654_v47  ;;  %v6729_v17 = vld [vmem:[%s10022_s6 + $0x3a0] ss:$16 sps:$4 sm:$0xff]   ;;  %v6732_v47 = vld [vmem:[%s10022_s6 + $0x3a8] ss:$16 sps:$4 sm:$0xff]  }
 0x3a9   :  { %5301 = vmatprep.mubr.bf16.mxu0 %v4437_v10  ;;  %5383 = vmatprep.mubr.bf16.mxu1 %v4437_v10  ;;  %v6735_v10 = vld [vmem:[%s10022_s6 + $0x3c0] ss:$16 sps:$4 sm:$0xff]  }
 0x3aa   :  { %5271 = vmatprep.subr.bf16.mxu0 %v6659_v40  ;;  %5353 = vmatprep.subr.bf16.mxu1 %v6662_v14  ;;  %v6737_v40 = vld [vmem:[%s10022_s6 + $0x3c4] ss:$16 sps:$4 sm:$0xff]   ;;  %v6740_v14 = vld [vmem:[%s10022_s6 + $0x3cc] ss:$16 sps:$4 sm:$0xff]  }
 0x3ac   :  { %5272 = vmatpush1.bf16.msra.mxu0 %v6657_v11  ;;  %5354 = vmatpush1.bf16.msra.mxu1 %v6660_v9  ;;  %v5956_v11 = vadd.f32 %v9802_v54, %v3617_v56  ;;  %v6743_v9 = vld [vmem:[%s10022_s6 + $0x3e4] ss:$16 sps:$4 sm:$0xff]   ;;  %v6744_v54 = vld [vmem:[%s10022_s6 + $0x3e8] ss:$16 sps:$4 sm:$0xff]  }
 0x3ad   :  { %5273 = vmatprep.subr.bf16.mxu0 %v6665_v15  ;;  %5355 = vmatprep.subr.bf16.mxu1 %v6668_v13  ;;  %v6746_v15 = vld [vmem:[%s10022_s6 + $0x3ec] ss:$16 sps:$4 sm:$0xff]   ;;  %v6741_v13 = vld [vmem:[%s10022_s6 + $0x3e0] ss:$16 sps:$4 sm:$0xff]   ;;  %s6787_s6 = smov [#allocation2]  }
 0x3b0   :  { %5274 = vmatpush1.bf16.msra.mxu0 %v6663_v16  ;;  %5356 = vmatpush1.bf16.msra.mxu1 %v6666_v19  ;;  %v4432_v16 = vmax.f32 %v5956_v11, 0.0 }
 0x3b1   :  { %5275 = vmatprep.subr.bf16.mxu0 %v6671_v20  ;;  %5357 = vmatprep.subr.bf16.mxu1 %v6674_v21  ;;  %v4566_v20 = vld [vmem:[%s10023_s7] sm:$0xf]  ;;  %s5430_s7 = sshll.u32 %s6787_s6, 4  ;;  %s5431_s7 = int_to_ptr.vmem [resolvable:$true] %s5430_s7 }
 0x3b2   :  { %v4436_v19 = vpack.c.bf16 %v4432_v16, %v4432_v16  ;;  %v4571_v21 = vrot.slane %v4566_v20, %v9359_v2  ;;  %s6763_s2 = scalar_lea.vmem %s5431_s7, 512  ;;  %p6768_p1 = scmp.lt.s32.totalorder %s5431_s7, %s5431_s7 }
 0x3b3   :  { %p6764_p0 = scmp.ne.s32.totalorder %s5431_s7, %s6763_s2  ;;  %p6769_p2 = scmp.lt.s32.totalorder %s6763_s2, %s6763_s2 }
 0x3b4   :  { %5276 = vmatpush1.bf16.msra.mxu0 %v6669_v1  ;;  %5358 = vmatpush1.bf16.msra.mxu1 %v6672_v22  ;;  %v4579_v1 = vrot.slane %v4566_v20, %v9550_v5  ;;  %v4575_v22 = vrot.slane %v4566_v20, %v9367_v4 }
 0x3b5   :  { %5277 = vmatprep.subr.bf16.mxu0 %v6677_v28  ;;  %5359 = vmatprep.subr.bf16.mxu1 %v6680_v29  ;;  %v4583_v28 = vrot.slane %v4566_v20, %v9559_v18  ;;  %p6770_p3 = por %p6769_p2, %p6768_p1 }
 0x3b7   :  { %p6771_p4 = pnand %p6770_p3, %p6764_p0 }
 0x3b8   :  { %5278 = vmatpush1.bf16.msra.mxu0 %v6675_v7  ;;  %5360 = vmatpush1.bf16.msra.mxu1 %v6678_v23 }
 0x3b9   :  { %5279 = vmatprep.subr.bf16.mxu0 %v6683_v12  ;;  %5361 = vmatprep.subr.bf16.mxu1 %v6686_v63 }
 0x3bc   :  { %5280 = vmatpush1.bf16.msra.mxu0 %v6681_v30  ;;  %5362 = vmatpush1.bf16.msra.mxu1 %v6684_v24 }
 0x3bd   :  { %5281 = vmatprep.subr.bf16.mxu0 %v6689_v27  ;;  %5363 = vmatprep.subr.bf16.mxu1 %v6692_v3 }
 0x3c0   :  { %5282 = vmatpush1.bf16.msra.mxu0 %v6687_v8  ;;  %5364 = vmatpush1.bf16.msra.mxu1 %v6690_v35 }
 0x3c1   :  { %5283 = vmatprep.subr.bf16.mxu0 %v6695_v38  ;;  %5365 = vmatprep.subr.bf16.mxu1 %v6698_v39 }
 0x3c4   :  { %5284 = vmatpush1.bf16.msra.mxu0 %v6693_v41  ;;  %5366 = vmatpush1.bf16.msra.mxu1 %v6696_v42 }
 0x3c5   :  { %5285 = vmatprep.subr.bf16.mxu0 %v6701_v26  ;;  %5367 = vmatprep.subr.bf16.mxu1 %v6704_v43 }
 0x3c8   :  { %5286 = vmatpush1.bf16.msra.mxu0 %v6699_v33  ;;  %5368 = vmatpush1.bf16.msra.mxu1 %v6702_v37 }
 0x3c9   :  { %5287 = vmatprep.subr.bf16.mxu0 %v6707_v25  ;;  %5369 = vmatprep.subr.bf16.mxu1 %v6710_v48 }
 0x3cc   :  { %5288 = vmatpush1.bf16.msra.mxu0 %v6705_v49  ;;  %5370 = vmatpush1.bf16.msra.mxu1 %v6708_v52 }
 0x3cd   :  { %5289 = vmatprep.subr.bf16.mxu0 %v6713_v53  ;;  %5371 = vmatprep.subr.bf16.mxu1 %v6716_v34 }
 0x3d0   :  { %5290 = vmatpush1.bf16.msra.mxu0 %v6711_v57  ;;  %5372 = vmatpush1.bf16.msra.mxu1 %v6714_v58 }
 0x3d1   :  { %5291 = vmatprep.subr.bf16.mxu0 %v6719_v45  ;;  %5373 = vmatprep.subr.bf16.mxu1 %v6722_v55 }
 0x3d4   :  { %5292 = vmatpush1.bf16.msra.mxu0 %v6717_v61  ;;  %5374 = vmatpush1.bf16.msra.mxu1 %v6720_v62 }
 0x3d5   :  { %5293 = vmatprep.subr.bf16.mxu0 %v6725_v60  ;;  %5375 = vmatprep.subr.bf16.mxu1 %v6728_v0 }
 0x3d8   :  { %5294 = vmatpush1.bf16.msra.mxu0 %v6723_v50  ;;  %5376 = vmatpush1.bf16.msra.mxu1 %v6726_v44 }
 0x3d9   :  { %5295 = vmatprep.subr.bf16.mxu0 %v6731_v36  ;;  %5377 = vmatprep.subr.bf16.mxu1 %v6734_v59 }
 0x3dc   :  { %5296 = vmatpush1.bf16.msra.mxu0 %v6729_v17  ;;  %5378 = vmatpush1.bf16.msra.mxu1 %v6732_v47 }
 0x3dd   :  { %5297 = vmatprep.subr.bf16.mxu0 %v6737_v40  ;;  %5379 = vmatprep.subr.bf16.mxu1 %v6740_v14 }
 0x3e0   :  { %5298 = vmatpush1.bf16.msra.mxu0 %v6735_v10  ;;  %5380 = vmatpush1.bf16.msra.mxu1 %v6738_v46 }
 0x3e1   :  { %5299 = vmatprep.subr.bf16.mxu0 %v6743_v9  ;;  %5381 = vmatprep.subr.bf16.mxu1 %v6746_v15 }
 0x3e4   :  { %5300 = vmatpush1.bf16.msra.mxu0 %v6741_v13  ;;  %5382 = vmatpush1.bf16.msra.mxu1 %v6744_v54 }
 0x3e7   :  { %5302 = vmatmul.mubr.bf16.vlgmr.msra.gmra.mrb[20].mxu0 %v4436_v19  ;;  %5384 = vmatmul.mubr.bf16.vlgmr.msra.gmra.mrb[20].mxu1 %v4436_v19 }
 0x4ba   :  { %v5303_v29 = vpop.f32.mrb[20].mxu0  ;;  %v5385_v7 = vpop.f32.mrb[20].mxu1 }
 0x4bb   :  { %v5958_v23 = vadd.f32 %v5303_v29, %v4571_v21  ;;  %v5960_v12 = vadd.f32 %v5385_v7, %v4579_v1  ;;  %v5305_v63 = vpop.f32.mrb[21].mxu0  ;;  %v5387_v30 = vpop.f32.mrb[21].mxu1 }
 0x4bc   :  { %v5959_v24 = vadd.f32 %v5305_v63, %v4575_v22  ;;  %v5961_v27 = vadd.f32 %v5387_v30, %v4583_v28  ;;  %v5307_v3 = vpop.f32.mrb[22].mxu0  ;;  %v5389_v8 = vpop.f32.mrb[22].mxu1 }
 0x4bd   :  { %v5950_v35 = vmul.f32 -1.442695, %v5958_v23  ;;  %v5952_v38 = vmul.f32 -1.442695, %v5960_v12  ;;  %v5308_v39 = vpop.f32.mrb[23].mxu0  ;;  %v5390_v2 = vpop.f32.mrb[23].mxu1 }
 0x4be   :  { %v5951_v41 = vmul.f32 -1.442695, %v5959_v24  ;;  %v5953_v5 = vmul.f32 -1.442695, %v5961_v27 }
 0x4bf   :  { %6747 = vpow2.f32 %v5950_v35 }
 0x4c0   :  { %6749 = vpow2.f32 %v5952_v38 }
 0x4c1   :  { %6751 = vpow2.f32 %v5951_v41 }
 0x4c2   :  { %6753 = vpow2.f32 %v5953_v5 }
 0x4c9   :  { %v6748_v4 = vpop.eup %6747 }
 0x4ca   :  { %v6750_v18 = vpop.eup %6749  ;;  %v5404_v42 = vadd.f32 1.0, %v6748_v4 }
 0x4cb   :  { %v6752_v26 = vpop.eup %6751  ;;  %v5406_v43 = vadd.f32 1.0, %v6750_v18 }
 0x4cc   :  { %v6754_v33 = vpop.eup %6753  ;;  %6755 = vrcp.f32 %v5404_v42  ;;  %v5405_v37 = vadd.f32 1.0, %v6752_v26 }
 0x4cd   :  { %6757 = vrcp.f32 %v5406_v43  ;;  %v5407_v25 = vadd.f32 1.0, %v6754_v33 }
 0x4ce   :  { %6759 = vrcp.f32 %v5405_v37 }
 0x4cf   :  { %6761 = vrcp.f32 %v5407_v25 }
 0x4d6   :  { %v6756_v48 = vpop.eup %6755 }
 0x4d7   :  { %v6758_v49 = vpop.eup %6757  ;;  %v5416_v52 = vmul.f32 %v6756_v48, %v9373_v51 }
 0x4d8   :  { %v6760_v53 = vpop.eup %6759  ;;  %v5418_v34 = vmul.f32 %v6758_v49, %v9585_v31 }
 0x4d9   :  { %v6762_v57 = vpop.eup %6761  ;;  %v5417_v58 = vmul.f32 %v6760_v53, %v9375_v6  ;;  %5420 = vst [vmem:[#allocation2] sm:$0xff] %v5416_v52 }
 0x4da   :  { %v5419_v45 = vmul.f32 %v6762_v57, %v9593_v32  ;;  %5422 = vst [vmem:[#allocation2 + $0x10] sm:$0xff] %v5418_v34 }
 0x4db   :  { %5421 = vst [vmem:[#allocation2 + $0x8] sm:$0xff] %v5417_v58 }
 0x4dc   :  { %5423 = vst [vmem:[#allocation2 + $0x18] sm:$0xff] %v5419_v45 }
 0x4dd   :  { %6774 = shalt.err (!%p6771_p4)
}
 0x4de   :  { %s6775_s23 = scalar_lea.hbm %s10024_s8, 512 }
 0x4df   :  { %p6776_p5 = scmp.ne.s32.totalorder %s10024_s8, %s6775_s23  ;;  %p6779_p6 = scmp.lt.u32.totalorder %s6775_s23, %s10024_s8 }
 0x4e1   :  { %p6781_p7 = pnand %p6779_p6, %p6776_p5 }
 0x4e3   :  { %6784 = shalt.err (!%p6781_p7)
}
 0x4e4   :  { %5433 = dma.vmem_to_hbm [thread:$0]  %s5431_s7, 512, %s10024_s8, [#allocation3]  }
 0x4e5   :  { %6785 = dma.done.wait [#allocation3], 512  }
 0x4e6   :  { %6786 = vsyncadd [#allocation3], 4294966784 }
 0x4e7   :  { %5437 = vsyncpa [#allocation3], 1 }

</bundles_post_ra>
